<compile_context>
chip_gen: v7x
topology: tpu7x:2x2x1
jax: 0.10.0
libtpu: 0.0.40
codegen_flags: <defaults>
</compile_context>

<pallas_src>
import functools

import jax
import jax.numpy as jnp
from jax.experimental import pallas as pl
from jax.experimental.pallas import tpu as pltpu

LANE = 128


def _round_up(x, m):
    return (x + m - 1) // m * m


def _fused_isensee_kernel(n_blocks, H, W, x_ref, *refs):
    """Fused n_blocks x (conv3x3 SAME + bias + ReLU) for one batch element."""
    wb_refs = refs[: 2 * n_blocks]
    o_ref = refs[2 * n_blocks]
    mid_ref = refs[2 * n_blocks + 1]

    def conv3x3(read_window, w_ref):
        cout = w_ref.shape[-1]
        acc = jnp.zeros((H * W, cout), jnp.float32)
        # Static unroll: the scheduler overlaps the 9 MXU pushes with the
        # shifted-window loads; accumulate in f32, store once at the end.
        for t in range(9):
            dy, dx = divmod(t, 3)
            win = read_window(dy, dx)                       # (H, W, Cin)
            acc = acc + jnp.dot(
                win.reshape(H * W, win.shape[-1]),
                w_ref[t],
                preferred_element_type=jnp.float32,
            )
        return acc

    # Zero the VMEM intermediate once so its 1-pixel halo is zero (SAME
    # padding); the interior is fully overwritten by every block.
    if n_blocks > 1:
        mid_ref[...] = jnp.zeros_like(mid_ref)

    for blk in range(n_blocks):
        w_ref = wb_refs[2 * blk]
        b_ref = wb_refs[2 * blk + 1]

        if blk == 0:
            def read_window(dy, dx):
                return x_ref[0, dy:dy + H, dx:dx + W, :]
        else:
            def read_window(dy, dx):
                return mid_ref[dy:dy + H, dx:dx + W, :]

        acc = conv3x3(read_window, w_ref)

        # Bias broadcast hoisted out of the tap loop; bias + ReLU applied once.
        act = jnp.maximum(acc + b_ref[...], 0.0)
        cout = w_ref.shape[-1]

        if blk == n_blocks - 1:
            o_ref[...] = act.reshape(1, H, W, cout).astype(o_ref.dtype)
        else:
            mid_ref[1:1 + H, 1:1 + W, :] = act.reshape(H, W, cout)


def isensee_layer_forward(x_nchw, weights, biases):
    """IsenseeLayer forward: sequentially apply conv3x3(SAME)+bias+ReLU blocks.

    x_nchw : (N, Cin, H, W) float32
    weights: list of (Cout_i, Cin_i, 3, 3) float32 (PyTorch OIHW layout)
    biases : list of (Cout_i,) float32
    """
    n_blocks = len(weights)
    N, c_in, H, W = x_nchw.shape
    Hp, Wp = H + 2, W + 2

    # Uniform lane-dense channel padding (MXU friendly, >=128 wide stores).
    c_all = [int(c_in)] + [int(w.shape[0]) for w in weights]
    Cp = _round_up(max(c_all), LANE)
    c_out_last = int(weights[-1].shape[0])

    # NCHW -> NHWC once at the jit boundary; zero spatial halo + channel pad.
    x = jnp.transpose(x_nchw, (0, 2, 3, 1)).astype(jnp.float32)
    x = jnp.pad(x, ((0, 0), (1, 1), (1, 1), (0, Cp - c_in)))

    operands = [x]
    in_specs = [pl.BlockSpec((1, Hp, Wp, Cp), lambda n: (n, 0, 0, 0))]
    for w, b in zip(weights, biases):
        co, ci, kh, kw = (int(s) for s in w.shape)
        assert (kh, kw) == (3, 3)
        w_hwio = jnp.transpose(w.astype(jnp.float32), (2, 3, 1, 0))   # (3,3,ci,co)
        w_p = jnp.pad(w_hwio, ((0, 0), (0, 0), (0, Cp - ci), (0, Cp - co)))
        w_p = w_p.reshape(9, Cp, Cp)
        b_p = jnp.pad(b.astype(jnp.float32), (0, Cp - co)).reshape(1, Cp)
        operands += [w_p, b_p]
        in_specs += [
            pl.BlockSpec((9, Cp, Cp), lambda n: (0, 0, 0)),
            pl.BlockSpec((1, Cp), lambda n: (0, 0)),
        ]

    kernel = functools.partial(_fused_isensee_kernel, n_blocks, H, W)

    out = pl.pallas_call(
        kernel,
        out_shape=jax.ShapeDtypeStruct((N, H, W, Cp), jnp.float32),
        grid_spec=pltpu.PrefetchScalarGridSpec(
            num_scalar_prefetch=0,
            grid=(N,),
            in_specs=in_specs,
            out_specs=pl.BlockSpec((1, H, W, Cp), lambda n: (n, 0, 0, 0)),
            scratch_shapes=[pltpu.VMEM((Hp, Wp, Cp), jnp.float32)],
        ),
        compiler_params=pltpu.CompilerParams(
            dimension_semantics=("parallel",),
        ),
    )(*operands)

    # Drop channel padding, back to NCHW for the PyTorch-facing interface.
    y = out[..., :c_out_last]
    return jnp.transpose(y, (0, 3, 1, 2))


def _reference_forward(x_nchw, weights, biases):
    x = x_nchw
    for w, b in zip(weights, biases):
        y = jax.lax.conv_general_dilated(
            x, w, window_strides=(1, 1), padding="SAME",
            dimension_numbers=("NCHW", "OIHW", "NCHW"))
        x = jnp.maximum(y + b[None, :, None, None], 0.0)
    return x


if __name__ == "__main__":
    key = jax.random.PRNGKey(0)
    N, c_in, H, W = 2, 4, 16, 16
    planes = 32
    n_blocks = 2

    keys = jax.random.split(key, 1 + 2 * n_blocks)
    x = jax.random.normal(keys[0], (N, c_in, H, W), jnp.float32)

    weights, biases = [], []
    cin = c_in
    for i in range(n_blocks):
        w = 0.1 * jax.random.normal(keys[1 + 2 * i], (planes, cin, 3, 3), jnp.float32)
        b = 0.1 * jax.random.normal(keys[2 + 2 * i], (planes,), jnp.float32)
        weights.append(w)
        biases.append(b)
        cin = planes

    fwd = jax.jit(isensee_layer_forward)
    y = jax.block_until_ready(fwd(x, weights, biases))

    y_ref = jax.block_until_ready(_reference_forward(x, weights, biases))

    assert y.shape == y_ref.shape, (y.shape, y_ref.shape)
    max_err = float(jnp.max(jnp.abs(y - y_ref)))
    assert bool(jnp.allclose(y, y_ref, atol=5e-2, rtol=5e-2)), max_err

    print("KERNEL_OK")
</pallas_src>

<mosaic_0001>
module attributes {stable_mosaic.version = 11 : i64} {
  func.func @_fused_isensee_kernel(%arg0: i32, %arg1: memref<1x18x18x128xf32, #tpu.memory_space<vmem>>, %arg2: memref<9x128x128xf32, #tpu.memory_space<vmem>>, %arg3: memref<1x128xf32, #tpu.memory_space<vmem>>, %arg4: memref<9x128x128xf32, #tpu.memory_space<vmem>>, %arg5: memref<1x128xf32, #tpu.memory_space<vmem>>, %arg6: memref<1x16x16x128xf32, #tpu.memory_space<vmem>>, %arg7: memref<18x18x128xf32, #tpu.memory_space<vmem>>) attributes {dimension_semantics = [#tpu.dimension_semantics<parallel>], iteration_bounds = array<i64: 2>, scalar_prefetch = 0 : i64, scratch_operands = 1 : i64, tpu.core_type = #tpu.core_type<tc>, window_params = [{transform_indices = @transform_0, window_bounds = array<i64: 1, 18, 18, 128>}, {pipeline_mode = #tpu.pipeline_mode<synchronous>, transform_indices = @transform_1, window_bounds = array<i64: 9, 128, 128>}, {pipeline_mode = #tpu.pipeline_mode<synchronous>, transform_indices = @transform_2, window_bounds = array<i64: 1, 128>}, {pipeline_mode = #tpu.pipeline_mode<synchronous>, transform_indices = @transform_3, window_bounds = array<i64: 9, 128, 128>}, {pipeline_mode = #tpu.pipeline_mode<synchronous>, transform_indices = @transform_4, window_bounds = array<i64: 1, 128>}, {transform_indices = @transform_5, window_bounds = array<i64: 1, 16, 16, 128>}]} {
    %cst = arith.constant 0.000000e+00 : f32
    %0 = vector.broadcast %cst : f32 to vector<18x18x128xf32>
    %c0 = arith.constant 0 : index
    %c0_0 = arith.constant 0 : index
    %c0_1 = arith.constant 0 : index
    %1 = vector.load %arg7[%c0, %c0_0, %c0_1] : memref<18x18x128xf32, #tpu.memory_space<vmem>>, vector<18x18x128xf32>
    tpu.vector_store %arg7[%c0, %c0_0, %c0_1], %0 {strides = array<i32>} : memref<18x18x128xf32, #tpu.memory_space<vmem>>, vector<18x18x128xf32>,
    %cst_2 = arith.constant 0.000000e+00 : f32
    %2 = vector.broadcast %cst_2 : f32 to vector<256x128xf32>
    %c0_3 = arith.constant 0 : index
    %c0_4 = arith.constant 0 : index
    %c0_5 = arith.constant 0 : index
    %c0_6 = arith.constant 0 : index
    %3 = vector.load %arg1[%c0_3, %c0_4, %c0_5, %c0_6] : memref<1x18x18x128xf32, #tpu.memory_space<vmem>>, vector<1x16x16x128xf32>
    %4 = vector.shape_cast %3 : vector<1x16x16x128xf32> to vector<16x16x128xf32>
    %5 = vector.shape_cast %4 : vector<16x16x128xf32> to vector<256x128xf32>
    %c0_7 = arith.constant 0 : index
    %c0_8 = arith.constant 0 : index
    %c0_9 = arith.constant 0 : index
    %6 = vector.load %arg2[%c0_7, %c0_8, %c0_9] : memref<9x128x128xf32, #tpu.memory_space<vmem>>, vector<1x128x128xf32>
    %7 = vector.shape_cast %6 : vector<1x128x128xf32> to vector<128x128xf32>
    %cst_10 = arith.constant dense<0.000000e+00> : vector<256x128xf32>
    %8 = tpu.matmul %5, %7, %cst_10 {dimension_numbers = #tpu.dot_dimension_numbers<[1], [0], [0], [1], [0, 0, 1, 1], [], []>} : vector<256x128xf32>, vector<128x128xf32>, vector<256x128xf32> -> vector<256x128xf32>
    %9 = arith.addf %2, %8 : vector<256x128xf32>
    %c0_11 = arith.constant 0 : index
    %c0_12 = arith.constant 0 : index
    %c1 = arith.constant 1 : index
    %c0_13 = arith.constant 0 : index
    %10 = vector.load %arg1[%c0_11, %c0_12, %c1, %c0_13] : memref<1x18x18x128xf32, #tpu.memory_space<vmem>>, vector<1x16x16x128xf32>
    %11 = vector.shape_cast %10 : vector<1x16x16x128xf32> to vector<16x16x128xf32>
    %12 = vector.shape_cast %11 : vector<16x16x128xf32> to vector<256x128xf32>
    %c1_14 = arith.constant 1 : index
    %c0_15 = arith.constant 0 : index
    %c0_16 = arith.constant 0 : index
    %13 = vector.load %arg2[%c1_14, %c0_15, %c0_16] : memref<9x128x128xf32, #tpu.memory_space<vmem>>, vector<1x128x128xf32>
    %14 = vector.shape_cast %13 : vector<1x128x128xf32> to vector<128x128xf32>
    %cst_17 = arith.constant dense<0.000000e+00> : vector<256x128xf32>
    %15 = tpu.matmul %12, %14, %cst_17 {dimension_numbers = #tpu.dot_dimension_numbers<[1], [0], [0], [1], [0, 0, 1, 1], [], []>} : vector<256x128xf32>, vector<128x128xf32>, vector<256x128xf32> -> vector<256x128xf32>
    %16 = arith.addf %9, %15 : vector<256x128xf32>
    %c0_18 = arith.constant 0 : index
    %c0_19 = arith.constant 0 : index
    %c2 = arith.constant 2 : index
    %c0_20 = arith.constant 0 : index
    %17 = vector.load %arg1[%c0_18, %c0_19, %c2, %c0_20] : memref<1x18x18x128xf32, #tpu.memory_space<vmem>>, vector<1x16x16x128xf32>
    %18 = vector.shape_cast %17 : vector<1x16x16x128xf32> to vector<16x16x128xf32>
    %19 = vector.shape_cast %18 : vector<16x16x128xf32> to vector<256x128xf32>
    %c2_21 = arith.constant 2 : index
    %c0_22 = arith.constant 0 : index
    %c0_23 = arith.constant 0 : index
    %20 = vector.load %arg2[%c2_21, %c0_22, %c0_23] : memref<9x128x128xf32, #tpu.memory_space<vmem>>, vector<1x128x128xf32>
    %21 = vector.shape_cast %20 : vector<1x128x128xf32> to vector<128x128xf32>
    %cst_24 = arith.constant dense<0.000000e+00> : vector<256x128xf32>
    %22 = tpu.matmul %19, %21, %cst_24 {dimension_numbers = #tpu.dot_dimension_numbers<[1], [0], [0], [1], [0, 0, 1, 1], [], []>} : vector<256x128xf32>, vector<128x128xf32>, vector<256x128xf32> -> vector<256x128xf32>
    %23 = arith.addf %16, %22 : vector<256x128xf32>
    %c0_25 = arith.constant 0 : index
    %c1_26 = arith.constant 1 : index
    %c0_27 = arith.constant 0 : index
    %c0_28 = arith.constant 0 : index
    %24 = vector.load %arg1[%c0_25, %c1_26, %c0_27, %c0_28] : memref<1x18x18x128xf32, #tpu.memory_space<vmem>>, vector<1x16x16x128xf32>
    %25 = vector.shape_cast %24 : vector<1x16x16x128xf32> to vector<16x16x128xf32>
    %26 = vector.shape_cast %25 : vector<16x16x128xf32> to vector<256x128xf32>
    %c3 = arith.constant 3 : index
    %c0_29 = arith.constant 0 : index
    %c0_30 = arith.constant 0 : index
    %27 = vector.load %arg2[%c3, %c0_29, %c0_30] : memref<9x128x128xf32, #tpu.memory_space<vmem>>, vector<1x128x128xf32>
    %28 = vector.shape_cast %27 : vector<1x128x128xf32> to vector<128x128xf32>
    %cst_31 = arith.constant dense<0.000000e+00> : vector<256x128xf32>
    %29 = tpu.matmul %26, %28, %cst_31 {dimension_numbers = #tpu.dot_dimension_numbers<[1], [0], [0], [1], [0, 0, 1, 1], [], []>} : vector<256x128xf32>, vector<128x128xf32>, vector<256x128xf32> -> vector<256x128xf32>
    %30 = arith.addf %23, %29 : vector<256x128xf32>
    %c0_32 = arith.constant 0 : index
    %c1_33 = arith.constant 1 : index
    %c1_34 = arith.constant 1 : index
    %c0_35 = arith.constant 0 : index
    %31 = vector.load %arg1[%c0_32, %c1_33, %c1_34, %c0_35] : memref<1x18x18x128xf32, #tpu.memory_space<vmem>>, vector<1x16x16x128xf32>
    %32 = vector.shape_cast %31 : vector<1x16x16x128xf32> to vector<16x16x128xf32>
    %33 = vector.shape_cast %32 : vector<16x16x128xf32> to vector<256x128xf32>
    %c4 = arith.constant 4 : index
    %c0_36 = arith.constant 0 : index
    %c0_37 = arith.constant 0 : index
    %34 = vector.load %arg2[%c4, %c0_36, %c0_37] : memref<9x128x128xf32, #tpu.memory_space<vmem>>, vector<1x128x128xf32>
    %35 = vector.shape_cast %34 : vector<1x128x128xf32> to vector<128x128xf32>
    %cst_38 = arith.constant dense<0.000000e+00> : vector<256x128xf32>
    %36 = tpu.matmul %33, %35, %cst_38 {dimension_numbers = #tpu.dot_dimension_numbers<[1], [0], [0], [1], [0, 0, 1, 1], [], []>} : vector<256x128xf32>, vector<128x128xf32>, vector<256x128xf32> -> vector<256x128xf32>
    %37 = arith.addf %30, %36 : vector<256x128xf32>
    %c0_39 = arith.constant 0 : index
    %c1_40 = arith.constant 1 : index
    %c2_41 = arith.constant 2 : index
    %c0_42 = arith.constant 0 : index
    %38 = vector.load %arg1[%c0_39, %c1_40, %c2_41, %c0_42] : memref<1x18x18x128xf32, #tpu.memory_space<vmem>>, vector<1x16x16x128xf32>
    %39 = vector.shape_cast %38 : vector<1x16x16x128xf32> to vector<16x16x128xf32>
    %40 = vector.shape_cast %39 : vector<16x16x128xf32> to vector<256x128xf32>
    %c5 = arith.constant 5 : index
    %c0_43 = arith.constant 0 : index
    %c0_44 = arith.constant 0 : index
    %41 = vector.load %arg2[%c5, %c0_43, %c0_44] : memref<9x128x128xf32, #tpu.memory_space<vmem>>, vector<1x128x128xf32>
    %42 = vector.shape_cast %41 : vector<1x128x128xf32> to vector<128x128xf32>
    %cst_45 = arith.constant dense<0.000000e+00> : vector<256x128xf32>
    %43 = tpu.matmul %40, %42, %cst_45 {dimension_numbers = #tpu.dot_dimension_numbers<[1], [0], [0], [1], [0, 0, 1, 1], [], []>} : vector<256x128xf32>, vector<128x128xf32>, vector<256x128xf32> -> vector<256x128xf32>
    %44 = arith.addf %37, %43 : vector<256x128xf32>
    %c0_46 = arith.constant 0 : index
    %c2_47 = arith.constant 2 : index
    %c0_48 = arith.constant 0 : index
    %c0_49 = arith.constant 0 : index
    %45 = vector.load %arg1[%c0_46, %c2_47, %c0_48, %c0_49] : memref<1x18x18x128xf32, #tpu.memory_space<vmem>>, vector<1x16x16x128xf32>
    %46 = vector.shape_cast %45 : vector<1x16x16x128xf32> to vector<16x16x128xf32>
    %47 = vector.shape_cast %46 : vector<16x16x128xf32> to vector<256x128xf32>
    %c6 = arith.constant 6 : index
    %c0_50 = arith.constant 0 : index
    %c0_51 = arith.constant 0 : index
    %48 = vector.load %arg2[%c6, %c0_50, %c0_51] : memref<9x128x128xf32, #tpu.memory_space<vmem>>, vector<1x128x128xf32>
    %49 = vector.shape_cast %48 : vector<1x128x128xf32> to vector<128x128xf32>
    %cst_52 = arith.constant dense<0.000000e+00> : vector<256x128xf32>
    %50 = tpu.matmul %47, %49, %cst_52 {dimension_numbers = #tpu.dot_dimension_numbers<[1], [0], [0], [1], [0, 0, 1, 1], [], []>} : vector<256x128xf32>, vector<128x128xf32>, vector<256x128xf32> -> vector<256x128xf32>
    %51 = arith.addf %44, %50 : vector<256x128xf32>
    %c0_53 = arith.constant 0 : index
    %c2_54 = arith.constant 2 : index
    %c1_55 = arith.constant 1 : index
    %c0_56 = arith.constant 0 : index
    %52 = vector.load %arg1[%c0_53, %c2_54, %c1_55, %c0_56] : memref<1x18x18x128xf32, #tpu.memory_space<vmem>>, vector<1x16x16x128xf32>
    %53 = vector.shape_cast %52 : vector<1x16x16x128xf32> to vector<16x16x128xf32>
    %54 = vector.shape_cast %53 : vector<16x16x128xf32> to vector<256x128xf32>
    %c7 = arith.constant 7 : index
    %c0_57 = arith.constant 0 : index
    %c0_58 = arith.constant 0 : index
    %55 = vector.load %arg2[%c7, %c0_57, %c0_58] : memref<9x128x128xf32, #tpu.memory_space<vmem>>, vector<1x128x128xf32>
    %56 = vector.shape_cast %55 : vector<1x128x128xf32> to vector<128x128xf32>
    %cst_59 = arith.constant dense<0.000000e+00> : vector<256x128xf32>
    %57 = tpu.matmul %54, %56, %cst_59 {dimension_numbers = #tpu.dot_dimension_numbers<[1], [0], [0], [1], [0, 0, 1, 1], [], []>} : vector<256x128xf32>, vector<128x128xf32>, vector<256x128xf32> -> vector<256x128xf32>
    %58 = arith.addf %51, %57 : vector<256x128xf32>
    %c0_60 = arith.constant 0 : index
    %c2_61 = arith.constant 2 : index
    %c2_62 = arith.constant 2 : index
    %c0_63 = arith.constant 0 : index
    %59 = vector.load %arg1[%c0_60, %c2_61, %c2_62, %c0_63] : memref<1x18x18x128xf32, #tpu.memory_space<vmem>>, vector<1x16x16x128xf32>
    %60 = vector.shape_cast %59 : vector<1x16x16x128xf32> to vector<16x16x128xf32>
    %61 = vector.shape_cast %60 : vector<16x16x128xf32> to vector<256x128xf32>
    %c8 = arith.constant 8 : index
    %c0_64 = arith.constant 0 : index
    %c0_65 = arith.constant 0 : index
    %62 = vector.load %arg2[%c8, %c0_64, %c0_65] : memref<9x128x128xf32, #tpu.memory_space<vmem>>, vector<1x128x128xf32>
    %63 = vector.shape_cast %62 : vector<1x128x128xf32> to vector<128x128xf32>
    %cst_66 = arith.constant dense<0.000000e+00> : vector<256x128xf32>
    %64 = tpu.matmul %61, %63, %cst_66 {dimension_numbers = #tpu.dot_dimension_numbers<[1], [0], [0], [1], [0, 0, 1, 1], [], []>} : vector<256x128xf32>, vector<128x128xf32>, vector<256x128xf32> -> vector<256x128xf32>
    %65 = arith.addf %58, %64 : vector<256x128xf32>
    %c0_67 = arith.constant 0 : index
    %c0_68 = arith.constant 0 : index
    %66 = vector.load %arg3[%c0_67, %c0_68] : memref<1x128xf32, #tpu.memory_space<vmem>>, vector<1x128xf32>
    %67 = vector.broadcast %66 : vector<1x128xf32> to vector<256x128xf32>
    %68 = arith.addf %65, %67 : vector<256x128xf32>
    %cst_69 = arith.constant 0.000000e+00 : f32
    %69 = vector.broadcast %cst_69 : f32 to vector<256x128xf32>
    %70 = arith.maximumf %68, %69 : vector<256x128xf32>
    %71 = vector.shape_cast %70 : vector<256x128xf32> to vector<16x16x128xf32>
    %c1_70 = arith.constant 1 : index
    %c1_71 = arith.constant 1 : index
    %c0_72 = arith.constant 0 : index
    %72 = vector.load %arg7[%c1_70, %c1_71, %c0_72] : memref<18x18x128xf32, #tpu.memory_space<vmem>>, vector<16x16x128xf32>
    tpu.vector_store %arg7[%c1_70, %c1_71, %c0_72], %71 {strides = array<i32>} : memref<18x18x128xf32, #tpu.memory_space<vmem>>, vector<16x16x128xf32>,
    %cst_73 = arith.constant 0.000000e+00 : f32
    %73 = vector.broadcast %cst_73 : f32 to vector<256x128xf32>
    %c0_74 = arith.constant 0 : index
    %c0_75 = arith.constant 0 : index
    %c0_76 = arith.constant 0 : index
    %74 = vector.load %arg7[%c0_74, %c0_75, %c0_76] : memref<18x18x128xf32, #tpu.memory_space<vmem>>, vector<16x16x128xf32>
    %75 = vector.shape_cast %74 : vector<16x16x128xf32> to vector<256x128xf32>
    %c0_77 = arith.constant 0 : index
    %c0_78 = arith.constant 0 : index
    %c0_79 = arith.constant 0 : index
    %76 = vector.load %arg4[%c0_77, %c0_78, %c0_79] : memref<9x128x128xf32, #tpu.memory_space<vmem>>, vector<1x128x128xf32>
    %77 = vector.shape_cast %76 : vector<1x128x128xf32> to vector<128x128xf32>
    %cst_80 = arith.constant dense<0.000000e+00> : vector<256x128xf32>
    %78 = tpu.matmul %75, %77, %cst_80 {dimension_numbers = #tpu.dot_dimension_numbers<[1], [0], [0], [1], [0, 0, 1, 1], [], []>} : vector<256x128xf32>, vector<128x128xf32>, vector<256x128xf32> -> vector<256x128xf32>
    %79 = arith.addf %73, %78 : vector<256x128xf32>
    %c0_81 = arith.constant 0 : index
    %c1_82 = arith.constant 1 : index
    %c0_83 = arith.constant 0 : index
    %80 = vector.load %arg7[%c0_81, %c1_82, %c0_83] : memref<18x18x128xf32, #tpu.memory_space<vmem>>, vector<16x16x128xf32>
    %81 = vector.shape_cast %80 : vector<16x16x128xf32> to vector<256x128xf32>
    %c1_84 = arith.constant 1 : index
    %c0_85 = arith.constant 0 : index
    %c0_86 = arith.constant 0 : index
    %82 = vector.load %arg4[%c1_84, %c0_85, %c0_86] : memref<9x128x128xf32, #tpu.memory_space<vmem>>, vector<1x128x128xf32>
    %83 = vector.shape_cast %82 : vector<1x128x128xf32> to vector<128x128xf32>
    %cst_87 = arith.constant dense<0.000000e+00> : vector<256x128xf32>
    %84 = tpu.matmul %81, %83, %cst_87 {dimension_numbers = #tpu.dot_dimension_numbers<[1], [0], [0], [1], [0, 0, 1, 1], [], []>} : vector<256x128xf32>, vector<128x128xf32>, vector<256x128xf32> -> vector<256x128xf32>
    %85 = arith.addf %79, %84 : vector<256x128xf32>
    %c0_88 = arith.constant 0 : index
    %c2_89 = arith.constant 2 : index
    %c0_90 = arith.constant 0 : index
    %86 = vector.load %arg7[%c0_88, %c2_89, %c0_90] : memref<18x18x128xf32, #tpu.memory_space<vmem>>, vector<16x16x128xf32>
    %87 = vector.shape_cast %86 : vector<16x16x128xf32> to vector<256x128xf32>
    %c2_91 = arith.constant 2 : index
    %c0_92 = arith.constant 0 : index
    %c0_93 = arith.constant 0 : index
    %88 = vector.load %arg4[%c2_91, %c0_92, %c0_93] : memref<9x128x128xf32, #tpu.memory_space<vmem>>, vector<1x128x128xf32>
    %89 = vector.shape_cast %88 : vector<1x128x128xf32> to vector<128x128xf32>
    %cst_94 = arith.constant dense<0.000000e+00> : vector<256x128xf32>
    %90 = tpu.matmul %87, %89, %cst_94 {dimension_numbers = #tpu.dot_dimension_numbers<[1], [0], [0], [1], [0, 0, 1, 1], [], []>} : vector<256x128xf32>, vector<128x128xf32>, vector<256x128xf32> -> vector<256x128xf32>
    %91 = arith.addf %85, %90 : vector<256x128xf32>
    %c1_95 = arith.constant 1 : index
    %c0_96 = arith.constant 0 : index
    %c0_97 = arith.constant 0 : index
    %92 = vector.load %arg7[%c1_95, %c0_96, %c0_97] : memref<18x18x128xf32, #tpu.memory_space<vmem>>, vector<16x16x128xf32>
    %93 = vector.shape_cast %92 : vector<16x16x128xf32> to vector<256x128xf32>
    %c3_98 = arith.constant 3 : index
    %c0_99 = arith.constant 0 : index
    %c0_100 = arith.constant 0 : index
    %94 = vector.load %arg4[%c3_98, %c0_99, %c0_100] : memref<9x128x128xf32, #tpu.memory_space<vmem>>, vector<1x128x128xf32>
    %95 = vector.shape_cast %94 : vector<1x128x128xf32> to vector<128x128xf32>
    %cst_101 = arith.constant dense<0.000000e+00> : vector<256x128xf32>
    %96 = tpu.matmul %93, %95, %cst_101 {dimension_numbers = #tpu.dot_dimension_numbers<[1], [0], [0], [1], [0, 0, 1, 1], [], []>} : vector<256x128xf32>, vector<128x128xf32>, vector<256x128xf32> -> vector<256x128xf32>
    %97 = arith.addf %91, %96 : vector<256x128xf32>
    %c1_102 = arith.constant 1 : index
    %c1_103 = arith.constant 1 : index
    %c0_104 = arith.constant 0 : index
    %98 = vector.load %arg7[%c1_102, %c1_103, %c0_104] : memref<18x18x128xf32, #tpu.memory_space<vmem>>, vector<16x16x128xf32>
    %99 = vector.shape_cast %98 : vector<16x16x128xf32> to vector<256x128xf32>
    %c4_105 = arith.constant 4 : index
    %c0_106 = arith.constant 0 : index
    %c0_107 = arith.constant 0 : index
    %100 = vector.load %arg4[%c4_105, %c0_106, %c0_107] : memref<9x128x128xf32, #tpu.memory_space<vmem>>, vector<1x128x128xf32>
    %101 = vector.shape_cast %100 : vector<1x128x128xf32> to vector<128x128xf32>
    %cst_108 = arith.constant dense<0.000000e+00> : vector<256x128xf32>
    %102 = tpu.matmul %99, %101, %cst_108 {dimension_numbers = #tpu.dot_dimension_numbers<[1], [0], [0], [1], [0, 0, 1, 1], [], []>} : vector<256x128xf32>, vector<128x128xf32>, vector<256x128xf32> -> vector<256x128xf32>
    %103 = arith.addf %97, %102 : vector<256x128xf32>
    %c1_109 = arith.constant 1 : index
    %c2_110 = arith.constant 2 : index
    %c0_111 = arith.constant 0 : index
    %104 = vector.load %arg7[%c1_109, %c2_110, %c0_111] : memref<18x18x128xf32, #tpu.memory_space<vmem>>, vector<16x16x128xf32>
    %105 = vector.shape_cast %104 : vector<16x16x128xf32> to vector<256x128xf32>
    %c5_112 = arith.constant 5 : index
    %c0_113 = arith.constant 0 : index
    %c0_114 = arith.constant 0 : index
    %106 = vector.load %arg4[%c5_112, %c0_113, %c0_114] : memref<9x128x128xf32, #tpu.memory_space<vmem>>, vector<1x128x128xf32>
    %107 = vector.shape_cast %106 : vector<1x128x128xf32> to vector<128x128xf32>
    %cst_115 = arith.constant dense<0.000000e+00> : vector<256x128xf32>
    %108 = tpu.matmul %105, %107, %cst_115 {dimension_numbers = #tpu.dot_dimension_numbers<[1], [0], [0], [1], [0, 0, 1, 1], [], []>} : vector<256x128xf32>, vector<128x128xf32>, vector<256x128xf32> -> vector<256x128xf32>
    %109 = arith.addf %103, %108 : vector<256x128xf32>
    %c2_116 = arith.constant 2 : index
    %c0_117 = arith.constant 0 : index
    %c0_118 = arith.constant 0 : index
    %110 = vector.load %arg7[%c2_116, %c0_117, %c0_118] : memref<18x18x128xf32, #tpu.memory_space<vmem>>, vector<16x16x128xf32>
    %111 = vector.shape_cast %110 : vector<16x16x128xf32> to vector<256x128xf32>
    %c6_119 = arith.constant 6 : index
    %c0_120 = arith.constant 0 : index
    %c0_121 = arith.constant 0 : index
    %112 = vector.load %arg4[%c6_119, %c0_120, %c0_121] : memref<9x128x128xf32, #tpu.memory_space<vmem>>, vector<1x128x128xf32>
    %113 = vector.shape_cast %112 : vector<1x128x128xf32> to vector<128x128xf32>
    %cst_122 = arith.constant dense<0.000000e+00> : vector<256x128xf32>
    %114 = tpu.matmul %111, %113, %cst_122 {dimension_numbers = #tpu.dot_dimension_numbers<[1], [0], [0], [1], [0, 0, 1, 1], [], []>} : vector<256x128xf32>, vector<128x128xf32>, vector<256x128xf32> -> vector<256x128xf32>
    %115 = arith.addf %109, %114 : vector<256x128xf32>
    %c2_123 = arith.constant 2 : index
    %c1_124 = arith.constant 1 : index
    %c0_125 = arith.constant 0 : index
    %116 = vector.load %arg7[%c2_123, %c1_124, %c0_125] : memref<18x18x128xf32, #tpu.memory_space<vmem>>, vector<16x16x128xf32>
    %117 = vector.shape_cast %116 : vector<16x16x128xf32> to vector<256x128xf32>
    %c7_126 = arith.constant 7 : index
    %c0_127 = arith.constant 0 : index
    %c0_128 = arith.constant 0 : index
    %118 = vector.load %arg4[%c7_126, %c0_127, %c0_128] : memref<9x128x128xf32, #tpu.memory_space<vmem>>, vector<1x128x128xf32>
    %119 = vector.shape_cast %118 : vector<1x128x128xf32> to vector<128x128xf32>
    %cst_129 = arith.constant dense<0.000000e+00> : vector<256x128xf32>
    %120 = tpu.matmul %117, %119, %cst_129 {dimension_numbers = #tpu.dot_dimension_numbers<[1], [0], [0], [1], [0, 0, 1, 1], [], []>} : vector<256x128xf32>, vector<128x128xf32>, vector<256x128xf32> -> vector<256x128xf32>
    %121 = arith.addf %115, %120 : vector<256x128xf32>
    %c2_130 = arith.constant 2 : index
    %c2_131 = arith.constant 2 : index
    %c0_132 = arith.constant 0 : index
    %122 = vector.load %arg7[%c2_130, %c2_131, %c0_132] : memref<18x18x128xf32, #tpu.memory_space<vmem>>, vector<16x16x128xf32>
    %123 = vector.shape_cast %122 : vector<16x16x128xf32> to vector<256x128xf32>
    %c8_133 = arith.constant 8 : index
    %c0_134 = arith.constant 0 : index
    %c0_135 = arith.constant 0 : index
    %124 = vector.load %arg4[%c8_133, %c0_134, %c0_135] : memref<9x128x128xf32, #tpu.memory_space<vmem>>, vector<1x128x128xf32>
    %125 = vector.shape_cast %124 : vector<1x128x128xf32> to vector<128x128xf32>
    %cst_136 = arith.constant dense<0.000000e+00> : vector<256x128xf32>
    %126 = tpu.matmul %123, %125, %cst_136 {dimension_numbers = #tpu.dot_dimension_numbers<[1], [0], [0], [1], [0, 0, 1, 1], [], []>} : vector<256x128xf32>, vector<128x128xf32>, vector<256x128xf32> -> vector<256x128xf32>
    %127 = arith.addf %121, %126 : vector<256x128xf32>
    %c0_137 = arith.constant 0 : index
    %c0_138 = arith.constant 0 : index
    %128 = vector.load %arg5[%c0_137, %c0_138] : memref<1x128xf32, #tpu.memory_space<vmem>>, vector<1x128xf32>
    %129 = vector.broadcast %128 : vector<1x128xf32> to vector<256x128xf32>
    %130 = arith.addf %127, %129 : vector<256x128xf32>
    %cst_139 = arith.constant 0.000000e+00 : f32
    %131 = vector.broadcast %cst_139 : f32 to vector<256x128xf32>
    %132 = arith.maximumf %130, %131 : vector<256x128xf32>
    %133 = vector.shape_cast %132 : vector<256x128xf32> to vector<1x16x16x128xf32>
    %c0_140 = arith.constant 0 : index
    %c0_141 = arith.constant 0 : index
    %c0_142 = arith.constant 0 : index
    %c0_143 = arith.constant 0 : index
    %134 = vector.load %arg6[%c0_140, %c0_141, %c0_142, %c0_143] : memref<1x16x16x128xf32, #tpu.memory_space<vmem>>, vector<1x16x16x128xf32>
    tpu.vector_store %arg6[%c0_140, %c0_141, %c0_142, %c0_143], %133 {strides = array<i32>} : memref<1x16x16x128xf32, #tpu.memory_space<vmem>>, vector<1x16x16x128xf32>,
    return
  }
  func.func @transform_0(%arg0: i32) -> (i32, i32, i32, i32) {
    %c0_i32 = arith.constant 0 : i32
    %c0_i32_0 = arith.constant 0 : i32
    %c0_i32_1 = arith.constant 0 : i32
    %c0_i32_2 = arith.constant 0 : i32
    return %arg0, %c0_i32, %c0_i32_0, %c0_i32_1 : i32, i32, i32, i32
  }
  func.func @transform_1(%arg0: i32) -> (i32, i32, i32) {
    %c0_i32 = arith.constant 0 : i32
    %c0_i32_0 = arith.constant 0 : i32
    %c0_i32_1 = arith.constant 0 : i32
    %c0_i32_2 = arith.constant 0 : i32
    return %c0_i32, %c0_i32_0, %c0_i32_1 : i32, i32, i32
  }
  func.func @transform_2(%arg0: i32) -> (i32, i32) {
    %c0_i32 = arith.constant 0 : i32
    %c0_i32_0 = arith.constant 0 : i32
    %c0_i32_1 = arith.constant 0 : i32
    return %c0_i32, %c0_i32_0 : i32, i32
  }
  func.func @transform_3(%arg0: i32) -> (i32, i32, i32) {
    %c0_i32 = arith.constant 0 : i32
    %c0_i32_0 = arith.constant 0 : i32
    %c0_i32_1 = arith.constant 0 : i32
    %c0_i32_2 = arith.constant 0 : i32
    return %c0_i32, %c0_i32_0, %c0_i32_1 : i32, i32, i32
  }
  func.func @transform_4(%arg0: i32) -> (i32, i32) {
    %c0_i32 = arith.constant 0 : i32
    %c0_i32_0 = arith.constant 0 : i32
    %c0_i32_1 = arith.constant 0 : i32
    return %c0_i32, %c0_i32_0 : i32, i32
  }
  func.func @transform_5(%arg0: i32) -> (i32, i32, i32, i32) {
    %c0_i32 = arith.constant 0 : i32
    %c0_i32_0 = arith.constant 0 : i32
    %c0_i32_1 = arith.constant 0 : i32
    %c0_i32_2 = arith.constant 0 : i32
    return %arg0, %c0_i32, %c0_i32_0, %c0_i32_1 : i32, i32, i32, i32
  }
}

</mosaic_0001>

<bundles_post_ra>
// kernel: isensee_layer_forward.1
= control target key start
LH: loop header
LB: loop body
LE: loop exit
PB: predicated region body
PF: predicated region fallthrough
CT: control target
= control target key end

     0   :  { %s9825_s18 = smov 0   ;;  %s11905_s0 = inlined_call_operand.vmem [shape: f32[2,18,18,128], index: 0, kind: input, shape index: {}]   ;;  %s11906_s1 = inlined_call_operand.vmem [shape: f32[9,128,128], index: 1, kind: input, shape index: {}]   ;;  %s11907_s2 = inlined_call_operand.vmem [shape: f32[1,128], index: 2, kind: input, shape index: {}]   ;;  %s11908_s3 = inlined_call_operand.vmem [shape: f32[9,128,128], index: 3, kind: input, shape index: {}]   ;;  %s11909_s4 = inlined_call_operand.vmem [shape: f32[1,128], index: 4, kind: input, shape index: {}]   ;;  %s11910_s5 = inlined_call_operand.vmem [shape: f32[2,16,16,128], index: 5, kind: output, shape index: {}]  }
   0x1 LB: > { %s5922_s19 = sadd.s32 4294967295, %s9792_s18   ;;  %p5926_p0 = scmp.ge.s32.totalorder %s9792_s18, 1  ;;  %s9792_s18 = sphi %s9825_s18, %s15_s18  }
   0x2   : > { %p187_p1 = scmp.lt.s32.totalorder %s9792_s18, 3 }
   0x4   : > { %p188_p2 = pnand %p5926_p0, %p187_p1 }
   0x6   : > { %191 = sbr.rel (%p188_p2) target bundleno = 1564 (0x61c), region = 40 }
   0xd   : > { %v5930_v0 = vld [vmem:[%s11906_s1 + $0x80] sm:$0xff]  ;;  %v5931_v1 = vld [vmem:[%s11906_s1 + $0x88] sm:$0xff]  ;;  %v5932_v2 = vld [vmem:[%s11906_s1 + $0x90] sm:$0xff]  ;;  %p215_p3 = scmp.lt.s32.totalorder %s5922_s19, 1 }
   0xe   : > { %v8687_v3 = vpack.c.bf16 %v5931_v1, %v5930_v0  ;;  %v5933_v4 = vld [vmem:[%s11906_s1 + $0x98] sm:$0xff]  ;;  %v5934_v6 = vld [vmem:[%s11906_s1 + $0xa0] sm:$0xff]  ;;  %v5935_v7 = vld [vmem:[%s11906_s1 + $0xa8] sm:$0xff] }
   0xf   : > { %v8691_v5 = vpack.c.bf16 %v5933_v4, %v5932_v2  ;;  %s12114_s19 = smov (!%p215_p3, %s5922_s19), 1  ;;  %v8695_v8 = vpack.c.bf16 %v5935_v7, %v5934_v6  ;;  %v5936_v9 = vld [vmem:[%s11906_s1 + $0xb0] sm:$0xff]  ;;  %v5937_v10 = vld [vmem:[%s11906_s1 + $0xb8] sm:$0xff]  ;;  %v5938_v13 = vld [vmem:[%s11906_s1 + $0xc0] sm:$0xff] }
  0x10   : > { %8688 = vmatprep.subr.bf16.mxu0 %v8687_v3  ;;  %s9775_s7 = smul.u32 432, %s12114_s19  ;;  %v8699_v12 = vpack.c.bf16 %v5937_v10, %v5936_v9  ;;  %v5939_v14 = vld [vmem:[%s11906_s1 + $0xc8] sm:$0xff]  ;;  %v5940_v16 = vld [vmem:[%s11906_s1 + $0xd0] sm:$0xff]  ;;  %v5941_v17 = vld [vmem:[%s11906_s1 + $0xd8] sm:$0xff]  ;;  %s6382_s17 = sshll.u32 %s12114_s19, 8 }
  0x11   : > { %8690 = vmatpush3.bf16.msra.mxu0 %v8687_v3  ;;  %v8703_v15 = vpack.c.bf16 %v5939_v14, %v5938_v13  ;;  %v8707_v18 = vpack.c.bf16 %v5941_v17, %v5940_v16  ;;  %v5942_v19 = vld [vmem:[%s11906_s1 + $0xe0] sm:$0xff]  ;;  %v5943_v20 = vld [vmem:[%s11906_s1 + $0xe8] sm:$0xff]  ;;  %v5944_v22 = vld [vmem:[%s11906_s1 + $0xf0] sm:$0xff]  ;;  %s11837_s22 = scalar_lea.vmem %s11910_s5, %s6382_s17 }
  0x12   : > { %8692 = vmatprep.subr.bf16.mxu0 %v8691_v5  ;;  %s9863_s14 = scalar_lea.vmem %s11905_s0, %s9775_s7  ;;  %v8711_v21 = vpack.c.bf16 %v5943_v20, %v5942_v19  ;;  %v5945_v23 = vld [vmem:[%s11906_s1 + $0xf8] sm:$0xff]  ;;  %v311_v25 = vld [vmem:[%s11906_s1] sm:$0xff]  ;;  %v312_v26 = vld [vmem:[%s11906_s1 + $0x8] sm:$0xff] }
  0x13   : > { %v327_v11 = vld [vmem:[%s9863_s14 + $0x1] sm:$0xff]  ;;  %v8715_v24 = vpack.c.bf16 %v5945_v23, %v5944_v22  ;;  %v8719_v27 = vpack.c.bf16 %v312_v26, %v311_v25  ;;  %v313_v28 = vld [vmem:[%s11906_s1 + $0x10] sm:$0xff]  ;;  %v314_v29 = vld [vmem:[%s11906_s1 + $0x18] sm:$0xff] }
  0x14   : > { %7279 = vmatprep.mubr.f32.mxu0 %v327_v11  ;;  %v328_v30 = vld [vmem:[%s9863_s14 + $0x9] sm:$0xff]  ;;  %v9904_v31 = vld [vmem:[%s9863_s14 + $0x19] sm:$0xff]  ;;  %v8723_v32 = vpack.c.bf16 %v314_v29, %v313_v28  ;;  %v9914_v35 = vld [vmem:[%s9863_s14 + $0x21] sm:$0xff] }
  0x15   : > { %8694 = vmatpush3.bf16.msra.mxu0 %v8691_v5  ;;  %v315_v33 = vld [vmem:[%s11906_s1 + $0x20] sm:$0xff]  ;;  %v316_v34 = vld [vmem:[%s11906_s1 + $0x28] sm:$0xff]  ;;  %v9917_v36 = vld [vmem:[%s9863_s14 + $0x31] sm:$0xff] }
  0x16   : > { %8696 = vmatprep.subr.bf16.mxu0 %v8695_v8  ;;  %v8727_v37 = vpack.c.bf16 %v316_v34, %v315_v33  ;;  %v317_v38 = vld [vmem:[%s11906_s1 + $0x30] sm:$0xff]  ;;  %v318_v39 = vld [vmem:[%s11906_s1 + $0x38] sm:$0xff]  ;;  %v319_v43 = vld [vmem:[%s11906_s1 + $0x40] sm:$0xff] }
  0x17   : > { %v9928_v40 = vld [vmem:[%s9863_s14 + $0x39] sm:$0xff]  ;;  %v9931_v41 = vld [vmem:[%s9863_s14 + $0x49] sm:$0xff]  ;;  %v8731_v42 = vpack.c.bf16 %v318_v39, %v317_v38  ;;  %v9942_v45 = vld [vmem:[%s9863_s14 + $0x51] sm:$0xff] }
  0x18   : > { %v320_v44 = vld [vmem:[%s11906_s1 + $0x48] sm:$0xff]  ;;  %v321_v48 = vld [vmem:[%s11906_s1 + $0x50] sm:$0xff]  ;;  %v322_v49 = vld [vmem:[%s11906_s1 + $0x58] sm:$0xff] }
  0x19   : > { %8698 = vmatpush3.bf16.msra.mxu0 %v8695_v8  ;;  %v9945_v46 = vld [vmem:[%s9863_s14 + $0x61] sm:$0xff]  ;;  %v8735_v47 = vpack.c.bf16 %v320_v44, %v319_v43  ;;  %v9956_v50 = vld [vmem:[%s9863_s14 + $0x69] sm:$0xff]  ;;  %v9959_v51 = vld [vmem:[%s9863_s14 + $0x79] sm:$0xff]  ;;  %v8739_v52 = vpack.c.bf16 %v322_v49, %v321_v48 }
  0x1a   : > { %8700 = vmatprep.subr.bf16.mxu0 %v8699_v12  ;;  %v323_v53 = vld [vmem:[%s11906_s1 + $0x60] sm:$0xff]  ;;  %v324_v54 = vld [vmem:[%s11906_s1 + $0x68] sm:$0xff]  ;;  %v9973_v56 = vld [vmem:[%s9863_s14 + $0x91] sm:$0xff] }
  0x1b   : > { %v9970_v55 = vld [vmem:[%s9863_s14 + $0x81] sm:$0xff]  ;;  %v8743_v57 = vpack.c.bf16 %v324_v54, %v323_v53  ;;  %v325_v58 = vld [vmem:[%s11906_s1 + $0x70] sm:$0xff]  ;;  %v326_v59 = vld [vmem:[%s11906_s1 + $0x78] sm:$0xff] }
  0x1c   : > { %v9984_v60 = vld [vmem:[%s9863_s14 + $0x99] sm:$0xff]  ;;  %v9987_v61 = vld [vmem:[%s9863_s14 + $0xa9] sm:$0xff]  ;;  %v8747_v62 = vpack.c.bf16 %v326_v59, %v325_v58  ;;  %v9998_v1 = vld [vmem:[%s9863_s14 + $0xb1] sm:$0xff] }
  0x1d   : > { %8702 = vmatpush3.bf16.msra.mxu0 %v8699_v12  ;;  %v5946_v63 = vld [vmem:[%s11906_s1 + $0x100] sm:$0xff]  ;;  %v5947_v0 = vld [vmem:[%s11906_s1 + $0x108] sm:$0xff]  ;;  %v10017_v7 = vld [vmem:[%s9863_s14 + $0xf1] sm:$0xff] }
  0x1e   : > { %8704 = vmatprep.subr.bf16.mxu0 %v8703_v15  ;;  %v10001_v2 = vld [vmem:[%s9863_s14 + $0xc1] sm:$0xff]  ;;  %v8751_v3 = vpack.c.bf16 %v5947_v0, %v5946_v63  ;;  %v10006_v4 = vld [vmem:[%s9863_s14 + $0xc9] sm:$0xff]  ;;  %v10009_v5 = vld [vmem:[%s9863_s14 + $0xd9] sm:$0xff] }
  0x1f   : > { %v10014_v6 = vld [vmem:[%s9863_s14 + $0xe1] sm:$0xff]  ;;  %v10022_v8 = vld [vmem:[%s9863_s14 + $0xf9] sm:$0xff]  ;;  %v10025_v9 = vld [vmem:[%s9863_s14 + $0x109] sm:$0xff] }
  0x20   : > { %v10030_v10 = vld [vmem:[%s9863_s14 + $0x111] sm:$0xff]  ;;  %v10033_v11 = vld [vmem:[%s9863_s14 + $0x121] sm:$0xff]  ;;  %v10038_v12 = vld [vmem:[%s9863_s14 + $0x129] sm:$0xff] }
  0x21   : > { %8706 = vmatpush3.bf16.msra.mxu0 %v8703_v15  ;;  %11979 = vst [vmem:[#allocation3_spill] sm:$0xff] %v10038_v12  ;;  %v10041_v13 = vld [vmem:[%s9863_s14 + $0x139] sm:$0xff]  ;;  %v10046_v14 = vld [vmem:[%s9863_s14 + $0x141] sm:$0xff]  ;;  %v10049_v15 = vld [vmem:[%s9863_s14 + $0x151] sm:$0xff] }
  0x22   : > { %8708 = vmatprep.subr.bf16.mxu0 %v8707_v18  ;;  %11980 = vst [vmem:[#allocation4_spill] sm:$0xff] %v10041_v13  ;;  %11981 = vst [vmem:[#allocation5_spill] sm:$0xff] %v10046_v14  ;;  %v10054_v16 = vld [vmem:[%s9863_s14 + $0x159] sm:$0xff]  ;;  %v10057_v17 = vld [vmem:[%s9863_s14 + $0x169] sm:$0xff] }
  0x23   : > { %11982 = vst [vmem:[#allocation6_spill] sm:$0xff] %v10049_v15  ;;  %11983 = vst [vmem:[#allocation7_spill] sm:$0xff] %v10054_v16  ;;  %v279_v19 = vld [vmem:[%s9863_s14] sm:$0xff]  ;;  %v5948_v20 = vld [vmem:[%s11906_s1 + $0x110] sm:$0xff] }
  0x24   : > { %11984 = vst [vmem:[#allocation8_spill] sm:$0xff] %v10057_v17  ;;  %v280_v22 = vld [vmem:[%s9863_s14 + $0x8] sm:$0xff]  ;;  %v10074_v23 = vld [vmem:[%s9863_s14 + $0x18] sm:$0xff]  ;;  %v5950_v25 = vld [vmem:[%s11906_s1 + $0x120] sm:$0xff] }
  0x25   : > { %8710 = vmatpush3.bf16.msra.mxu0 %v8707_v18  ;;  %v10062_v18 = vld [vmem:[%s9863_s14 + $0x171] sm:$0xff]  ;;  %v5951_v26 = vld [vmem:[%s11906_s1 + $0x128] sm:$0xff]  ;;  %v5954_v38 = vld [vmem:[%s11906_s1 + $0x140] sm:$0xff] }
  0x26   : > { %8712 = vmatprep.subr.bf16.mxu0 %v8711_v21  ;;  %11985 = vst [vmem:[#allocation9_spill] sm:$0xff] %v10062_v18  ;;  %v10087_v28 = vld [vmem:[%s9863_s14 + $0x30] sm:$0xff]  ;;  %v8759_v29 = vpack.c.bf16 %v5951_v26, %v5950_v25  ;;  %v10098_v33 = vld [vmem:[%s9863_s14 + $0x38] sm:$0xff]  ;;  %v10101_v34 = vld [vmem:[%s9863_s14 + $0x48] sm:$0xff] }
  0x27   : > { %v5955_v39 = vld [vmem:[%s11906_s1 + $0x148] sm:$0xff]  ;;  %v10115_v43 = vld [vmem:[%s9863_s14 + $0x60] sm:$0xff]  ;;  %v5957_v48 = vld [vmem:[%s11906_s1 + $0x158] sm:$0xff] }
  0x28   : > { %v8767_v44 = vpack.c.bf16 %v5955_v39, %v5954_v38  ;;  %v10126_v49 = vld [vmem:[%s9863_s14 + $0x68] sm:$0xff]  ;;  %v5958_v54 = vld [vmem:[%s11906_s1 + $0x160] sm:$0xff]  ;;  %v10143_v59 = vld [vmem:[%s9863_s14 + $0x90] sm:$0xff] }
  0x29   : > { %8714 = vmatpush3.bf16.msra.mxu0 %v8711_v21  ;;  %v5949_v21 = vld [vmem:[%s11906_s1 + $0x118] sm:$0xff]  ;;  %v10140_v58 = vld [vmem:[%s9863_s14 + $0x80] sm:$0xff]  ;;  %v5960_v63 = vld [vmem:[%s11906_s1 + $0x170] sm:$0xff] }
  0x2a   : > { %8716 = vmatprep.subr.bf16.mxu0 %v8715_v24  ;;  %v5961_v0 = vld [vmem:[%s11906_s1 + $0x178] sm:$0xff]  ;;  %v10171_v25 = vld [vmem:[%s9863_s14 + $0xc0] sm:$0xff]  ;;  %v10195_v39 = vld [vmem:[%s9863_s14 + $0x108] sm:$0xff] }
  0x2b   : > { %v10192_v38 = vld [vmem:[%s9863_s14 + $0xf8] sm:$0xff] }
  0x2d   : > { %8718 = vmatpush3.bf16.msra.mxu0 %v8715_v24  ;;  %v8755_v24 = vpack.c.bf16 %v5949_v21, %v5948_v20  ;;  %v8779_v20 = vpack.c.bf16 %v5961_v0, %v5960_v63  ;;  %v5994_v21 = vld [vmem:[%s11906_s1 + $0x180] sm:$0xff]  ;;  %v10227_v63 = vld [vmem:[%s9863_s14 + $0x168] sm:$0xff]  ;;  %v10232_v0 = vld [vmem:[%s9863_s14 + $0x170] sm:$0xff] }
  0x2e   : > { %8720 = vmatprep.subr.bf16.mxu0 %v8719_v27 }
  0x30   : > { %7280 = vmatmul.mubr.f32.vlgmr.msra.gmra.mrb[0].mxu0 %v328_v30  ;;  %v5952_v30 = vld [vmem:[%s11906_s1 + $0x130] sm:$0xff] }
  0x31   : > { %8722 = vmatpush3.bf16.msra.mxu0 %v8719_v27  ;;  %7282 = vmatprep.mubr.f32.mxu0 %v9904_v31  ;;  %v10084_v27 = vld [vmem:[%s9863_s14 + $0x20] sm:$0xff] }
  0x32   : > { %8724 = vmatprep.subr.bf16.mxu0 %v8723_v32 }
  0x34   : > { %7283 = vmatmul.mubr.f32.gmra.mrb[2].mxu0 %v9914_v35 }
  0x35   : > { %7285 = vmatprep.mubr.f32.mxu0 %v9917_v36  ;;  %8726 = vmatpush3.bf16.msra.mxu0 %v8723_v32  ;;  %v5953_v32 = vld [vmem:[%s11906_s1 + $0x138] sm:$0xff] }
  0x36   : > { %8728 = vmatprep.subr.bf16.mxu0 %v8727_v37 }
  0x38   : > { %7286 = vmatmul.mubr.f32.gmra.mrb[4].mxu0 %v9928_v40 }
  0x39   : > { %7288 = vmatprep.mubr.f32.mxu0 %v9931_v41  ;;  %8730 = vmatpush3.bf16.msra.mxu0 %v8727_v37  ;;  %v8763_v37 = vpack.c.bf16 %v5953_v32, %v5952_v30  ;;  %v10179_v30 = vld [vmem:[%s9863_s14 + $0xd8] sm:$0xff]  ;;  %v10184_v32 = vld [vmem:[%s9863_s14 + $0xe0] sm:$0xff] }
  0x3a   : > { %8732 = vmatprep.subr.bf16.mxu0 %v8731_v42 }
  0x3c   : > { %7289 = vmatmul.mubr.f32.gmra.mrb[6].mxu0 %v9942_v45 }
  0x3d   : > { %7291 = vmatprep.mubr.f32.mxu0 %v9945_v46  ;;  %8734 = vmatpush3.bf16.msra.mxu0 %v8731_v42  ;;  %v10112_v42 = vld [vmem:[%s9863_s14 + $0x50] sm:$0xff] }
  0x3e   : > { %8736 = vmatprep.subr.bf16.mxu0 %v8735_v47 }
  0x40   : > { %7292 = vmatmul.mubr.f32.gmra.mrb[8].mxu0 %v9956_v50 }
  0x41   : > { %7294 = vmatprep.mubr.f32.mxu0 %v9959_v51  ;;  %8738 = vmatpush3.bf16.msra.mxu0 %v8735_v47  ;;  %v5956_v47 = vld [vmem:[%s11906_s1 + $0x150] sm:$0xff] }
  0x42   : > { %8740 = vmatprep.subr.bf16.mxu0 %v8739_v52  ;;  %v8771_v53 = vpack.c.bf16 %v5957_v48, %v5956_v47  ;;  %v10203_v47 = vld [vmem:[%s9863_s14 + $0x120] sm:$0xff]  ;;  %v10208_v48 = vld [vmem:[%s9863_s14 + $0x128] sm:$0xff] }
  0x44   : > { %7295 = vmatmul.mubr.f32.gmra.mrb[10].mxu0 %v9970_v55 }
  0x45   : > { %7297 = vmatprep.mubr.f32.mxu0 %v9973_v56  ;;  %8742 = vmatpush3.bf16.msra.mxu0 %v8739_v52  ;;  %v10129_v52 = vld [vmem:[%s9863_s14 + $0x78] sm:$0xff] }
  0x46   : > { %8744 = vmatprep.subr.bf16.mxu0 %v8743_v57 }
  0x48   : > { %7298 = vmatmul.mubr.f32.gmra.mrb[12].mxu0 %v9984_v60 }
  0x49   : > { %7300 = vmatprep.mubr.f32.mxu0 %v9987_v61  ;;  %8746 = vmatpush3.bf16.msra.mxu0 %v8743_v57  ;;  %v5959_v57 = vld [vmem:[%s11906_s1 + $0x168] sm:$0xff] }
  0x4a   : > { %8748 = vmatprep.subr.bf16.mxu0 %v8747_v62 }
  0x4c   : > { %7301 = vmatmul.mubr.f32.gmra.mrb[14].mxu0 %v9998_v1 }
  0x4d   : > { %7303 = vmatprep.mubr.f32.mxu0 %v10001_v2  ;;  %8750 = vmatpush3.bf16.msra.mxu0 %v8747_v62  ;;  %v8775_v62 = vpack.c.bf16 %v5959_v57, %v5958_v54  ;;  %v10216_v54 = vld [vmem:[%s9863_s14 + $0x140] sm:$0xff]  ;;  %v10219_v57 = vld [vmem:[%s9863_s14 + $0x150] sm:$0xff] }
  0x4e   : > { %8752 = vmatprep.subr.bf16.mxu0 %v8751_v3 }
  0x50   : > { %7304 = vmatmul.mubr.f32.gmra.mrb[16].mxu0 %v10006_v4 }
  0x51   : > { %7306 = vmatprep.mubr.f32.mxu0 %v10009_v5 }
  0x54   : > { %7307 = vmatmul.mubr.f32.gmra.mrb[18].mxu0 %v10014_v6 }
  0x55   : > { %7309 = vmatprep.mubr.f32.mxu0 %v10017_v7 }
  0x58   : > { %7310 = vmatmul.mubr.f32.gmra.mrb[20].mxu0 %v10022_v8 }
  0x59   : > { %7312 = vmatprep.mubr.f32.mxu0 %v10025_v9 }
  0x5c   : > { %7313 = vmatmul.mubr.f32.gmra.mrb[22].mxu0 %v10030_v10 }
  0x5d   : > { %7315 = vmatprep.mubr.f32.mxu0 %v10033_v11 }
  0x60   : > { %7316 = vmatmul.mubr.f32.gmra.mrb[24].mxu0 %v10038_v12  ;;  %v6001_v12 = vld [vmem:[%s11906_s1 + $0x1b8] sm:$0xff] }
  0x61   : > { %7318 = vmatprep.mubr.f32.mxu0 %v10041_v13  ;;  %v10254_v13 = vld [vmem:[%s9863_s14 + $0x22] sm:$0xff] }
  0x62   : > { %11987 = vst [vmem:[#allocation11_spill] sm:$0xff] %v10254_v13 }
  0x64   : > { %7319 = vmatmul.mubr.f32.gmra.mrb[26].mxu0 %v10046_v14  ;;  %v5999_v14 = vld [vmem:[%s11906_s1 + $0x1a8] sm:$0xff] }
  0x65   : > { %7321 = vmatprep.mubr.f32.mxu0 %v10049_v15  ;;  %v5998_v15 = vld [vmem:[%s11906_s1 + $0x1a0] sm:$0xff] }
  0x68   : > { %7322 = vmatmul.mubr.f32.gmra.mrb[28].mxu0 %v10054_v16 }
  0x69   : > { %7324 = vmatprep.mubr.f32.mxu0 %v10057_v17  ;;  %v10244_v17 = vld [vmem:[%s9863_s14 + $0x1a] sm:$0xff] }
  0x6a   : > { %11986 = vst [vmem:[#allocation10_spill] sm:$0xff] %v10244_v17 }
  0x6c   : > { %7325 = vmatmul.mubr.f32.gmra.mrb[30].mxu0 %v10062_v18  ;;  %v827_v18 = vld [vmem:[%s9863_s14 + $0xa] sm:$0xff] }
  0x6d   : > { %7359 = vmatprep.mubr.f32.mxu0 %v279_v19  ;;  %v10157_v19 = vld [vmem:[%s9863_s14 + $0xa8] sm:$0xff] }
  0x70   : > { %7360 = vmatmul.mubr.f32.vlgmr.msra.gmra.mrb[0].mxu0 %v280_v22  ;;  %v5995_v22 = vld [vmem:[%s11906_s1 + $0x188] sm:$0xff] }
  0x71   : > { %8754 = vmatpush3.bf16.msra.mxu0 %v8751_v3  ;;  %7362 = vmatprep.mubr.f32.mxu0 %v10074_v23  ;;  %v10154_v3 = vld [vmem:[%s9863_s14 + $0x98] sm:$0xff]  ;;  %v8783_v26 = vpack.c.bf16 %v5995_v22, %v5994_v21  ;;  %v5996_v21 = vld [vmem:[%s11906_s1 + $0x190] sm:$0xff] }
  0x72   : > { %8756 = vmatprep.subr.bf16.mxu0 %v8755_v24  ;;  %v5997_v22 = vld [vmem:[%s11906_s1 + $0x198] sm:$0xff] }
  0x73   : > { %v8787_v16 = vpack.c.bf16 %v5997_v22, %v5996_v21  ;;  %v8791_v21 = vpack.c.bf16 %v5999_v14, %v5998_v15  ;;  %v6000_v22 = vld [vmem:[%s11906_s1 + $0x1b0] sm:$0xff]  ;;  %v6002_v15 = vld [vmem:[%s11906_s1 + $0x1c0] sm:$0xff] }
  0x74   : > { %7363 = vmatmul.mubr.f32.gmra.mrb[2].mxu0 %v10084_v27  ;;  %v8795_v14 = vpack.c.bf16 %v6001_v12, %v6000_v22  ;;  %v6004_v22 = vld [vmem:[%s11906_s1 + $0x1d0] sm:$0xff] }
  0x75   : > { %7365 = vmatprep.mubr.f32.mxu0 %v10087_v28  ;;  %8758 = vmatpush3.bf16.msra.mxu0 %v8755_v24  ;;  %v10168_v24 = vld [vmem:[%s9863_s14 + $0xb0] sm:$0xff] }
  0x76   : > { %8760 = vmatprep.subr.bf16.mxu0 %v8759_v29 }
  0x78   : > { %7366 = vmatmul.mubr.f32.gmra.mrb[4].mxu0 %v10098_v33 }
  0x79   : > { %7368 = vmatprep.mubr.f32.mxu0 %v10101_v34  ;;  %8762 = vmatpush3.bf16.msra.mxu0 %v8759_v29  ;;  %v10176_v29 = vld [vmem:[%s9863_s14 + $0xc8] sm:$0xff] }
  0x7a   : > { %8764 = vmatprep.subr.bf16.mxu0 %v8763_v37 }
  0x7c   : > { %7369 = vmatmul.mubr.f32.gmra.mrb[6].mxu0 %v10112_v42 }
  0x7d   : > { %7371 = vmatprep.mubr.f32.mxu0 %v10115_v43  ;;  %8766 = vmatpush3.bf16.msra.mxu0 %v8763_v37  ;;  %v10187_v37 = vld [vmem:[%s9863_s14 + $0xf0] sm:$0xff] }
  0x7e   : > { %8768 = vmatprep.subr.bf16.mxu0 %v8767_v44 }
  0x80   : > { %7372 = vmatmul.mubr.f32.gmra.mrb[8].mxu0 %v10126_v49 }
  0x81   : > { %7374 = vmatprep.mubr.f32.mxu0 %v10129_v52  ;;  %8770 = vmatpush3.bf16.msra.mxu0 %v8767_v44  ;;  %v10200_v44 = vld [vmem:[%s9863_s14 + $0x110] sm:$0xff] }
  0x82   : > { %8772 = vmatprep.subr.bf16.mxu0 %v8771_v53 }
  0x84   : > { %7375 = vmatmul.mubr.f32.gmra.mrb[10].mxu0 %v10140_v58 }
  0x85   : > { %7377 = vmatprep.mubr.f32.mxu0 %v10143_v59  ;;  %8774 = vmatpush3.bf16.msra.mxu0 %v8771_v53  ;;  %v10211_v53 = vld [vmem:[%s9863_s14 + $0x138] sm:$0xff] }
  0x86   : > { %8776 = vmatprep.subr.bf16.mxu0 %v8775_v62 }
  0x88   : > { %7378 = vmatmul.mubr.f32.gmra.mrb[12].mxu0 %v10154_v3 }
  0x89   : > { %7380 = vmatprep.mubr.f32.mxu0 %v10157_v19  ;;  %8778 = vmatpush3.bf16.msra.mxu0 %v8775_v62  ;;  %v10224_v62 = vld [vmem:[%s9863_s14 + $0x158] sm:$0xff] }
  0x8a   : > { %8780 = vmatprep.subr.bf16.mxu0 %v8779_v20 }
  0x8c   : > { %7381 = vmatmul.mubr.f32.gmra.mrb[14].mxu0 %v10168_v24 }
  0x8d   : > { %7383 = vmatprep.mubr.f32.mxu0 %v10171_v25  ;;  %8782 = vmatpush3.bf16.msra.mxu0 %v8779_v20  ;;  %v826_v20 = vld [vmem:[%s9863_s14 + $0x2] sm:$0xff] }
  0x8e   : > { %8784 = vmatprep.subr.bf16.mxu0 %v8783_v26 }
  0x90   : > { %7384 = vmatmul.mubr.f32.gmra.mrb[16].mxu0 %v10176_v29 }
  0x91   : > { %7386 = vmatprep.mubr.f32.mxu0 %v10179_v30 }
  0x94   : > { %7387 = vmatmul.mubr.f32.gmra.mrb[18].mxu0 %v10184_v32 }
  0x95   : > { %7389 = vmatprep.mubr.f32.mxu0 %v10187_v37 }
  0x98   : > { %7390 = vmatmul.mubr.f32.gmra.mrb[20].mxu0 %v10192_v38 }
  0x99   : > { %7392 = vmatprep.mubr.f32.mxu0 %v10195_v39 }
  0x9c   : > { %7393 = vmatmul.mubr.f32.gmra.mrb[22].mxu0 %v10200_v44 }
  0x9d   : > { %7395 = vmatprep.mubr.f32.mxu0 %v10203_v47 }
  0xa0   : > { %7396 = vmatmul.mubr.f32.gmra.mrb[24].mxu0 %v10208_v48 }
  0xa1   : > { %7398 = vmatprep.mubr.f32.mxu0 %v10211_v53 }
  0xa4   : > { %7399 = vmatmul.mubr.f32.gmra.mrb[26].mxu0 %v10216_v54 }
  0xa5   : > { %7401 = vmatprep.mubr.f32.mxu0 %v10219_v57 }
  0xa8   : > { %7402 = vmatmul.mubr.f32.gmra.mrb[28].mxu0 %v10224_v62 }
  0xa9   : > { %7404 = vmatprep.mubr.f32.mxu0 %v10227_v63 }
  0xac   : > { %7405 = vmatmul.mubr.f32.gmra.mrb[30].mxu0 %v10232_v0 }
  0xad   : > { %7439 = vmatprep.mubr.f32.mxu0 %v826_v20  ;;  %v10257_v20 = vld [vmem:[%s9863_s14 + $0x32] sm:$0xff] }
  0xae   : > { %11988 = vst [vmem:[#allocation12_spill] sm:$0xff] %v10257_v20 }
  0xb0   : > { %7440 = vmatmul.mubr.f32.vlgmr.msra.gmra.mrb[0].mxu0 %v827_v18  ;;  %v10268_v18 = vld [vmem:[%s9863_s14 + $0x3a] sm:$0xff] }
  0xb1   : > { %8786 = vmatpush3.bf16.msra.mxu0 %v8783_v26  ;;  %7442 = vmatprep.mubr.f32.mxu0 %v10244_v17  ;;  %11989 = vst [vmem:[#allocation13_spill] sm:$0xff] %v10268_v18  ;;  %v10271_v26 = vld [vmem:[%s9863_s14 + $0x4a] sm:$0xff] }
  0xb2   : > { %8788 = vmatprep.subr.bf16.mxu0 %v8787_v16  ;;  %11990 = vst [vmem:[#allocation14_spill] sm:$0xff] %v10271_v26  ;;  %v6003_v17 = vld [vmem:[%s11906_s1 + $0x1c8] sm:$0xff] }
  0xb3   : > { %v8799_v12 = vpack.c.bf16 %v6003_v17, %v6002_v15  ;;  %v6006_v15 = vld [vmem:[%s11906_s1 + $0x1e0] sm:$0xff] }
  0xb4   : > { %7443 = vmatmul.mubr.f32.gmra.mrb[2].mxu0 %v10254_v13  ;;  %v6005_v13 = vld [vmem:[%s11906_s1 + $0x1d8] sm:$0xff] }
  0xb5   : > { %7445 = vmatprep.mubr.f32.mxu0 %v10257_v20  ;;  %8790 = vmatpush3.bf16.msra.mxu0 %v8787_v16  ;;  %v10282_v20 = vld [vmem:[%s9863_s14 + $0x52] sm:$0xff]  ;;  %v10285_v16 = vld [vmem:[%s9863_s14 + $0x62] sm:$0xff]  ;;  %v8803_v17 = vpack.c.bf16 %v6005_v13, %v6004_v22 }
  0xb6   : > { %8792 = vmatprep.subr.bf16.mxu0 %v8791_v21  ;;  %11991 = vst [vmem:[#allocation15_spill] sm:$0xff] %v10282_v20  ;;  %11992 = vst [vmem:[#allocation16_spill] sm:$0xff] %v10285_v16  ;;  %v6008_v22 = vld [vmem:[%s11906_s1 + $0x1f0] sm:$0xff] }
  0xb8   : > { %7446 = vmatmul.mubr.f32.gmra.mrb[4].mxu0 %v10268_v18  ;;  %v6007_v18 = vld [vmem:[%s11906_s1 + $0x1e8] sm:$0xff] }
  0xb9   : > { %7448 = vmatprep.mubr.f32.mxu0 %v10271_v26  ;;  %8794 = vmatpush3.bf16.msra.mxu0 %v8791_v21  ;;  %v10296_v26 = vld [vmem:[%s9863_s14 + $0x6a] sm:$0xff]  ;;  %v10299_v21 = vld [vmem:[%s9863_s14 + $0x7a] sm:$0xff]  ;;  %v8807_v13 = vpack.c.bf16 %v6007_v18, %v6006_v15 }
  0xba   : > { %8796 = vmatprep.subr.bf16.mxu0 %v8795_v14  ;;  %11993 = vst [vmem:[#allocation17_spill] sm:$0xff] %v10296_v26  ;;  %11994 = vst [vmem:[#allocation18_spill] sm:$0xff] %v10299_v21  ;;  %v6042_v15 = vld [vmem:[%s11906_s1 + $0x200] sm:$0xff] }
  0xbc   : > { %7449 = vmatmul.mubr.f32.gmra.mrb[6].mxu0 %v10282_v20  ;;  %v6009_v20 = vld [vmem:[%s11906_s1 + $0x1f8] sm:$0xff] }
  0xbd   : > { %7451 = vmatprep.mubr.f32.mxu0 %v10285_v16  ;;  %8798 = vmatpush3.bf16.msra.mxu0 %v8795_v14  ;;  %v10310_v16 = vld [vmem:[%s9863_s14 + $0x82] sm:$0xff]  ;;  %v10313_v14 = vld [vmem:[%s9863_s14 + $0x92] sm:$0xff]  ;;  %v8811_v18 = vpack.c.bf16 %v6009_v20, %v6008_v22  ;;  %v10346_v22 = vld [vmem:[%s9863_s14 + $0xca] sm:$0xff] }
  0xbe   : > { %8800 = vmatprep.subr.bf16.mxu0 %v8799_v12  ;;  %11995 = vst [vmem:[#allocation19_spill] sm:$0xff] %v10313_v14  ;;  %11998 = vst [vmem:[#allocation22_spill] sm:$0xff] %v10346_v22 }
  0xc0   : > { %7452 = vmatmul.mubr.f32.gmra.mrb[8].mxu0 %v10296_v26  ;;  %v6043_v26 = vld [vmem:[%s11906_s1 + $0x208] sm:$0xff] }
  0xc1   : > { %7454 = vmatprep.mubr.f32.mxu0 %v10299_v21  ;;  %8802 = vmatpush3.bf16.msra.mxu0 %v8799_v12  ;;  %v10324_v21 = vld [vmem:[%s9863_s14 + $0x9a] sm:$0xff]  ;;  %v10327_v12 = vld [vmem:[%s9863_s14 + $0xaa] sm:$0xff]  ;;  %v8815_v20 = vpack.c.bf16 %v6043_v26, %v6042_v15  ;;  %v10357_v26 = vld [vmem:[%s9863_s14 + $0xf2] sm:$0xff] }
  0xc2   : > { %8804 = vmatprep.subr.bf16.mxu0 %v8803_v17  ;;  %11996 = vst [vmem:[#allocation20_spill] sm:$0xff] %v10324_v21  ;;  %12001 = vst [vmem:[#allocation25_spill] sm:$0xff] %v10357_v26  ;;  %v10365_v15 = vld [vmem:[%s9863_s14 + $0x10a] sm:$0xff] }
  0xc3   : > { %12003 = vst [vmem:[#allocation27_spill] sm:$0xff] %v10365_v15 }
  0xc4   : > { %7455 = vmatmul.mubr.f32.gmra.mrb[10].mxu0 %v10310_v16 }
  0xc5   : > { %7457 = vmatprep.mubr.f32.mxu0 %v10313_v14  ;;  %8806 = vmatpush3.bf16.msra.mxu0 %v8803_v17  ;;  %v10338_v17 = vld [vmem:[%s9863_s14 + $0xb2] sm:$0xff]  ;;  %v10341_v14 = vld [vmem:[%s9863_s14 + $0xc2] sm:$0xff] }
  0xc6   : > { %8808 = vmatprep.subr.bf16.mxu0 %v8807_v13  ;;  %11997 = vst [vmem:[#allocation21_spill] sm:$0xff] %v10341_v14 }
  0xc8   : > { %7458 = vmatmul.mubr.f32.gmra.mrb[12].mxu0 %v10324_v21  ;;  %v10349_v21 = vld [vmem:[%s9863_s14 + $0xda] sm:$0xff] }
  0xc9   : > { %7460 = vmatprep.mubr.f32.mxu0 %v10327_v12  ;;  %8810 = vmatpush3.bf16.msra.mxu0 %v8807_v13  ;;  %11999 = vst [vmem:[#allocation23_spill] sm:$0xff] %v10349_v21  ;;  %v10354_v13 = vld [vmem:[%s9863_s14 + $0xe2] sm:$0xff] }
  0xca   : > { %8812 = vmatprep.subr.bf16.mxu0 %v8811_v18  ;;  %12000 = vst [vmem:[#allocation24_spill] sm:$0xff] %v10354_v13 }
  0xcc   : > { %7461 = vmatmul.mubr.f32.gmra.mrb[14].mxu0 %v10338_v17 }
  0xcd   : > { %7463 = vmatprep.mubr.f32.mxu0 %v10341_v14  ;;  %8814 = vmatpush3.bf16.msra.mxu0 %v8811_v18  ;;  %v10362_v18 = vld [vmem:[%s9863_s14 + $0xfa] sm:$0xff] }
  0xce   : > { %8816 = vmatprep.subr.bf16.mxu0 %v8815_v20  ;;  %12002 = vst [vmem:[#allocation26_spill] sm:$0xff] %v10362_v18  ;;  %v10394_v14 = vld [vmem:[%s9863_s14 + $0x15a] sm:$0xff] }
  0xcf   : > { %12010 = vst [vmem:[#allocation34_spill] sm:$0xff] %v10394_v14 }
  0xd0   : > { %7464 = vmatmul.mubr.f32.gmra.mrb[16].mxu0 %v10346_v22  ;;  %v10373_v22 = vld [vmem:[%s9863_s14 + $0x122] sm:$0xff] }
  0xd1   : > { %7466 = vmatprep.mubr.f32.mxu0 %v10349_v21  ;;  %v10370_v21 = vld [vmem:[%s9863_s14 + $0x112] sm:$0xff]  ;;  %12005 = vst [vmem:[#allocation29_spill] sm:$0xff] %v10373_v22 }
  0xd2   : > { %12004 = vst [vmem:[#allocation28_spill] sm:$0xff] %v10370_v21 }
  0xd4   : > { %7467 = vmatmul.mubr.f32.gmra.mrb[18].mxu0 %v10354_v13  ;;  %v10381_v13 = vld [vmem:[%s9863_s14 + $0x13a] sm:$0xff] }
  0xd5   : > { %7469 = vmatprep.mubr.f32.mxu0 %v10357_v26  ;;  %v10378_v26 = vld [vmem:[%s9863_s14 + $0x12a] sm:$0xff]  ;;  %12007 = vst [vmem:[#allocation31_spill] sm:$0xff] %v10381_v13 }
  0xd6   : > { %12006 = vst [vmem:[#allocation30_spill] sm:$0xff] %v10378_v26 }
  0xd8   : > { %7470 = vmatmul.mubr.f32.gmra.mrb[20].mxu0 %v10362_v18  ;;  %v10386_v18 = vld [vmem:[%s9863_s14 + $0x142] sm:$0xff] }
  0xd9   : > { %7472 = vmatprep.mubr.f32.mxu0 %v10365_v15  ;;  %12008 = vst [vmem:[#allocation32_spill] sm:$0xff] %v10386_v18  ;;  %v10389_v15 = vld [vmem:[%s9863_s14 + $0x152] sm:$0xff] }
  0xda   : > { %12009 = vst [vmem:[#allocation33_spill] sm:$0xff] %v10389_v15 }
  0xdc   : > { %7473 = vmatmul.mubr.f32.gmra.mrb[22].mxu0 %v10370_v21  ;;  %v10397_v21 = vld [vmem:[%s9863_s14 + $0x16a] sm:$0xff] }
  0xdd   : > { %7475 = vmatprep.mubr.f32.mxu0 %v10373_v22  ;;  %12011 = vst [vmem:[#allocation35_spill] sm:$0xff] %v10397_v21  ;;  %v10402_v22 = vld [vmem:[%s9863_s14 + $0x172] sm:$0xff] }
  0xe0   : > { %7476 = vmatmul.mubr.f32.gmra.mrb[24].mxu0 %v10378_v26 }
  0xe1   : > { %7478 = vmatprep.mubr.f32.mxu0 %v10381_v13  ;;  %v6044_v13 = vld [vmem:[%s11906_s1 + $0x210] sm:$0xff] }
  0xe4   : > { %7479 = vmatmul.mubr.f32.gmra.mrb[26].mxu0 %v10386_v18  ;;  %v6045_v18 = vld [vmem:[%s11906_s1 + $0x218] sm:$0xff] }
  0xe5   : > { %7481 = vmatprep.mubr.f32.mxu0 %v10389_v15  ;;  %v8819_v15 = vpack.c.bf16 %v6045_v18, %v6044_v13  ;;  %v6049_v13 = vld [vmem:[%s11906_s1 + $0x238] sm:$0xff]  ;;  %v6052_v18 = vld [vmem:[%s11906_s1 + $0x250] sm:$0xff] }
  0xe8   : > { %7482 = vmatmul.mubr.f32.gmra.mrb[28].mxu0 %v10394_v14  ;;  %v6046_v14 = vld [vmem:[%s11906_s1 + $0x220] sm:$0xff] }
  0xe9   : > { %7484 = vmatprep.mubr.f32.mxu0 %v10397_v21  ;;  %v6047_v21 = vld [vmem:[%s11906_s1 + $0x228] sm:$0xff] }
  0xea   : > { %v8823_v26 = vpack.c.bf16 %v6047_v21, %v6046_v14  ;;  %v6051_v21 = vld [vmem:[%s11906_s1 + $0x248] sm:$0xff] }
  0xec   : > { %7485 = vmatmul.mubr.f32.gmra.mrb[30].mxu0 %v10402_v22 }
  0xed   : > { %7519 = vmatprep.mubr.f32.mxu0 %v10074_v23  ;;  %v6048_v23 = vld [vmem:[%s11906_s1 + $0x230] sm:$0xff] }
  0xf0   : > { %7520 = vmatmul.mubr.f32.vlgmr.msra.gmra.mrb[0].mxu0 %v10084_v27  ;;  %v8827_v27 = vpack.c.bf16 %v6049_v13, %v6048_v23  ;;  %v6055_v13 = vld [vmem:[%s11906_s1 + $0x268] sm:$0xff] }
  0xf1   : > { %8818 = vmatpush3.bf16.msra.mxu0 %v8815_v20  ;;  %7522 = vmatprep.mubr.f32.mxu0 %v10087_v28  ;;  %v6050_v20 = vld [vmem:[%s11906_s1 + $0x240] sm:$0xff] }
  0xf2   : > { %8820 = vmatprep.subr.bf16.mxu0 %v8819_v15  ;;  %v8831_v14 = vpack.c.bf16 %v6051_v21, %v6050_v20  ;;  %v6057_v21 = vld [vmem:[%s11906_s1 + $0x278] sm:$0xff] }
  0xf4   : > { %7523 = vmatmul.mubr.f32.gmra.mrb[2].mxu0 %v10098_v33 }
  0xf5   : > { %7525 = vmatprep.mubr.f32.mxu0 %v10101_v34  ;;  %8822 = vmatpush3.bf16.msra.mxu0 %v8819_v15  ;;  %v6053_v15 = vld [vmem:[%s11906_s1 + $0x258] sm:$0xff] }
  0xf6   : > { %8824 = vmatprep.subr.bf16.mxu0 %v8823_v26  ;;  %v8835_v23 = vpack.c.bf16 %v6053_v15, %v6052_v18  ;;  %v6091_v15 = vld [vmem:[%s11906_s1 + $0x288] sm:$0xff] }
  0xf8   : > { %7526 = vmatmul.mubr.f32.gmra.mrb[4].mxu0 %v10112_v42 }
  0xf9   : > { %7528 = vmatprep.mubr.f32.mxu0 %v10115_v43  ;;  %8826 = vmatpush3.bf16.msra.mxu0 %v8823_v26  ;;  %v6054_v26 = vld [vmem:[%s11906_s1 + $0x260] sm:$0xff] }
  0xfa   : > { %8828 = vmatprep.subr.bf16.mxu0 %v8827_v27  ;;  %v8839_v20 = vpack.c.bf16 %v6055_v13, %v6054_v26  ;;  %v10488_v13 = vld [vmem:[%s9863_s14 + $0x188] sm:$0xff] }
  0xfc   : > { %7529 = vmatmul.mubr.f32.gmra.mrb[6].mxu0 %v10126_v49 }
  0xfd   : > { %7531 = vmatprep.mubr.f32.mxu0 %v10129_v52  ;;  %8830 = vmatpush3.bf16.msra.mxu0 %v8827_v27  ;;  %v6056_v27 = vld [vmem:[%s11906_s1 + $0x270] sm:$0xff] }
  0xfe   : > { %8832 = vmatprep.subr.bf16.mxu0 %v8831_v14  ;;  %v8843_v18 = vpack.c.bf16 %v6057_v21, %v6056_v27  ;;  %v6093_v27 = vld [vmem:[%s11906_s1 + $0x298] sm:$0xff] }
 0x100   : > { %7532 = vmatmul.mubr.f32.gmra.mrb[8].mxu0 %v10140_v58 }
 0x101   : > { %7534 = vmatprep.mubr.f32.mxu0 %v10143_v59  ;;  %8834 = vmatpush3.bf16.msra.mxu0 %v8831_v14  ;;  %v6090_v14 = vld [vmem:[%s11906_s1 + $0x280] sm:$0xff] }
 0x102   : > { %8836 = vmatprep.subr.bf16.mxu0 %v8835_v23  ;;  %v8847_v26 = vpack.c.bf16 %v6091_v15, %v6090_v14  ;;  %v6095_v14 = vld [vmem:[%s11906_s1 + $0x2a8] sm:$0xff] }
 0x104   : > { %7535 = vmatmul.mubr.f32.gmra.mrb[10].mxu0 %v10154_v3 }
 0x105   : > { %7537 = vmatprep.mubr.f32.mxu0 %v10157_v19  ;;  %8838 = vmatpush3.bf16.msra.mxu0 %v8835_v23  ;;  %v10483_v23 = vld [vmem:[%s9863_s14 + $0x180] sm:$0xff] }
 0x106   : > { %8840 = vmatprep.subr.bf16.mxu0 %v8839_v20 }
 0x108   : > { %7538 = vmatmul.mubr.f32.gmra.mrb[12].mxu0 %v10168_v24 }
 0x109   : > { %7540 = vmatprep.mubr.f32.mxu0 %v10171_v25  ;;  %8842 = vmatpush3.bf16.msra.mxu0 %v8839_v20  ;;  %v6092_v20 = vld [vmem:[%s11906_s1 + $0x290] sm:$0xff] }
 0x10a   : > { %8844 = vmatprep.subr.bf16.mxu0 %v8843_v18  ;;  %v8851_v21 = vpack.c.bf16 %v6093_v27, %v6092_v20  ;;  %v6097_v20 = vld [vmem:[%s11906_s1 + $0x2b8] sm:$0xff] }
 0x10b   : > { %v6101_v27 = vld [vmem:[%s11906_s1 + $0x2d8] sm:$0xff] }
 0x10c   : > { %7541 = vmatmul.mubr.f32.gmra.mrb[14].mxu0 %v10176_v29 }
 0x10d   : > { %7543 = vmatprep.mubr.f32.mxu0 %v10179_v30  ;;  %8846 = vmatpush3.bf16.msra.mxu0 %v8843_v18  ;;  %v6094_v18 = vld [vmem:[%s11906_s1 + $0x2a0] sm:$0xff] }
 0x10e   : > { %8848 = vmatprep.subr.bf16.mxu0 %v8847_v26  ;;  %v8855_v15 = vpack.c.bf16 %v6095_v14, %v6094_v18  ;;  %v6105_v18 = vld [vmem:[%s11906_s1 + $0x2f8] sm:$0xff]  ;;  %v6139_v14 = vld [vmem:[%s11906_s1 + $0x308] sm:$0xff] }
 0x110   : > { %7544 = vmatmul.mubr.f32.gmra.mrb[16].mxu0 %v10184_v32 }
 0x111   : > { %7546 = vmatprep.mubr.f32.mxu0 %v10187_v37 }
 0x114   : > { %7547 = vmatmul.mubr.f32.gmra.mrb[18].mxu0 %v10192_v38 }
 0x115   : > { %7549 = vmatprep.mubr.f32.mxu0 %v10195_v39 }
 0x118   : > { %7550 = vmatmul.mubr.f32.gmra.mrb[20].mxu0 %v10200_v44 }
 0x119   : > { %7552 = vmatprep.mubr.f32.mxu0 %v10203_v47 }
 0x11c   : > { %7553 = vmatmul.mubr.f32.gmra.mrb[22].mxu0 %v10208_v48 }
 0x11d   : > { %7555 = vmatprep.mubr.f32.mxu0 %v10211_v53 }
 0x120   : > { %7556 = vmatmul.mubr.f32.gmra.mrb[24].mxu0 %v10216_v54 }
 0x121   : > { %7558 = vmatprep.mubr.f32.mxu0 %v10219_v57 }
 0x124   : > { %7559 = vmatmul.mubr.f32.gmra.mrb[26].mxu0 %v10224_v62 }
 0x125   : > { %7561 = vmatprep.mubr.f32.mxu0 %v10227_v63 }
 0x128   : > { %7562 = vmatmul.mubr.f32.gmra.mrb[28].mxu0 %v10232_v0 }
 0x129   : > { %7564 = vmatprep.mubr.f32.mxu0 %v10483_v23 }
 0x12c   : > { %7565 = vmatmul.mubr.f32.gmra.mrb[30].mxu0 %v10488_v13 }
 0x12d   : > { %7599 = vmatprep.mubr.f32.mxu0 %v9904_v31  ;;  %v6096_v31 = vld [vmem:[%s11906_s1 + $0x2b0] sm:$0xff] }
 0x130   : > { %7600 = vmatmul.mubr.f32.vlgmr.msra.gmra.mrb[0].mxu0 %v9914_v35  ;;  %v8859_v35 = vpack.c.bf16 %v6097_v20, %v6096_v31  ;;  %v6142_v20 = vld [vmem:[%s11906_s1 + $0x320] sm:$0xff] }
 0x131   : > { %8850 = vmatpush3.bf16.msra.mxu0 %v8847_v26  ;;  %7602 = vmatprep.mubr.f32.mxu0 %v9917_v36  ;;  %v6098_v36 = vld [vmem:[%s11906_s1 + $0x2c0] sm:$0xff]  ;;  %v6099_v26 = vld [vmem:[%s11906_s1 + $0x2c8] sm:$0xff] }
 0x132   : > { %8852 = vmatprep.subr.bf16.mxu0 %v8851_v21 }
 0x134   : > { %7603 = vmatmul.mubr.f32.gmra.mrb[2].mxu0 %v9928_v40  ;;  %v8863_v40 = vpack.c.bf16 %v6099_v26, %v6098_v36  ;;  %v12020_v36 = vld [vmem:[#allocation11_spill] sm:$0xff]  ;;  %v12021_v26 = vld [vmem:[#allocation12_spill] sm:$0xff] }
 0x135   : > { %7605 = vmatprep.mubr.f32.mxu0 %v9931_v41  ;;  %8854 = vmatpush3.bf16.msra.mxu0 %v8851_v21  ;;  %v6100_v41 = vld [vmem:[%s11906_s1 + $0x2d0] sm:$0xff]  ;;  %v6103_v21 = vld [vmem:[%s11906_s1 + $0x2e8] sm:$0xff] }
 0x136   : > { %8856 = vmatprep.subr.bf16.mxu0 %v8855_v15 }
 0x138   : > { %7606 = vmatmul.mubr.f32.gmra.mrb[4].mxu0 %v9942_v45  ;;  %v8867_v45 = vpack.c.bf16 %v6101_v27, %v6100_v41  ;;  %v6144_v41 = vld [vmem:[%s11906_s1 + $0x330] sm:$0xff]  ;;  %v6145_v27 = vld [vmem:[%s11906_s1 + $0x338] sm:$0xff] }
 0x139   : > { %7608 = vmatprep.mubr.f32.mxu0 %v9945_v46  ;;  %8858 = vmatpush3.bf16.msra.mxu0 %v8855_v15  ;;  %v6102_v46 = vld [vmem:[%s11906_s1 + $0x2e0] sm:$0xff]  ;;  %v12019_v15 = vld [vmem:[#allocation10_spill] sm:$0xff] }
 0x13a   : > { %8860 = vmatprep.subr.bf16.mxu0 %v8859_v35 }
 0x13c   : > { %7609 = vmatmul.mubr.f32.gmra.mrb[6].mxu0 %v9956_v50  ;;  %v8871_v50 = vpack.c.bf16 %v6103_v21, %v6102_v46  ;;  %v12023_v46 = vld [vmem:[#allocation14_spill] sm:$0xff]  ;;  %v8891_v21 = vpack.c.bf16 %v6145_v27, %v6144_v41  ;;  %v12034_v41 = vld [vmem:[#allocation25_spill] sm:$0xff] }
 0x13d   : > { %7611 = vmatprep.mubr.f32.mxu0 %v9959_v51  ;;  %8862 = vmatpush3.bf16.msra.mxu0 %v8859_v35  ;;  %v6104_v51 = vld [vmem:[%s11906_s1 + $0x2f0] sm:$0xff]  ;;  %v6143_v35 = vld [vmem:[%s11906_s1 + $0x328] sm:$0xff] }
 0x13e   : > { %8864 = vmatprep.subr.bf16.mxu0 %v8863_v40  ;;  %v12035_v27 = vld [vmem:[#allocation26_spill] sm:$0xff] }
 0x140   : > { %7612 = vmatmul.mubr.f32.gmra.mrb[8].mxu0 %v9970_v55  ;;  %v8875_v55 = vpack.c.bf16 %v6105_v18, %v6104_v51  ;;  %v6147_v51 = vld [vmem:[%s11906_s1 + $0x348] sm:$0xff]  ;;  %v12024_v18 = vld [vmem:[#allocation15_spill] sm:$0xff] }
 0x141   : > { %7614 = vmatprep.mubr.f32.mxu0 %v9973_v56  ;;  %8866 = vmatpush3.bf16.msra.mxu0 %v8863_v40  ;;  %v6138_v56 = vld [vmem:[%s11906_s1 + $0x300] sm:$0xff]  ;;  %v8887_v40 = vpack.c.bf16 %v6143_v35, %v6142_v20  ;;  %v6187_v20 = vld [vmem:[%s11906_s1 + $0x388] sm:$0xff] }
 0x142   : > { %8868 = vmatprep.subr.bf16.mxu0 %v8867_v45  ;;  %v12030_v35 = vld [vmem:[#allocation21_spill] sm:$0xff] }
 0x144   : > { %7615 = vmatmul.mubr.f32.gmra.mrb[10].mxu0 %v9984_v60  ;;  %v8879_v60 = vpack.c.bf16 %v6139_v14, %v6138_v56  ;;  %v6148_v14 = vld [vmem:[%s11906_s1 + $0x350] sm:$0xff] }
 0x145   : > { %7617 = vmatprep.mubr.f32.mxu0 %v9987_v61  ;;  %8870 = vmatpush3.bf16.msra.mxu0 %v8867_v45  ;;  %v12012_v61 = vld [vmem:[#allocation3_spill] sm:$0xff]  ;;  %v12022_v45 = vld [vmem:[#allocation13_spill] sm:$0xff] }
 0x146   : > { %8872 = vmatprep.subr.bf16.mxu0 %v8871_v50 }
 0x148   : > { %7618 = vmatmul.mubr.f32.gmra.mrb[12].mxu0 %v9998_v1  ;;  %v12013_v1 = vld [vmem:[#allocation4_spill] sm:$0xff] }
 0x149   : > { %7620 = vmatprep.mubr.f32.mxu0 %v10001_v2  ;;  %8874 = vmatpush3.bf16.msra.mxu0 %v8871_v50  ;;  %v12014_v2 = vld [vmem:[#allocation5_spill] sm:$0xff] }
 0x14a   : > { %8876 = vmatprep.subr.bf16.mxu0 %v8875_v55  ;;  %v6146_v50 = vld [vmem:[%s11906_s1 + $0x340] sm:$0xff] }
 0x14b   : > { %v8895_v56 = vpack.c.bf16 %v6147_v51, %v6146_v50  ;;  %v12040_v50 = vld [vmem:[#allocation31_spill] sm:$0xff]  ;;  %v12041_v51 = vld [vmem:[#allocation32_spill] sm:$0xff] }
 0x14c   : > { %7621 = vmatmul.mubr.f32.gmra.mrb[14].mxu0 %v10006_v4  ;;  %v12015_v4 = vld [vmem:[#allocation6_spill] sm:$0xff] }
 0x14d   : > { %7623 = vmatprep.mubr.f32.mxu0 %v10009_v5  ;;  %8878 = vmatpush3.bf16.msra.mxu0 %v8875_v55  ;;  %v12016_v5 = vld [vmem:[#allocation7_spill] sm:$0xff]  ;;  %v12025_v55 = vld [vmem:[#allocation16_spill] sm:$0xff] }
 0x14e   : > { %8880 = vmatprep.subr.bf16.mxu0 %v8879_v60 }
 0x150   : > { %7624 = vmatmul.mubr.f32.gmra.mrb[16].mxu0 %v10014_v6  ;;  %v12017_v6 = vld [vmem:[#allocation8_spill] sm:$0xff] }
 0x151   : > { %7626 = vmatprep.mubr.f32.mxu0 %v10017_v7  ;;  %v10569_v7 = vld [vmem:[%s9863_s14 + $0x181] sm:$0xff] }
 0x154   : > { %7627 = vmatmul.mubr.f32.gmra.mrb[18].mxu0 %v10022_v8  ;;  %v12018_v8 = vld [vmem:[#allocation9_spill] sm:$0xff] }
 0x155   : > { %7629 = vmatprep.mubr.f32.mxu0 %v10025_v9  ;;  %v10574_v9 = vld [vmem:[%s9863_s14 + $0x189] sm:$0xff] }
 0x158   : > { %7630 = vmatmul.mubr.f32.gmra.mrb[20].mxu0 %v10030_v10  ;;  %v6140_v10 = vld [vmem:[%s11906_s1 + $0x310] sm:$0xff] }
 0x159   : > { %7632 = vmatprep.mubr.f32.mxu0 %v10033_v11  ;;  %v6141_v11 = vld [vmem:[%s11906_s1 + $0x318] sm:$0xff] }
 0x15a   : > { %v8883_v31 = vpack.c.bf16 %v6141_v11, %v6140_v10  ;;  %v6152_v10 = vld [vmem:[%s11906_s1 + $0x370] sm:$0xff]  ;;  %v6153_v11 = vld [vmem:[%s11906_s1 + $0x378] sm:$0xff] }
 0x15c   : > { %7633 = vmatmul.mubr.f32.gmra.mrb[22].mxu0 %v12012_v61  ;;  %v12026_v61 = vld [vmem:[#allocation17_spill] sm:$0xff] }
 0x15d   : > { %7635 = vmatprep.mubr.f32.mxu0 %v12013_v1  ;;  %v12027_v1 = vld [vmem:[#allocation18_spill] sm:$0xff] }
 0x160   : > { %7636 = vmatmul.mubr.f32.gmra.mrb[24].mxu0 %v12014_v2 }
 0x161   : > { %7638 = vmatprep.mubr.f32.mxu0 %v12015_v4  ;;  %v6150_v4 = vld [vmem:[%s11906_s1 + $0x360] sm:$0xff] }
 0x164   : > { %7639 = vmatmul.mubr.f32.gmra.mrb[26].mxu0 %v12016_v5  ;;  %v6151_v5 = vld [vmem:[%s11906_s1 + $0x368] sm:$0xff] }
 0x165   : > { %7641 = vmatprep.mubr.f32.mxu0 %v12017_v6  ;;  %v12028_v6 = vld [vmem:[#allocation19_spill] sm:$0xff] }
 0x168   : > { %7642 = vmatmul.mubr.f32.gmra.mrb[28].mxu0 %v12018_v8  ;;  %v8903_v8 = vpack.c.bf16 %v6151_v5, %v6150_v4  ;;  %v6191_v4 = vld [vmem:[%s11906_s1 + $0x3a8] sm:$0xff] }
 0x169   : > { %7644 = vmatprep.mubr.f32.mxu0 %v10569_v7 }
 0x16c   : > { %7645 = vmatmul.mubr.f32.gmra.mrb[30].mxu0 %v10574_v9 }
 0x16d   : > { %7679 = vmatprep.mubr.f32.mxu0 %v12019_v15  ;;  %v12029_v15 = vld [vmem:[#allocation20_spill] sm:$0xff] }
 0x170   : > { %7680 = vmatmul.mubr.f32.vlgmr.msra.gmra.mrb[0].mxu0 %v12020_v36 }
 0x171   : > { %8882 = vmatpush3.bf16.msra.mxu0 %v8879_v60  ;;  %7682 = vmatprep.mubr.f32.mxu0 %v12021_v26  ;;  %v6149_v60 = vld [vmem:[%s11906_s1 + $0x358] sm:$0xff]  ;;  %v12031_v26 = vld [vmem:[#allocation22_spill] sm:$0xff] }
 0x172   : > { %8884 = vmatprep.subr.bf16.mxu0 %v8883_v31  ;;  %v8899_v2 = vpack.c.bf16 %v6149_v60, %v6148_v14  ;;  %v10655_v14 = vld [vmem:[%s9863_s14 + $0x182] sm:$0xff]  ;;  %v10660_v60 = vld [vmem:[%s9863_s14 + $0x18a] sm:$0xff] }
 0x174   : > { %7683 = vmatmul.mubr.f32.gmra.mrb[2].mxu0 %v12022_v45  ;;  %v12037_v45 = vld [vmem:[#allocation28_spill] sm:$0xff] }
 0x175   : > { %7685 = vmatprep.mubr.f32.mxu0 %v12023_v46  ;;  %8886 = vmatpush3.bf16.msra.mxu0 %v8883_v31  ;;  %v6186_v31 = vld [vmem:[%s11906_s1 + $0x380] sm:$0xff] }
 0x176   : > { %8888 = vmatprep.subr.bf16.mxu0 %v8887_v40  ;;  %v8911_v36 = vpack.c.bf16 %v6187_v20, %v6186_v31  ;;  %v12038_v46 = vld [vmem:[#allocation29_spill] sm:$0xff]  ;;  %v6256_v31 = vld [vmem:[%s11908_s3 + $0xa8] sm:$0xff]  ;;  %v6157_v20 = vld [vmem:[%s9863_s14 + $0x51] sm:$0xff] }
 0x178   : > { %7686 = vmatmul.mubr.f32.gmra.mrb[4].mxu0 %v12024_v18  ;;  %v12042_v18 = vld [vmem:[#allocation33_spill] sm:$0xff] }
 0x179   : > { %7688 = vmatprep.mubr.f32.mxu0 %v12025_v55  ;;  %8890 = vmatpush3.bf16.msra.mxu0 %v8887_v40  ;;  %v12033_v40 = vld [vmem:[#allocation24_spill] sm:$0xff]  ;;  %v12043_v55 = vld [vmem:[#allocation34_spill] sm:$0xff] }
 0x17a   : > { %8892 = vmatprep.subr.bf16.mxu0 %v8891_v21 }
 0x17c   : > { %7689 = vmatmul.mubr.f32.gmra.mrb[6].mxu0 %v12026_v61  ;;  %v6188_v61 = vld [vmem:[%s11906_s1 + $0x390] sm:$0xff] }
 0x17d   : > { %7691 = vmatprep.mubr.f32.mxu0 %v12027_v1  ;;  %8894 = vmatpush3.bf16.msra.mxu0 %v8891_v21  ;;  %v12039_v21 = vld [vmem:[#allocation30_spill] sm:$0xff]  ;;  %v6189_v1 = vld [vmem:[%s11906_s1 + $0x398] sm:$0xff] }
 0x17e   : > { %8896 = vmatprep.subr.bf16.mxu0 %v8895_v56 }
 0x180   : > { %7692 = vmatmul.mubr.f32.gmra.mrb[8].mxu0 %v10310_v16  ;;  %v8907_v16 = vpack.c.bf16 %v6153_v11, %v6152_v10  ;;  %v6197_v10 = vld [vmem:[%s11906_s1 + $0x3d8] sm:$0xff]  ;;  %v6199_v11 = vld [vmem:[%s11906_s1 + $0x3e8] sm:$0xff] }
 0x181   : > { %7694 = vmatprep.mubr.f32.mxu0 %v12028_v6  ;;  %8898 = vmatpush3.bf16.msra.mxu0 %v8895_v56  ;;  %v12044_v56 = vld [vmem:[#allocation35_spill] sm:$0xff]  ;;  %v6193_v6 = vld [vmem:[%s11906_s1 + $0x3b8] sm:$0xff] }
 0x182   : > { %8900 = vmatprep.subr.bf16.mxu0 %v8899_v2 }
 0x184   : > { %7695 = vmatmul.mubr.f32.gmra.mrb[10].mxu0 %v12029_v15  ;;  %v6201_v15 = vld [vmem:[%s11906_s1 + $0x3f8] sm:$0xff] }
 0x185   : > { %7697 = vmatprep.mubr.f32.mxu0 %v10327_v12  ;;  %8902 = vmatpush3.bf16.msra.mxu0 %v8899_v2  ;;  %v12032_v12 = vld [vmem:[#allocation23_spill] sm:$0xff]  ;;  %v8915_v2 = vpack.c.bf16 %v6189_v1, %v6188_v61 }
 0x186   : > { %8904 = vmatprep.subr.bf16.mxu0 %v8903_v8  ;;  %v6162_v61 = vld [vmem:[%s9863_s14 + $0x91] sm:$0xff] }
 0x188   : > { %7698 = vmatmul.mubr.f32.gmra.mrb[12].mxu0 %v10338_v17  ;;  %v12036_v17 = vld [vmem:[#allocation27_spill] sm:$0xff] }
 0x189   : > { %7700 = vmatprep.mubr.f32.mxu0 %v12030_v35  ;;  %8906 = vmatpush3.bf16.msra.mxu0 %v8903_v8  ;;  %v6195_v8 = vld [vmem:[%s11906_s1 + $0x3c8] sm:$0xff] }
 0x18a   : > { %8908 = vmatprep.subr.bf16.mxu0 %v8907_v16  ;;  %v6158_v35 = vld [vmem:[%s9863_s14 + $0x61] sm:$0xff] }
 0x18c   : > { %7701 = vmatmul.mubr.f32.gmra.mrb[14].mxu0 %v12031_v26  ;;  %v6240_v26 = vld [vmem:[%s11906_s1 + $0x430] sm:$0xff] }
 0x18d   : > { %7703 = vmatprep.mubr.f32.mxu0 %v12032_v12  ;;  %8910 = vmatpush3.bf16.msra.mxu0 %v8907_v16  ;;  %v6235_v16 = vld [vmem:[%s11906_s1 + $0x408] sm:$0xff] }
 0x18e   : > { %8912 = vmatprep.subr.bf16.mxu0 %v8911_v36 }
 0x190   : > { %7704 = vmatmul.mubr.f32.gmra.mrb[16].mxu0 %v12033_v40  ;;  %v6241_v40 = vld [vmem:[%s11906_s1 + $0x438] sm:$0xff] }
 0x191   : > { %7706 = vmatprep.mubr.f32.mxu0 %v12034_v41  ;;  %v6257_v41 = vld [vmem:[%s11908_s3 + $0xb0] sm:$0xff] }
 0x194   : > { %7707 = vmatmul.mubr.f32.gmra.mrb[18].mxu0 %v12035_v27  ;;  %v6258_v27 = vld [vmem:[%s11908_s3 + $0xb8] sm:$0xff] }
 0x195   : > { %7709 = vmatprep.mubr.f32.mxu0 %v12036_v17  ;;  %v6159_v17 = vld [vmem:[%s9863_s14 + $0x69] sm:$0xff] }
 0x198   : > { %7710 = vmatmul.mubr.f32.gmra.mrb[20].mxu0 %v12037_v45  ;;  %v6160_v45 = vld [vmem:[%s9863_s14 + $0x79] sm:$0xff] }
 0x199   : > { %7712 = vmatprep.mubr.f32.mxu0 %v12038_v46  ;;  %v8955_v46 = vpack.c.bf16 %v6241_v40, %v6240_v26  ;;  %v6213_v26 = vld [vmem:[%s9863_s14 + $0xb2] sm:$0xff]  ;;  %v6215_v40 = vld [vmem:[%s9863_s14 + $0xca] sm:$0xff] }
 0x19c   : > { %7713 = vmatmul.mubr.f32.gmra.mrb[22].mxu0 %v12039_v21  ;;  %v6242_v21 = vld [vmem:[%s11906_s1 + $0x440] sm:$0xff] }
 0x19d   : > { %7715 = vmatprep.mubr.f32.mxu0 %v12040_v50  ;;  %v8987_v50 = vpack.c.bf16 %v6258_v27, %v6257_v41  ;;  %v6216_v41 = vld [vmem:[%s9863_s14 + $0xda] sm:$0xff]  ;;  %v6217_v27 = vld [vmem:[%s9863_s14 + $0xe2] sm:$0xff] }
 0x1a0   : > { %7716 = vmatmul.mubr.f32.gmra.mrb[24].mxu0 %v12041_v51  ;;  %v6243_v51 = vld [vmem:[%s11906_s1 + $0x448] sm:$0xff] }
 0x1a1   : > { %7718 = vmatprep.mubr.f32.mxu0 %v12042_v18  ;;  %v6259_v18 = vld [vmem:[%s11908_s3 + $0xc0] sm:$0xff]  ;;  %v8959_v1 = vpack.c.bf16 %v6243_v51, %v6242_v21  ;;  %v6221_v21 = vld [vmem:[%s9863_s14 + $0x112] sm:$0xff]  ;;  %v6223_v51 = vld [vmem:[%s9863_s14 + $0x12a] sm:$0xff] }
 0x1a4   : > { %7719 = vmatmul.mubr.f32.gmra.mrb[26].mxu0 %v12043_v55  ;;  %v6260_v55 = vld [vmem:[%s11908_s3 + $0xc8] sm:$0xff] }
 0x1a5   : > { %7721 = vmatprep.mubr.f32.mxu0 %v12044_v56  ;;  %v6161_v56 = vld [vmem:[%s9863_s14 + $0x81] sm:$0xff] }
 0x1a8   : > { %7722 = vmatmul.mubr.f32.gmra.mrb[28].mxu0 %v10402_v22  ;;  %v6190_v22 = vld [vmem:[%s11906_s1 + $0x3a0] sm:$0xff] }
 0x1a9   : > { %7724 = vmatprep.mubr.f32.mxu0 %v10655_v14  ;;  %v8919_v5 = vpack.c.bf16 %v6191_v4, %v6190_v22  ;;  %v8991_v22 = vpack.c.bf16 %v6260_v55, %v6259_v18  ;;  %v6245_v4 = vld [vmem:[%s11906_s1 + $0x458] sm:$0xff]  ;;  %v6225_v55 = vld [vmem:[%s9863_s14 + $0x142] sm:$0xff] }
 0x1aa   : > { %v6224_v18 = vld [vmem:[%s9863_s14 + $0x13a] sm:$0xff] }
 0x1ac   : > { %7725 = vmatmul.mubr.f32.gmra.mrb[30].mxu0 %v10660_v60 }
 0x1ad   : > { %7759 = vmatprep.mubr.f32.mxu0 %v10087_v28  ;;  %v6192_v28 = vld [vmem:[%s11906_s1 + $0x3b0] sm:$0xff] }
 0x1b0   : > { %7760 = vmatmul.mubr.f32.vlgmr.msra.gmra.mrb[0].mxu0 %v10098_v33  ;;  %v8923_v33 = vpack.c.bf16 %v6193_v6, %v6192_v28  ;;  %v6262_v28 = vld [vmem:[%s11908_s3 + $0xd8] sm:$0xff] }
 0x1b1   : > { %8914 = vmatpush3.bf16.msra.mxu0 %v8911_v36  ;;  %7762 = vmatprep.mubr.f32.mxu0 %v10101_v34  ;;  %v6194_v34 = vld [vmem:[%s11906_s1 + $0x3c0] sm:$0xff] }
 0x1b2   : > { %8916 = vmatprep.subr.bf16.mxu0 %v8915_v2  ;;  %v6163_v6 = vld [vmem:[%s9863_s14 + $0x99] sm:$0xff] }
 0x1b4   : > { %7763 = vmatmul.mubr.f32.gmra.mrb[2].mxu0 %v10112_v42  ;;  %v8927_v42 = vpack.c.bf16 %v6195_v8, %v6194_v34 }
 0x1b5   : > { %7765 = vmatprep.mubr.f32.mxu0 %v10115_v43  ;;  %8918 = vmatpush3.bf16.msra.mxu0 %v8915_v2  ;;  %v6196_v43 = vld [vmem:[%s11906_s1 + $0x3d0] sm:$0xff] }
 0x1b6   : > { %8920 = vmatprep.subr.bf16.mxu0 %v8919_v5  ;;  %v6244_v2 = vld [vmem:[%s11906_s1 + $0x450] sm:$0xff] }
 0x1b7   : > { %v8963_v34 = vpack.c.bf16 %v6245_v4, %v6244_v2  ;;  %v6229_v2 = vld [vmem:[%s9863_s14 + $0x172] sm:$0xff]  ;;  %v6233_v4 = vld [vmem:[%s9863_s14 + $0x1a2] sm:$0xff] }
 0x1b8   : > { %7766 = vmatmul.mubr.f32.gmra.mrb[4].mxu0 %v10126_v49  ;;  %v8931_v49 = vpack.c.bf16 %v6197_v10, %v6196_v43  ;;  %v6247_v43 = vld [vmem:[%s11906_s1 + $0x468] sm:$0xff]  ;;  %v6165_v10 = vld [vmem:[%s9863_s14 + $0xb1] sm:$0xff] }
 0x1b9   : > { %7768 = vmatprep.mubr.f32.mxu0 %v10129_v52  ;;  %8922 = vmatpush3.bf16.msra.mxu0 %v8919_v5  ;;  %v6198_v52 = vld [vmem:[%s11906_s1 + $0x3e0] sm:$0xff]  ;;  %v6261_v5 = vld [vmem:[%s11908_s3 + $0xd0] sm:$0xff] }
 0x1ba   : > { %8924 = vmatprep.subr.bf16.mxu0 %v8923_v33  ;;  %v8995_v8 = vpack.c.bf16 %v6262_v28, %v6261_v5  ;;  %v6263_v5 = vld [vmem:[%s11908_s3 + $0xe0] sm:$0xff]  ;;  %v6264_v28 = vld [vmem:[%s11908_s3 + $0xe8] sm:$0xff] }
 0x1bc   : > { %7769 = vmatmul.mubr.f32.gmra.mrb[6].mxu0 %v10140_v58  ;;  %v8935_v58 = vpack.c.bf16 %v6199_v11, %v6198_v52  ;;  %v6248_v11 = vld [vmem:[%s11906_s1 + $0x470] sm:$0xff] }
 0x1bd   : > { %7771 = vmatprep.mubr.f32.mxu0 %v10143_v59  ;;  %8926 = vmatpush3.bf16.msra.mxu0 %v8923_v33  ;;  %v6200_v59 = vld [vmem:[%s11906_s1 + $0x3f0] sm:$0xff] }
 0x1be   : > { %8928 = vmatprep.subr.bf16.mxu0 %v8927_v42  ;;  %v6164_v33 = vld [vmem:[%s9863_s14 + $0xa9] sm:$0xff] }
 0x1c0   : > { %7772 = vmatmul.mubr.f32.gmra.mrb[8].mxu0 %v10154_v3  ;;  %v8939_v3 = vpack.c.bf16 %v6201_v15, %v6200_v59  ;;  %v6167_v59 = vld [vmem:[%s9863_s14 + $0xc9] sm:$0xff]  ;;  %v6168_v15 = vld [vmem:[%s9863_s14 + $0xd9] sm:$0xff] }
 0x1c1   : > { %7774 = vmatprep.mubr.f32.mxu0 %v10157_v19  ;;  %8930 = vmatpush3.bf16.msra.mxu0 %v8927_v42  ;;  %v6234_v19 = vld [vmem:[%s11906_s1 + $0x400] sm:$0xff] }
 0x1c2   : > { %8932 = vmatprep.subr.bf16.mxu0 %v8931_v49  ;;  %v6246_v42 = vld [vmem:[%s11906_s1 + $0x460] sm:$0xff] }
 0x1c3   : > { %v8967_v52 = vpack.c.bf16 %v6247_v43, %v6246_v42  ;;  %v3106_v42 = vld [vmem:[%s11908_s3] sm:$0xff]  ;;  %v3107_v43 = vld [vmem:[%s11908_s3 + $0x8] sm:$0xff] }
 0x1c4   : > { %7775 = vmatmul.mubr.f32.gmra.mrb[10].mxu0 %v10168_v24  ;;  %v10726_v24 = vpack.c.bf16 %v6235_v16, %v6234_v19  ;;  %v6169_v19 = vld [vmem:[%s9863_s14 + $0xe1] sm:$0xff]  ;;  %v6170_v16 = vld [vmem:[%s9863_s14 + $0xf1] sm:$0xff] }
 0x1c5   : > { %7777 = vmatprep.mubr.f32.mxu0 %v10171_v25  ;;  %8934 = vmatpush3.bf16.msra.mxu0 %v8931_v49  ;;  %v6136_v25 = vld [vmem:[%s9863_s14 + $0x198] sm:$0xff]  ;;  %v6166_v49 = vld [vmem:[%s9863_s14 + $0xc1] sm:$0xff] }
 0x1c6   : > { %8936 = vmatprep.subr.bf16.mxu0 %v8935_v58 }
 0x1c8   : > { %7778 = vmatmul.mubr.f32.gmra.mrb[12].mxu0 %v10176_v29  ;;  %v6137_v29 = vld [vmem:[%s9863_s14 + $0x1a0] sm:$0xff] }
 0x1c9   : > { %7780 = vmatprep.mubr.f32.mxu0 %v10179_v30  ;;  %8938 = vmatpush3.bf16.msra.mxu0 %v8935_v58  ;;  %v6154_v30 = vld [vmem:[%s9863_s14 + $0x31] sm:$0xff] }
 0x1ca   : > { %8940 = vmatprep.subr.bf16.mxu0 %v8939_v3  ;;  %v6249_v58 = vld [vmem:[%s11906_s1 + $0x478] sm:$0xff] }
 0x1cc   : > { %7781 = vmatmul.mubr.f32.gmra.mrb[14].mxu0 %v10184_v32  ;;  %v10750_v32 = vld [vmem:[%s11906_s1 + $0x410] sm:$0xff] }
 0x1cd   : > { %7783 = vmatprep.mubr.f32.mxu0 %v10187_v37  ;;  %8942 = vmatpush3.bf16.msra.mxu0 %v8939_v3  ;;  %v10755_v37 = vld [vmem:[%s11906_s1 + $0x418] sm:$0xff]  ;;  %v8971_v3 = vpack.c.bf16 %v6249_v58, %v6248_v11  ;;  %v3110_v58 = vld [vmem:[%s11908_s3 + $0x20] sm:$0xff] }
 0x1ce   : > { %8944 = vmatprep.subr.bf16.mxu0 %v10726_v24 }
 0x1d0   : > { %7784 = vmatmul.mubr.f32.gmra.mrb[16].mxu0 %v10192_v38  ;;  %v6251_v38 = vld [vmem:[%s11908_s3 + $0x80] sm:$0xff] }
 0x1d1   : > { %7786 = vmatprep.mubr.f32.mxu0 %v10195_v39  ;;  %v6252_v39 = vld [vmem:[%s11908_s3 + $0x88] sm:$0xff] }
 0x1d4   : > { %7787 = vmatmul.mubr.f32.gmra.mrb[18].mxu0 %v10200_v44  ;;  %v10766_v44 = vld [vmem:[%s11908_s3 + $0x90] sm:$0xff] }
 0x1d5   : > { %7789 = vmatprep.mubr.f32.mxu0 %v10203_v47  ;;  %v10769_v47 = vld [vmem:[%s9863_s14 + $0x39] sm:$0xff] }
 0x1d8   : > { %7790 = vmatmul.mubr.f32.gmra.mrb[20].mxu0 %v10208_v48  ;;  %v10771_v48 = vpack.c.bf16 %v6252_v39, %v6251_v38  ;;  %v6177_v38 = vld [vmem:[%s9863_s14 + $0x141] sm:$0xff]  ;;  %v6178_v39 = vld [vmem:[%s9863_s14 + $0x151] sm:$0xff] }
 0x1d9   : > { %7792 = vmatprep.mubr.f32.mxu0 %v10211_v53  ;;  %v6254_v53 = vld [vmem:[%s11908_s3 + $0x98] sm:$0xff] }
 0x1da   : > { %8976 = vmatprep.subr.bf16.mxu1 %v10771_v48 }
 0x1db   : > { %8978 = vmatpush3.bf16.msra.mxu1 %v10771_v48  ;;  %v6181_v48 = vld [vmem:[%s9863_s14 + $0x171] sm:$0xff] }
 0x1dc   : > { %7793 = vmatmul.mubr.f32.gmra.mrb[22].mxu0 %v10216_v54  ;;  %v9794_v54 = vmov 0.0  }
 0x1dd   : > { %7795 = vmatprep.mubr.f32.mxu0 %v10219_v57  ;;  %229 = vst [vmem:[#allocation2 + $0x20] sm:$0xff] %v9794_v54  ;;  %230 = vst [vmem:[#allocation2 + $0x28] sm:$0x3] %v9794_v54  ;;  %v6156_v57 = vld [vmem:[%s9863_s14 + $0x49] sm:$0xff] }
 0x1de   : > { %225 = vst [vmem:[#allocation2] sm:$0xff] %v9794_v54  ;;  %226 = vst [vmem:[#allocation2 + $0x8] sm:$0xff] %v9794_v54 }
 0x1df   : > { %227 = vst [vmem:[#allocation2 + $0x10] sm:$0x3] %v9794_v54  ;;  %228 = vst [vmem:[#allocation2 + $0x18] sm:$0xff] %v9794_v54 }
 0x1e0   : > { %7796 = vmatmul.mubr.f32.gmra.mrb[24].mxu0 %v10224_v62  ;;  %231 = vst [vmem:[#allocation2 + $0x30] sm:$0xff] %v9794_v54  ;;  %232 = vst [vmem:[#allocation2 + $0x38] sm:$0xff] %v9794_v54  ;;  %v8947_v62 = vpack.c.bf16 %v10755_v37, %v10750_v32  ;;  %v6175_v32 = vld [vmem:[%s9863_s14 + $0x129] sm:$0xff]  ;;  %v6176_v37 = vld [vmem:[%s9863_s14 + $0x139] sm:$0xff] }
 0x1e1   : > { %7798 = vmatprep.mubr.f32.mxu0 %v10227_v63  ;;  %233 = vst [vmem:[#allocation2 + $0x40] sm:$0x3] %v9794_v54  ;;  %234 = vst [vmem:[#allocation2 + $0x48] sm:$0xff] %v9794_v54  ;;  %v6238_v63 = vld [vmem:[%s11906_s1 + $0x420] sm:$0xff] }
 0x1e2   : > { %235 = vst [vmem:[#allocation2 + $0x50] sm:$0xff] %v9794_v54  ;;  %236 = vst [vmem:[#allocation2 + $0x58] sm:$0x3] %v9794_v54 }
 0x1e3   : > { %237 = vst [vmem:[#allocation2 + $0x60] sm:$0xff] %v9794_v54  ;;  %238 = vst [vmem:[#allocation2 + $0x68] sm:$0xff] %v9794_v54 }
 0x1e4   : > { %7799 = vmatmul.mubr.f32.gmra.mrb[26].mxu0 %v10232_v0  ;;  %239 = vst [vmem:[#allocation2 + $0x70] sm:$0x3] %v9794_v54  ;;  %240 = vst [vmem:[#allocation2 + $0x78] sm:$0xff] %v9794_v54  ;;  %v8979_v0 = vpack.c.bf16 %v6254_v53, %v10766_v44  ;;  %v6179_v44 = vld [vmem:[%s9863_s14 + $0x159] sm:$0xff] }
 0x1e5   : > { %7801 = vmatprep.mubr.f32.mxu0 %v10483_v23  ;;  %241 = vst [vmem:[#allocation2 + $0x80] sm:$0xff] %v9794_v54  ;;  %242 = vst [vmem:[#allocation2 + $0x88] sm:$0x3] %v9794_v54  ;;  %v6239_v23 = vld [vmem:[%s11906_s1 + $0x428] sm:$0xff]  ;;  %v6184_v53 = vld [vmem:[%s9863_s14 + $0x199] sm:$0xff] }
 0x1e6   : > { %243 = vst [vmem:[#allocation2 + $0x90] sm:$0xff] %v9794_v54  ;;  %244 = vst [vmem:[#allocation2 + $0x98] sm:$0xff] %v9794_v54  ;;  %v8951_v36 = vpack.c.bf16 %v6239_v23, %v6238_v63  ;;  %8980 = vmatprep.subr.bf16.mxu1 %v8979_v0  ;;  %v6203_v63 = vld [vmem:[%s9863_s14 + $0x3a] sm:$0xff]  ;;  %v6205_v23 = vld [vmem:[%s9863_s14 + $0x52] sm:$0xff] }
 0x1e7   : > { %245 = vst [vmem:[#allocation2 + $0xa0] sm:$0x3] %v9794_v54  ;;  %246 = vst [vmem:[#allocation2 + $0xa8] sm:$0xff] %v9794_v54  ;;  %8982 = vmatpush3.bf16.msra.mxu1 %v8979_v0  ;;  %v6204_v0 = vld [vmem:[%s9863_s14 + $0x4a] sm:$0xff] }
 0x1e8   : > { %7802 = vmatmul.mubr.f32.gmra.mrb[28].mxu0 %v10488_v13  ;;  %247 = vst [vmem:[#allocation2 + $0xb0] sm:$0xff] %v9794_v54  ;;  %248 = vst [vmem:[#allocation2 + $0xb8] sm:$0x3] %v9794_v54  ;;  %v6255_v13 = vld [vmem:[%s11908_s3 + $0xa0] sm:$0xff] }
 0x1e9   : > { %7804 = vmatprep.mubr.f32.mxu0 %v6136_v25  ;;  %249 = vst [vmem:[#allocation2 + $0xc0] sm:$0xff] %v9794_v54  ;;  %250 = vst [vmem:[#allocation2 + $0xc8] sm:$0xff] %v9794_v54  ;;  %v8983_v12 = vpack.c.bf16 %v6256_v31, %v6255_v13  ;;  %v6172_v25 = vld [vmem:[%s9863_s14 + $0x109] sm:$0xff]  ;;  %v6208_v13 = vld [vmem:[%s9863_s14 + $0x7a] sm:$0xff] }
 0x1ea   : > { %251 = vst [vmem:[#allocation2 + $0xd0] sm:$0x3] %v9794_v54  ;;  %252 = vst [vmem:[#allocation2 + $0xd8] sm:$0xff] %v9794_v54  ;;  %v6209_v31 = vld [vmem:[%s9863_s14 + $0x82] sm:$0xff] }
 0x1eb   : > { %253 = vst [vmem:[#allocation2 + $0xe0] sm:$0xff] %v9794_v54  ;;  %254 = vst [vmem:[#allocation2 + $0xe8] sm:$0x3] %v9794_v54  ;;  %8984 = vmatprep.subr.bf16.mxu1 %v8983_v12 }
 0x1ec   : > { %7805 = vmatmul.mubr.f32.gmra.mrb[30].mxu0 %v6137_v29  ;;  %255 = vst [vmem:[#allocation2 + $0xf0] sm:$0xff] %v9794_v54  ;;  %256 = vst [vmem:[#allocation2 + $0xf8] sm:$0xff] %v9794_v54  ;;  %8986 = vmatpush3.bf16.msra.mxu1 %v8983_v12  ;;  %v6173_v29 = vld [vmem:[%s9863_s14 + $0x111] sm:$0xff]  ;;  %v6214_v12 = vld [vmem:[%s9863_s14 + $0xc2] sm:$0xff] }
 0x1ed   : > { %7839 = vmatprep.mubr.f32.mxu0 %v6154_v30  ;;  %257 = vst [vmem:[#allocation2 + $0x100] sm:$0x3] %v9794_v54  ;;  %258 = vst [vmem:[#allocation2 + $0x108] sm:$0xff] %v9794_v54  ;;  %8988 = vmatprep.subr.bf16.mxu1 %v8987_v50  ;;  %v6174_v30 = vld [vmem:[%s9863_s14 + $0x121] sm:$0xff] }
 0x1ee   : > { %259 = vst [vmem:[#allocation2 + $0x110] sm:$0xff] %v9794_v54  ;;  %260 = vst [vmem:[#allocation2 + $0x118] sm:$0x3] %v9794_v54 }
 0x1ef   : > { %261 = vst [vmem:[#allocation2 + $0x120] sm:$0xff] %v9794_v54  ;;  %262 = vst [vmem:[#allocation2 + $0x128] sm:$0xff] %v9794_v54 }
 0x1f0   : > { %263 = vst [vmem:[#allocation2 + $0x130] sm:$0x3] %v9794_v54  ;;  %264 = vst [vmem:[#allocation2 + $0x138] sm:$0xff] %v9794_v54  ;;  %7840 = vmatmul.mubr.f32.vlgmr.msra.gmra.mrb[0].mxu0 %v10769_v47  ;;  %8990 = vmatpush3.bf16.msra.mxu1 %v8987_v50  ;;  %v6180_v47 = vld [vmem:[%s9863_s14 + $0x169] sm:$0xff] }
 0x1f1   : > { %265 = vst [vmem:[#allocation2 + $0x140] sm:$0xff] %v9794_v54  ;;  %266 = vst [vmem:[#allocation2 + $0x148] sm:$0x3] %v9794_v54  ;;  %8946 = vmatpush3.bf16.msra.mxu0 %v10726_v24  ;;  %7842 = vmatprep.mubr.f32.mxu0 %v6156_v57  ;;  %v6171_v24 = vld [vmem:[%s9863_s14 + $0xf9] sm:$0xff]  ;;  %v6185_v57 = vld [vmem:[%s9863_s14 + $0x1a1] sm:$0xff] }
 0x1f2   : > { %267 = vst [vmem:[#allocation2 + $0x150] sm:$0xff] %v9794_v54  ;;  %268 = vst [vmem:[#allocation2 + $0x158] sm:$0xff] %v9794_v54  ;;  %8948 = vmatprep.subr.bf16.mxu0 %v8947_v62  ;;  %8992 = vmatprep.subr.bf16.mxu1 %v8991_v22  ;;  %v6222_v50 = vld [vmem:[%s9863_s14 + $0x122] sm:$0xff] }
 0x1f3   : > { %269 = vst [vmem:[#allocation2 + $0x160] sm:$0x3] %v9794_v54  ;;  %270 = vst [vmem:[#allocation2 + $0x168] sm:$0xff] %v9794_v54 }
 0x1f4   : > { %271 = vst [vmem:[#allocation2 + $0x170] sm:$0xff] %v9794_v54  ;;  %272 = vst [vmem:[#allocation2 + $0x178] sm:$0x3] %v9794_v54  ;;  %7843 = vmatmul.mubr.f32.gmra.mrb[2].mxu0 %v6157_v20  ;;  %8994 = vmatpush3.bf16.msra.mxu1 %v8991_v22  ;;  %v6210_v20 = vld [vmem:[%s9863_s14 + $0x92] sm:$0xff]  ;;  %v6232_v22 = vld [vmem:[%s9863_s14 + $0x19a] sm:$0xff] }
 0x1f5   : > { %273 = vst [vmem:[#allocation2 + $0x180] sm:$0xff] %v9794_v54  ;;  %274 = vst [vmem:[#allocation2 + $0x188] sm:$0xff] %v9794_v54  ;;  %7845 = vmatprep.mubr.f32.mxu0 %v6158_v35  ;;  %8950 = vmatpush3.bf16.msra.mxu0 %v8947_v62  ;;  %v6202_v62 = vld [vmem:[%s9863_s14 + $0x32] sm:$0xff]  ;;  %v6211_v35 = vld [vmem:[%s9863_s14 + $0x9a] sm:$0xff] }
 0x1f6   : > { %275 = vst [vmem:[#allocation2 + $0x190] sm:$0x3] %v9794_v54  ;;  %276 = vst [vmem:[#allocation2 + $0x198] sm:$0xff] %v9794_v54  ;;  %8952 = vmatprep.subr.bf16.mxu0 %v8951_v36  ;;  %8996 = vmatprep.subr.bf16.mxu1 %v8995_v8 }
 0x1f7   : > { %277 = vst [vmem:[#allocation2 + $0x1a0] sm:$0xff] %v9794_v54  ;;  %278 = vst [vmem:[#allocation2 + $0x1a8] sm:$0x3] %v9794_v54 }
 0x1f8   : > { %7846 = vmatmul.mubr.f32.gmra.mrb[4].mxu0 %v6159_v17  ;;  %8998 = vmatpush3.bf16.msra.mxu1 %v8995_v8  ;;  %v6218_v17 = vld [vmem:[%s9863_s14 + $0xf2] sm:$0xff]  ;;  %v3123_v8 = vld [vmem:[#allocation2 + $0x9] sm:$0xff] }
 0x1f9   : > { %7848 = vmatprep.mubr.f32.mxu0 %v6160_v45  ;;  %8954 = vmatpush3.bf16.msra.mxu0 %v8951_v36  ;;  %v6212_v36 = vld [vmem:[%s9863_s14 + $0xaa] sm:$0xff]  ;;  %v6219_v45 = vld [vmem:[%s9863_s14 + $0xfa] sm:$0xff] }
 0x1fa   : > { %8956 = vmatprep.subr.bf16.mxu0 %v8955_v46 }
 0x1fc   : > { %7849 = vmatmul.mubr.f32.gmra.mrb[6].mxu0 %v6161_v56  ;;  %v6226_v56 = vld [vmem:[%s9863_s14 + $0x152] sm:$0xff] }
 0x1fd   : > { %7851 = vmatprep.mubr.f32.mxu0 %v6162_v61  ;;  %8958 = vmatpush3.bf16.msra.mxu0 %v8955_v46  ;;  %v6220_v46 = vld [vmem:[%s9863_s14 + $0x10a] sm:$0xff]  ;;  %v6227_v61 = vld [vmem:[%s9863_s14 + $0x15a] sm:$0xff] }
 0x1fe   : > { %8960 = vmatprep.subr.bf16.mxu0 %v8959_v1 }
 0x200   : > { %7852 = vmatmul.mubr.f32.gmra.mrb[8].mxu0 %v6163_v6  ;;  %v8999_v6 = vpack.c.bf16 %v6264_v28, %v6263_v5 }
 0x201   : > { %7854 = vmatprep.mubr.f32.mxu0 %v6164_v33  ;;  %8962 = vmatpush3.bf16.msra.mxu0 %v8959_v1  ;;  %v6228_v1 = vld [vmem:[%s9863_s14 + $0x16a] sm:$0xff] }
 0x202   : > { %8964 = vmatprep.subr.bf16.mxu0 %v8963_v34  ;;  %9000 = vmatprep.subr.bf16.mxu1 %v8999_v6 }
 0x203   : > { %9002 = vmatpush3.bf16.msra.mxu1 %v8999_v6 }
 0x204   : > { %7855 = vmatmul.mubr.f32.gmra.mrb[10].mxu0 %v6165_v10  ;;  %v9007_v10 = vpack.c.bf16 %v3107_v43, %v3106_v42 }
 0x205   : > { %7857 = vmatprep.mubr.f32.mxu0 %v6166_v49  ;;  %8966 = vmatpush3.bf16.msra.mxu0 %v8963_v34  ;;  %v3122_v34 = vld [vmem:[#allocation2 + $0x1] sm:$0xff]  ;;  %v3108_v49 = vld [vmem:[%s11908_s3 + $0x10] sm:$0xff] }
 0x206   : > { %8968 = vmatprep.subr.bf16.mxu0 %v8967_v52  ;;  %7999 = vmatprep.mubr.f32.mxu1 %v3122_v34 }
 0x208   : > { %7858 = vmatmul.mubr.f32.gmra.mrb[12].mxu0 %v6167_v59  ;;  %v3111_v59 = vld [vmem:[%s11908_s3 + $0x28] sm:$0xff] }
 0x209   : > { %7860 = vmatprep.mubr.f32.mxu0 %v6168_v15  ;;  %8970 = vmatpush3.bf16.msra.mxu0 %v8967_v52  ;;  %v3109_v52 = vld [vmem:[%s11908_s3 + $0x18] sm:$0xff]  ;;  %v9015_v15 = vpack.c.bf16 %v3111_v59, %v3110_v58 }
 0x20a   : > { %8972 = vmatprep.subr.bf16.mxu0 %v8971_v3  ;;  %v9011_v11 = vpack.c.bf16 %v3109_v52, %v3108_v49 }
 0x20c   : > { %7861 = vmatmul.mubr.f32.gmra.mrb[14].mxu0 %v6169_v19  ;;  %v3113_v19 = vld [vmem:[%s11908_s3 + $0x38] sm:$0xff] }
 0x20d   : > { %7863 = vmatprep.mubr.f32.mxu0 %v6170_v16  ;;  %8974 = vmatpush3.bf16.msra.mxu0 %v8971_v3  ;;  %v3112_v3 = vld [vmem:[%s11908_s3 + $0x30] sm:$0xff] }
 0x20e   : > { %v9019_v16 = vpack.c.bf16 %v3113_v19, %v3112_v3 }
 0x210   : > { %7864 = vmatmul.mubr.f32.gmra.mrb[16].mxu0 %v6171_v24  ;;  %v3114_v24 = vld [vmem:[%s11908_s3 + $0x40] sm:$0xff] }
 0x211   : > { %7866 = vmatprep.mubr.f32.mxu0 %v6172_v25  ;;  %v3115_v25 = vld [vmem:[%s11908_s3 + $0x48] sm:$0xff] }
 0x214   : > { %7867 = vmatmul.mubr.f32.gmra.mrb[18].mxu0 %v6173_v29  ;;  %v9023_v29 = vpack.c.bf16 %v3115_v25, %v3114_v24 }
 0x215   : > { %7869 = vmatprep.mubr.f32.mxu0 %v6174_v30  ;;  %v3116_v30 = vld [vmem:[%s11908_s3 + $0x50] sm:$0xff] }
 0x218   : > { %7870 = vmatmul.mubr.f32.gmra.mrb[20].mxu0 %v6175_v32  ;;  %v3117_v32 = vld [vmem:[%s11908_s3 + $0x58] sm:$0xff] }
 0x219   : > { %7872 = vmatprep.mubr.f32.mxu0 %v6176_v37  ;;  %v9027_v37 = vpack.c.bf16 %v3117_v32, %v3116_v30 }
 0x21c   : > { %7873 = vmatmul.mubr.f32.gmra.mrb[22].mxu0 %v6177_v38  ;;  %v3118_v38 = vld [vmem:[%s11908_s3 + $0x60] sm:$0xff] }
 0x21d   : > { %7875 = vmatprep.mubr.f32.mxu0 %v6178_v39  ;;  %v3119_v39 = vld [vmem:[%s11908_s3 + $0x68] sm:$0xff] }
 0x220   : > { %7876 = vmatmul.mubr.f32.gmra.mrb[24].mxu0 %v6179_v44  ;;  %v9031_v44 = vpack.c.bf16 %v3119_v39, %v3118_v38 }
 0x221   : > { %7878 = vmatprep.mubr.f32.mxu0 %v6180_v47  ;;  %v3120_v47 = vld [vmem:[%s11908_s3 + $0x70] sm:$0xff] }
 0x224   : > { %7879 = vmatmul.mubr.f32.gmra.mrb[26].mxu0 %v6181_v48  ;;  %v3121_v48 = vld [vmem:[%s11908_s3 + $0x78] sm:$0xff] }
 0x225   : > { %7881 = vmatprep.mubr.f32.mxu0 %v10569_v7  ;;  %v6206_v7 = vld [vmem:[%s9863_s14 + $0x62] sm:$0xff] }
 0x228   : > { %7882 = vmatmul.mubr.f32.gmra.mrb[28].mxu0 %v10574_v9  ;;  %v6207_v9 = vld [vmem:[%s9863_s14 + $0x6a] sm:$0xff] }
 0x229   : > { %7884 = vmatprep.mubr.f32.mxu0 %v6184_v53  ;;  %v9035_v53 = vpack.c.bf16 %v3121_v48, %v3120_v47 }
 0x22c   : > { %7885 = vmatmul.mubr.f32.gmra.mrb[30].mxu0 %v6185_v57  ;;  %v6267_v57 = vld [vmem:[%s11908_s3 + $0x100] sm:$0xff] }
 0x22d   : > { %7919 = vmatprep.mubr.f32.mxu0 %v6202_v62  ;;  %v6268_v62 = vld [vmem:[%s11908_s3 + $0x108] sm:$0xff] }
 0x230   : > { %7920 = vmatmul.mubr.f32.vlgmr.msra.gmra.mrb[0].mxu0 %v6203_v63  ;;  %v11025_v63 = vpack.c.bf16 %v6268_v62, %v6267_v57 }
 0x231   : > { %7922 = vmatprep.mubr.f32.mxu0 %v6204_v0  ;;  %v11031_v0 = vld [vmem:[%s11907_s2] ss:$0 sm:$0xff] }
 0x234   : > { %7923 = vmatmul.mubr.f32.gmra.mrb[2].mxu0 %v6205_v23 }
 0x235   : > { %7925 = vmatprep.mubr.f32.mxu0 %v6206_v7 }
 0x238   : > { %7926 = vmatmul.mubr.f32.gmra.mrb[4].mxu0 %v6207_v9 }
 0x239   : > { %7928 = vmatprep.mubr.f32.mxu0 %v6208_v13 }
 0x23c   : > { %7929 = vmatmul.mubr.f32.gmra.mrb[6].mxu0 %v6209_v31 }
 0x23d   : > { %7931 = vmatprep.mubr.f32.mxu0 %v6210_v20 }
 0x240   : > { %7932 = vmatmul.mubr.f32.gmra.mrb[8].mxu0 %v6211_v35 }
 0x241   : > { %7934 = vmatprep.mubr.f32.mxu0 %v6212_v36 }
 0x244   : > { %7935 = vmatmul.mubr.f32.gmra.mrb[10].mxu0 %v6213_v26 }
 0x245   : > { %7937 = vmatprep.mubr.f32.mxu0 %v6214_v12 }
 0x248   : > { %7938 = vmatmul.mubr.f32.gmra.mrb[12].mxu0 %v6215_v40 }
 0x249   : > { %7940 = vmatprep.mubr.f32.mxu0 %v6216_v41 }
 0x24c   : > { %7941 = vmatmul.mubr.f32.gmra.mrb[14].mxu0 %v6217_v27 }
 0x24d   : > { %7943 = vmatprep.mubr.f32.mxu0 %v6218_v17 }
 0x250   : > { %7944 = vmatmul.mubr.f32.gmra.mrb[16].mxu0 %v6219_v45 }
 0x251   : > { %7946 = vmatprep.mubr.f32.mxu0 %v6220_v46 }
 0x254   : > { %7947 = vmatmul.mubr.f32.gmra.mrb[18].mxu0 %v6221_v21 }
 0x255   : > { %7949 = vmatprep.mubr.f32.mxu0 %v6222_v50 }
 0x258   : > { %7950 = vmatmul.mubr.f32.gmra.mrb[20].mxu0 %v6223_v51 }
 0x259   : > { %7952 = vmatprep.mubr.f32.mxu0 %v6224_v18 }
 0x25c   : > { %7953 = vmatmul.mubr.f32.gmra.mrb[22].mxu0 %v6225_v55 }
 0x25d   : > { %7955 = vmatprep.mubr.f32.mxu0 %v6226_v56 }
 0x260   : > { %7956 = vmatmul.mubr.f32.gmra.mrb[24].mxu0 %v6227_v61 }
 0x261   : > { %7958 = vmatprep.mubr.f32.mxu0 %v6228_v1 }
 0x264   : > { %7959 = vmatmul.mubr.f32.gmra.mrb[26].mxu0 %v6229_v2 }
 0x265   : > { %7961 = vmatprep.mubr.f32.mxu0 %v10655_v14  ;;  %v6265_v14 = vld [vmem:[%s11908_s3 + $0xf0] sm:$0xff] }
 0x268   : > { %7962 = vmatmul.mubr.f32.gmra.mrb[28].mxu0 %v10660_v60  ;;  %v6266_v60 = vld [vmem:[%s11908_s3 + $0xf8] sm:$0xff] }
 0x269   : > { %7964 = vmatprep.mubr.f32.mxu0 %v6232_v22  ;;  %v9003_v33 = vpack.c.bf16 %v6266_v60, %v6265_v14 }
 0x26b   : > { %9004 = vmatprep.subr.bf16.mxu1 %v9003_v33 }
 0x26c   : > { %7965 = vmatmul.mubr.f32.gmra.mrb[30].mxu0 %v6233_v4  ;;  %9006 = vmatpush3.bf16.msra.mxu1 %v9003_v33 }
 0x26d   : > { %9008 = vmatprep.subr.bf16.mxu1 %v9007_v10 }
 0x26f   : > { %8000 = vmatmul.mubr.f32.vlgmr.msra.gmra.mrb[0].mxu1 %v3123_v8 }
 0x270   : > { %9010 = vmatpush3.bf16.msra.mxu1 %v9007_v10 }
 0x271   : > { %9012 = vmatprep.subr.bf16.mxu1 %v9011_v11 }
 0x274   : > { %9014 = vmatpush3.bf16.msra.mxu1 %v9011_v11 }
 0x275   : > { %9016 = vmatprep.subr.bf16.mxu1 %v9015_v15 }
 0x278   : > { %9018 = vmatpush3.bf16.msra.mxu1 %v9015_v15 }
 0x279   : > { %9020 = vmatprep.subr.bf16.mxu1 %v9019_v16 }
 0x27c   : > { %9022 = vmatpush3.bf16.msra.mxu1 %v9019_v16 }
 0x27d   : > { %9024 = vmatprep.subr.bf16.mxu1 %v9023_v29 }
 0x280   : > { %9026 = vmatpush3.bf16.msra.mxu1 %v9023_v29 }
 0x281   : > { %9028 = vmatprep.subr.bf16.mxu1 %v9027_v37 }
 0x284   : > { %9030 = vmatpush3.bf16.msra.mxu1 %v9027_v37 }
 0x285   : > { %9032 = vmatprep.subr.bf16.mxu1 %v9031_v44 }
 0x288   : > { %9034 = vmatpush3.bf16.msra.mxu1 %v9031_v44 }
 0x289   : > { %9036 = vmatprep.subr.bf16.mxu1 %v9035_v53 }
 0x28c   : > { %9038 = vmatpush3.bf16.msra.mxu1 %v9035_v53 }
 0x28d   : > { %9040 = vmatprep.subr.bf16.mxu1 %v11025_v63 }
 0x303   : > { %v7921_v23 = vpop.f32.mrb[0].mxu0 }
 0x304   : > { %v2978_v7 = vadd.f32 %v7921_v23, %v11031_v0  ;;  %v2779_v9 = vpop.f32.mrb[1].mxu0 }
 0x305   : > { %v2977_v13 = vadd.f32 %v11031_v0, %v2779_v9 }
 0x306   : > { %v3010_v31 = vmax.f32 %v2978_v7, 0.0 }
 0x307   : > { %v3009_v20 = vmax.f32 %v2977_v13, 0.0  ;;  %v7924_v35 = vpop.f32.mrb[2].mxu0 }
 0x308   : > { %3043 = vst [vmem:[#allocation2 + $0x21] sm:$0xff] %v3010_v31  ;;  %v2980_v36 = vadd.f32 %v7924_v35, %v11031_v0  ;;  %v2789_v26 = vpop.f32.mrb[3].mxu0 }
 0x309   : > { %3042 = vst [vmem:[#allocation2 + $0x19] sm:$0xff] %v3009_v20  ;;  %v2979_v12 = vadd.f32 %v11031_v0, %v2789_v26  ;;  %8002 = vmatprep.mubr.f32.mxu1 %v3009_v20 }
 0x30a   : > { %v3012_v40 = vmax.f32 %v2980_v36, 0.0  ;;  %8003 = vmatmul.mubr.f32.gmra.mrb[2].mxu1 %v3010_v31 }
 0x30b   : > { %v3011_v41 = vmax.f32 %v2979_v12, 0.0  ;;  %v7927_v27 = vpop.f32.mrb[4].mxu0 }
 0x30c   : > { %3045 = vst [vmem:[#allocation2 + $0x39] sm:$0xff] %v3012_v40  ;;  %v2982_v17 = vadd.f32 %v7927_v27, %v11031_v0  ;;  %v2799_v45 = vpop.f32.mrb[5].mxu0 }
 0x30d   : > { %3044 = vst [vmem:[#allocation2 + $0x31] sm:$0xff] %v3011_v41  ;;  %v2981_v46 = vadd.f32 %v11031_v0, %v2799_v45  ;;  %8005 = vmatprep.mubr.f32.mxu1 %v3011_v41 }
 0x30e   : > { %v3014_v21 = vmax.f32 %v2982_v17, 0.0  ;;  %8006 = vmatmul.mubr.f32.gmra.mrb[4].mxu1 %v3012_v40 }
 0x30f   : > { %v3013_v50 = vmax.f32 %v2981_v46, 0.0  ;;  %v7930_v51 = vpop.f32.mrb[6].mxu0 }
 0x310   : > { %3047 = vst [vmem:[#allocation2 + $0x51] sm:$0xff] %v3014_v21  ;;  %v2984_v18 = vadd.f32 %v7930_v51, %v11031_v0  ;;  %v2809_v55 = vpop.f32.mrb[7].mxu0 }
 0x311   : > { %3046 = vst [vmem:[#allocation2 + $0x49] sm:$0xff] %v3013_v50  ;;  %v2983_v56 = vadd.f32 %v11031_v0, %v2809_v55  ;;  %8008 = vmatprep.mubr.f32.mxu1 %v3013_v50 }
 0x312   : > { %v3016_v61 = vmax.f32 %v2984_v18, 0.0  ;;  %8009 = vmatmul.mubr.f32.gmra.mrb[6].mxu1 %v3014_v21 }
 0x313   : > { %v3015_v1 = vmax.f32 %v2983_v56, 0.0  ;;  %v7933_v2 = vpop.f32.mrb[8].mxu0 }
 0x314   : > { %3049 = vst [vmem:[#allocation2 + $0x69] sm:$0xff] %v3016_v61  ;;  %v2986_v22 = vadd.f32 %v7933_v2, %v11031_v0  ;;  %v2819_v4 = vpop.f32.mrb[9].mxu0 }
 0x315   : > { %3048 = vst [vmem:[#allocation2 + $0x61] sm:$0xff] %v3015_v1  ;;  %v2985_v5 = vadd.f32 %v11031_v0, %v2819_v4  ;;  %8011 = vmatprep.mubr.f32.mxu1 %v3015_v1 }
 0x316   : > { %v3018_v28 = vmax.f32 %v2986_v22, 0.0  ;;  %8012 = vmatmul.mubr.f32.gmra.mrb[8].mxu1 %v3016_v61 }
 0x317   : > { %v3017_v6 = vmax.f32 %v2985_v5, 0.0  ;;  %v7936_v14 = vpop.f32.mrb[10].mxu0 }
 0x318   : > { %3051 = vst [vmem:[#allocation2 + $0x81] sm:$0xff] %v3018_v28  ;;  %v2988_v60 = vadd.f32 %v7936_v14, %v11031_v0  ;;  %v2829_v33 = vpop.f32.mrb[11].mxu0 }
 0x319   : > { %3050 = vst [vmem:[#allocation2 + $0x79] sm:$0xff] %v3017_v6  ;;  %v2987_v34 = vadd.f32 %v11031_v0, %v2829_v33  ;;  %8014 = vmatprep.mubr.f32.mxu1 %v3017_v6 }
 0x31a   : > { %v3020_v8 = vmax.f32 %v2988_v60, 0.0  ;;  %8015 = vmatmul.mubr.f32.gmra.mrb[10].mxu1 %v3018_v28 }
 0x31b   : > { %v11045_v42 = vmax.f32 %v2987_v34, 0.0  ;;  %v7939_v43 = vpop.f32.mrb[12].mxu0  ;;  %v6269_v34 = vld [vmem:[%s11908_s3 + $0x110] sm:$0xff] }
 0x31c   : > { %3053 = vst [vmem:[#allocation2 + $0x99] sm:$0xff] %v3020_v8  ;;  %v2990_v10 = vadd.f32 %v7939_v43, %v11031_v0  ;;  %v2839_v49 = vpop.f32.mrb[13].mxu0 }
 0x31d   : > { %3052 = vst [vmem:[#allocation2 + $0x91] sm:$0xff] %v11045_v42  ;;  %v2989_v52 = vadd.f32 %v11031_v0, %v2839_v49  ;;  %8017 = vmatprep.mubr.f32.mxu1 %v11045_v42  ;;  %v6271_v49 = vld [vmem:[%s11908_s3 + $0x120] sm:$0xff] }
 0x31e   : > { %v11051_v11 = vmax.f32 %v2990_v10, 0.0  ;;  %8018 = vmatmul.mubr.f32.gmra.mrb[12].mxu1 %v3020_v8  ;;  %v6270_v8 = vld [vmem:[%s11908_s3 + $0x118] sm:$0xff] }
 0x31f   : > { %v11053_v58 = vmax.f32 %v2989_v52, 0.0  ;;  %v7942_v59 = vpop.f32.mrb[14].mxu0  ;;  %v6272_v52 = vld [vmem:[%s11908_s3 + $0x128] sm:$0xff] }
 0x320   : > { %3055 = vst [vmem:[#allocation2 + $0xb1] sm:$0xff] %v11051_v11  ;;  %v2992_v15 = vadd.f32 %v7942_v59, %v11031_v0  ;;  %v2849_v3 = vpop.f32.mrb[15].mxu0  ;;  %v11165_v59 = vld [vmem:[#allocation2 + $0x18] sm:$0xff] }
 0x321   : > { %3054 = vst [vmem:[#allocation2 + $0xa9] sm:$0xff] %v11053_v58  ;;  %v2991_v19 = vadd.f32 %v11031_v0, %v2849_v3  ;;  %8020 = vmatprep.mubr.f32.mxu1 %v11053_v58  ;;  %v11169_v3 = vld [vmem:[#allocation2 + $0x20] sm:$0xff] }
 0x322   : > { %v11060_v16 = vmax.f32 %v2992_v15, 0.0  ;;  %8021 = vmatmul.mubr.f32.gmra.mrb[14].mxu1 %v11051_v11  ;;  %v9047_v15 = vpack.c.bf16 %v6272_v52, %v6271_v49 }
 0x323   : > { %v11063_v24 = vmax.f32 %v2991_v19, 0.0  ;;  %v7945_v25 = vpop.f32.mrb[16].mxu0  ;;  %v6273_v19 = vld [vmem:[%s11908_s3 + $0x130] sm:$0xff] }
 0x324   : > { %3057 = vst [vmem:[#allocation2 + $0xc9] sm:$0xff] %v11060_v16  ;;  %v2994_v29 = vadd.f32 %v7945_v25, %v11031_v0  ;;  %v2859_v30 = vpop.f32.mrb[17].mxu0  ;;  %v6274_v25 = vld [vmem:[%s11908_s3 + $0x138] sm:$0xff] }
 0x325   : > { %3056 = vst [vmem:[#allocation2 + $0xc1] sm:$0xff] %v11063_v24  ;;  %v2993_v32 = vadd.f32 %v11031_v0, %v2859_v30  ;;  %8023 = vmatprep.mubr.f32.mxu1 %v11063_v24  ;;  %v6275_v30 = vld [vmem:[%s11908_s3 + $0x140] sm:$0xff] }
 0x326   : > { %v11070_v37 = vmax.f32 %v2994_v29, 0.0  ;;  %8024 = vmatmul.mubr.f32.gmra.mrb[16].mxu1 %v11060_v16  ;;  %v11181_v29 = vld [vmem:[#allocation2 + $0x38] sm:$0xff] }
 0x327   : > { %v11073_v38 = vmax.f32 %v2993_v32, 0.0  ;;  %v7948_v39 = vpop.f32.mrb[18].mxu0  ;;  %v6276_v32 = vld [vmem:[%s11908_s3 + $0x148] sm:$0xff] }
 0x328   : > { %3059 = vst [vmem:[#allocation2 + $0xe1] sm:$0xff] %v11070_v37  ;;  %v2996_v44 = vadd.f32 %v7948_v39, %v11031_v0  ;;  %v2869_v47 = vpop.f32.mrb[19].mxu0  ;;  %v11190_v39 = vld [vmem:[#allocation2 + $0x48] sm:$0xff] }
 0x329   : > { %3058 = vst [vmem:[#allocation2 + $0xd9] sm:$0xff] %v11073_v38  ;;  %v2995_v48 = vadd.f32 %v11031_v0, %v2869_v47  ;;  %8026 = vmatprep.mubr.f32.mxu1 %v11073_v38  ;;  %v11193_v47 = vld [vmem:[#allocation2 + $0x50] sm:$0xff] }
 0x32a   : > { %v11080_v53 = vmax.f32 %v2996_v44, 0.0  ;;  %8027 = vmatmul.mubr.f32.gmra.mrb[18].mxu1 %v11070_v37  ;;  %v9055_v44 = vpack.c.bf16 %v6276_v32, %v6275_v30 }
 0x32b   : > { %v11083_v57 = vmax.f32 %v2995_v48, 0.0  ;;  %v7951_v62 = vpop.f32.mrb[20].mxu0  ;;  %v6277_v48 = vld [vmem:[%s11908_s3 + $0x150] sm:$0xff] }
 0x32c   : > { %3061 = vst [vmem:[#allocation2 + $0xf9] sm:$0xff] %v11080_v53  ;;  %v2998_v23 = vadd.f32 %v7951_v62, %v11031_v0  ;;  %v2879_v7 = vpop.f32.mrb[21].mxu0  ;;  %v6278_v62 = vld [vmem:[%s11908_s3 + $0x158] sm:$0xff] }
 0x32d   : > { %3060 = vst [vmem:[#allocation2 + $0xf1] sm:$0xff] %v11083_v57  ;;  %v2997_v9 = vadd.f32 %v11031_v0, %v2879_v7  ;;  %8029 = vmatprep.mubr.f32.mxu1 %v11083_v57  ;;  %v9059_v7 = vpack.c.bf16 %v6278_v62, %v6277_v48  ;;  %v3621_v48 = vld [vmem:[#allocation2 + $0x2] sm:$0xff] }
 0x32e   : > { %v11090_v13 = vmax.f32 %v2998_v23, 0.0  ;;  %8030 = vmatmul.mubr.f32.gmra.mrb[20].mxu1 %v11080_v53  ;;  %v11202_v23 = vld [vmem:[#allocation2 + $0x60] sm:$0xff] }
 0x32f   : > { %v11093_v31 = vmax.f32 %v2997_v9, 0.0  ;;  %v7954_v20 = vpop.f32.mrb[22].mxu0  ;;  %v11205_v9 = vld [vmem:[#allocation2 + $0x68] sm:$0xff] }
 0x330   : > { %3063 = vst [vmem:[#allocation2 + $0x111] sm:$0xff] %v11090_v13  ;;  %v3000_v35 = vadd.f32 %v7954_v20, %v11031_v0  ;;  %v2889_v36 = vpop.f32.mrb[23].mxu0  ;;  %v6279_v20 = vld [vmem:[%s11908_s3 + $0x160] sm:$0xff] }
 0x331   : > { %3062 = vst [vmem:[#allocation2 + $0x109] sm:$0xff] %v11093_v31  ;;  %v2999_v26 = vadd.f32 %v11031_v0, %v2889_v36  ;;  %8032 = vmatprep.mubr.f32.mxu1 %v11093_v31  ;;  %v11214_v36 = vld [vmem:[#allocation2 + $0x78] sm:$0xff] }
 0x332   : > { %v11100_v12 = vmax.f32 %v3000_v35, 0.0  ;;  %8033 = vmatmul.mubr.f32.gmra.mrb[22].mxu1 %v11090_v13  ;;  %v6280_v35 = vld [vmem:[%s11908_s3 + $0x168] sm:$0xff] }
 0x333   : > { %v11103_v40 = vmax.f32 %v2999_v26, 0.0  ;;  %v7957_v41 = vpop.f32.mrb[24].mxu0  ;;  %v9063_v26 = vpack.c.bf16 %v6280_v35, %v6279_v20  ;;  %v6286_v20 = vld [vmem:[%s11908_s3 + $0x198] sm:$0xff]  ;;  %v3622_v35 = vld [vmem:[#allocation2 + $0xa] sm:$0xff] }
 0x334   : > { %3065 = vst [vmem:[#allocation2 + $0x129] sm:$0xff] %v11100_v12  ;;  %v3002_v27 = vadd.f32 %v7957_v41, %v11031_v0  ;;  %v2899_v17 = vpop.f32.mrb[25].mxu0  ;;  %v11217_v41 = vld [vmem:[#allocation2 + $0x80] sm:$0xff] }
 0x335   : > { %3064 = vst [vmem:[#allocation2 + $0x121] sm:$0xff] %v11103_v40  ;;  %v3001_v45 = vadd.f32 %v11031_v0, %v2899_v17  ;;  %8035 = vmatprep.mubr.f32.mxu1 %v11103_v40  ;;  %v6282_v17 = vld [vmem:[%s11908_s3 + $0x178] sm:$0xff] }
 0x336   : > { %v11110_v46 = vmax.f32 %v3002_v27, 0.0  ;;  %8036 = vmatmul.mubr.f32.gmra.mrb[24].mxu1 %v11100_v12  ;;  %v6281_v27 = vld [vmem:[%s11908_s3 + $0x170] sm:$0xff] }
 0x337   : > { %v11113_v21 = vmax.f32 %v3001_v45, 0.0  ;;  %v7960_v50 = vpop.f32.mrb[26].mxu0  ;;  %v11226_v45 = vld [vmem:[#allocation2 + $0x90] sm:$0xff] }
 0x338   : > { %3067 = vst [vmem:[#allocation2 + $0x141] sm:$0xff] %v11110_v46  ;;  %v3004_v51 = vadd.f32 %v7960_v50, %v11031_v0  ;;  %v2909_v18 = vpop.f32.mrb[27].mxu0  ;;  %v9067_v50 = vpack.c.bf16 %v6282_v17, %v6281_v27  ;;  %v11262_v49 = vld [vmem:[#allocation2 + $0x108] sm:$0xff]  ;;  %v11265_v52 = vld [vmem:[#allocation2 + $0x110] sm:$0xff]  ;;  %v6287_v27 = vld [vmem:[%s11908_s3 + $0x1a0] sm:$0xff] }
 0x339   : > { %3066 = vst [vmem:[#allocation2 + $0x139] sm:$0xff] %v11113_v21  ;;  %v3003_v55 = vadd.f32 %v11031_v0, %v2909_v18  ;;  %8038 = vmatprep.mubr.f32.mxu1 %v11113_v21  ;;  %v6283_v18 = vld [vmem:[%s11908_s3 + $0x180] sm:$0xff]  ;;  %v6288_v17 = vld [vmem:[%s11908_s3 + $0x1a8] sm:$0xff] }
 0x33a   : > { %v11120_v56 = vmax.f32 %v3004_v51, 0.0  ;;  %8039 = vmatmul.mubr.f32.gmra.mrb[26].mxu1 %v11110_v46  ;;  %v11229_v51 = vld [vmem:[#allocation2 + $0x98] sm:$0xff] }
 0x33b   : > { %v11123_v61 = vmax.f32 %v3003_v55, 0.0  ;;  %v7963_v1 = vpop.f32.mrb[28].mxu0  ;;  %v6284_v55 = vld [vmem:[%s11908_s3 + $0x188] sm:$0xff] }
 0x33c   : > { %3069 = vst [vmem:[#allocation2 + $0x159] sm:$0xff] %v11120_v56  ;;  %v3006_v2 = vadd.f32 %v7963_v1, %v11031_v0  ;;  %v2919_v22 = vpop.f32.mrb[29].mxu0  ;;  %v11238_v1 = vld [vmem:[#allocation2 + $0xa8] sm:$0xff] }
 0x33d   : > { %3068 = vst [vmem:[#allocation2 + $0x151] sm:$0xff] %v11123_v61  ;;  %v3005_v4 = vadd.f32 %v11031_v0, %v2919_v22  ;;  %8041 = vmatprep.mubr.f32.mxu1 %v11123_v61  ;;  %v11241_v22 = vld [vmem:[#allocation2 + $0xb0] sm:$0xff] }
 0x33e   : > { %v11130_v5 = vmax.f32 %v3006_v2, 0.0  ;;  %8042 = vmatmul.mubr.f32.gmra.mrb[28].mxu1 %v11120_v56  ;;  %v9071_v2 = vpack.c.bf16 %v6284_v55, %v6283_v18  ;;  %v9079_v18 = vpack.c.bf16 %v6288_v17, %v6287_v27  ;;  %v11307_v55 = vld [vmem:[#allocation2 + $0x22] sm:$0xff] }
 0x33f   : > { %v11133_v28 = vmax.f32 %v3005_v4, 0.0  ;;  %v7966_v6 = vpop.f32.mrb[30].mxu0  ;;  %v11244_v4 = vld [vmem:[#allocation2 + $0xc0] sm:$0xff]  ;;  %v6292_v17 = vld [vmem:[%s11908_s3 + $0x1c8] sm:$0xff] }
 0x340   : > { %3071 = vst [vmem:[#allocation2 + $0x171] sm:$0xff] %v11130_v5  ;;  %v11137_v14 = vadd.f32 %v7966_v6, %v11031_v0  ;;  %v2929_v60 = vpop.f32.mrb[31].mxu0  ;;  %v11247_v6 = vld [vmem:[#allocation2 + $0xc8] sm:$0xff]  ;;  %v6291_v27 = vld [vmem:[%s11908_s3 + $0x1c0] sm:$0xff] }
 0x341   : > { %3070 = vst [vmem:[#allocation2 + $0x169] sm:$0xff] %v11133_v28  ;;  %v11141_v33 = vadd.f32 %v11031_v0, %v2929_v60  ;;  %8044 = vmatprep.mubr.f32.mxu1 %v11133_v28  ;;  %v9043_v0 = vpack.c.bf16 %v6270_v8, %v6269_v34  ;;  %v11250_v60 = vld [vmem:[#allocation2 + $0xd8] sm:$0xff]  ;;  %v11253_v34 = vld [vmem:[#allocation2 + $0xe0] sm:$0xff]  ;;  %v11256_v8 = vld [vmem:[#allocation2 + $0xf0] sm:$0xff] }
 0x342   : > { %v11944_v43 = vmax.f32 %v11137_v14, 0.0  ;;  %8045 = vmatmul.mubr.f32.gmra.mrb[30].mxu1 %v11130_v5 }
 0x343   : > { %v11945_v10 = vmax.f32 %v11141_v33, 0.0  ;;  %8079 = vmatprep.mubr.f32.mxu1 %v9794_v54 }
 0x344   : > { %3073 = vst [vmem:[#allocation2 + $0x189] sm:$0xff] %v11944_v43  ;;  %v11280_v30 = vld [vmem:[#allocation2 + $0x150] sm:$0xff]  ;;  %v11283_v32 = vld [vmem:[#allocation2 + $0x158] sm:$0xff] }
 0x345   : > { %3072 = vst [vmem:[#allocation2 + $0x181] sm:$0xff] %v11945_v10  ;;  %v11328_v43 = vld [vmem:[#allocation2 + $0x4a] sm:$0xff]  ;;  %v6294_v10 = vld [vmem:[%s11908_s3 + $0x1d8] sm:$0xff] }
 0x346   : > { %8080 = vmatmul.mubr.f32.vlgmr.msra.gmra.mrb[0].mxu1 %v9794_v54  ;;  %v11178_v54 = vld [vmem:[#allocation2 + $0x30] sm:$0xff]  ;;  %12048 = vst [vmem:[#allocation6_spill] sm:$0xff] %v11328_v43 }
 0x347   : > { %8082 = vmatprep.mubr.f32.mxu1 %v11165_v59  ;;  %9042 = vmatpush3.bf16.msra.mxu1 %v11025_v63  ;;  %v9051_v63 = vpack.c.bf16 %v6274_v25, %v6273_v19  ;;  %v11271_v19 = vld [vmem:[#allocation2 + $0x128] sm:$0xff]  ;;  %v11274_v25 = vld [vmem:[#allocation2 + $0x138] sm:$0xff] }
 0x348   : > { %9044 = vmatprep.subr.bf16.mxu1 %v9043_v0  ;;  %v11289_v62 = vld [vmem:[#allocation2 + $0x170] sm:$0xff] }
 0x349   : > { %12046 = vst [vmem:[#allocation4_spill] sm:$0xff] %v11289_v62 }
 0x34a   : > { %8083 = vmatmul.mubr.f32.gmra.mrb[2].mxu1 %v11169_v3 }
 0x34b   : > { %8085 = vmatprep.mubr.f32.mxu1 %v11178_v54  ;;  %9046 = vmatpush3.bf16.msra.mxu1 %v9043_v0  ;;  %v11259_v0 = vld [vmem:[#allocation2 + $0xf8] sm:$0xff] }
 0x34c   : > { %9048 = vmatprep.subr.bf16.mxu1 %v9047_v15 }
 0x34e   : > { %8086 = vmatmul.mubr.f32.gmra.mrb[4].mxu1 %v11181_v29 }
 0x34f   : > { %8088 = vmatprep.mubr.f32.mxu1 %v11190_v39  ;;  %9050 = vmatpush3.bf16.msra.mxu1 %v9047_v15  ;;  %v11268_v15 = vld [vmem:[#allocation2 + $0x120] sm:$0xff] }
 0x350   : > { %9052 = vmatprep.subr.bf16.mxu1 %v9051_v63 }
 0x352   : > { %8089 = vmatmul.mubr.f32.gmra.mrb[6].mxu1 %v11193_v47 }
 0x353   : > { %8091 = vmatprep.mubr.f32.mxu1 %v11202_v23  ;;  %9054 = vmatpush3.bf16.msra.mxu1 %v9051_v63  ;;  %v11277_v63 = vld [vmem:[#allocation2 + $0x140] sm:$0xff] }
 0x354   : > { %9056 = vmatprep.subr.bf16.mxu1 %v9055_v44 }
 0x356   : > { %8092 = vmatmul.mubr.f32.gmra.mrb[8].mxu1 %v11205_v9 }
 0x357   : > { %8094 = vmatprep.mubr.f32.mxu1 %v11214_v36  ;;  %9058 = vmatpush3.bf16.msra.mxu1 %v9055_v44  ;;  %v11286_v44 = vld [vmem:[#allocation2 + $0x168] sm:$0xff] }
 0x358   : > { %9060 = vmatprep.subr.bf16.mxu1 %v9059_v7  ;;  %12045 = vst [vmem:[#allocation3_spill] sm:$0xff] %v11286_v44 }
 0x35a   : > { %8095 = vmatmul.mubr.f32.gmra.mrb[10].mxu1 %v11217_v41 }
 0x35b   : > { %8097 = vmatprep.mubr.f32.mxu1 %v11226_v45  ;;  %9062 = vmatpush3.bf16.msra.mxu1 %v9059_v7  ;;  %v6285_v7 = vld [vmem:[%s11908_s3 + $0x190] sm:$0xff] }
 0x35c   : > { %9064 = vmatprep.subr.bf16.mxu1 %v9063_v26 }
 0x35e   : > { %8098 = vmatmul.mubr.f32.gmra.mrb[12].mxu1 %v11229_v51 }
 0x35f   : > { %8100 = vmatprep.mubr.f32.mxu1 %v11238_v1  ;;  %9066 = vmatpush3.bf16.msra.mxu1 %v9063_v26  ;;  %v9075_v26 = vpack.c.bf16 %v6286_v20, %v6285_v7  ;;  %v6290_v7 = vld [vmem:[%s11908_s3 + $0x1b8] sm:$0xff] }
 0x360   : > { %9068 = vmatprep.subr.bf16.mxu1 %v9067_v50  ;;  %v11316_v20 = vld [vmem:[#allocation2 + $0x32] sm:$0xff] }
 0x362   : > { %8101 = vmatmul.mubr.f32.gmra.mrb[14].mxu1 %v11241_v22 }
 0x363   : > { %8103 = vmatprep.mubr.f32.mxu1 %v11244_v4  ;;  %9070 = vmatpush3.bf16.msra.mxu1 %v9067_v50  ;;  %v11304_v50 = vld [vmem:[#allocation2 + $0x1a] sm:$0xff] }
 0x364   : > { %9072 = vmatprep.subr.bf16.mxu1 %v9071_v2 }
 0x366   : > { %8104 = vmatmul.mubr.f32.gmra.mrb[16].mxu1 %v11247_v6 }
 0x367   : > { %8106 = vmatprep.mubr.f32.mxu1 %v11250_v60 }
 0x36a   : > { %8107 = vmatmul.mubr.f32.gmra.mrb[18].mxu1 %v11253_v34 }
 0x36b   : > { %8109 = vmatprep.mubr.f32.mxu1 %v11256_v8 }
 0x36e   : > { %8110 = vmatmul.mubr.f32.gmra.mrb[20].mxu1 %v11259_v0 }
 0x36f   : > { %8112 = vmatprep.mubr.f32.mxu1 %v11262_v49 }
 0x372   : > { %8113 = vmatmul.mubr.f32.gmra.mrb[22].mxu1 %v11265_v52 }
 0x373   : > { %8115 = vmatprep.mubr.f32.mxu1 %v11268_v15 }
 0x376   : > { %8116 = vmatmul.mubr.f32.gmra.mrb[24].mxu1 %v11271_v19 }
 0x377   : > { %8118 = vmatprep.mubr.f32.mxu1 %v11274_v25 }
 0x37a   : > { %8119 = vmatmul.mubr.f32.gmra.mrb[26].mxu1 %v11277_v63 }
 0x37b   : > { %8121 = vmatprep.mubr.f32.mxu1 %v11280_v30 }
 0x37e   : > { %8122 = vmatmul.mubr.f32.gmra.mrb[28].mxu1 %v11283_v32 }
 0x37f   : > { %8124 = vmatprep.mubr.f32.mxu1 %v11286_v44 }
 0x382   : > { %8125 = vmatmul.mubr.f32.gmra.mrb[30].mxu1 %v11289_v62 }
 0x383   : > { %8159 = vmatprep.mubr.f32.mxu1 %v3621_v48  ;;  %v6289_v48 = vld [vmem:[%s11908_s3 + $0x1b0] sm:$0xff] }
 0x386   : > { %8160 = vmatmul.mubr.f32.vlgmr.msra.gmra.mrb[0].mxu1 %v3622_v35  ;;  %v11319_v35 = vld [vmem:[#allocation2 + $0x3a] sm:$0xff] }
 0x387   : > { %8162 = vmatprep.mubr.f32.mxu1 %v11304_v50  ;;  %9074 = vmatpush3.bf16.msra.mxu1 %v9071_v2  ;;  %v9083_v2 = vpack.c.bf16 %v6290_v7, %v6289_v48  ;;  %12047 = vst [vmem:[#allocation5_spill] sm:$0xff] %v11319_v35  ;;  %v11331_v48 = vld [vmem:[#allocation2 + $0x52] sm:$0xff] }
 0x388   : > { %9076 = vmatprep.subr.bf16.mxu1 %v9075_v26  ;;  %12049 = vst [vmem:[#allocation7_spill] sm:$0xff] %v11331_v48  ;;  %v6293_v7 = vld [vmem:[%s11908_s3 + $0x1d0] sm:$0xff] }
 0x38a   : > { %8163 = vmatmul.mubr.f32.gmra.mrb[2].mxu1 %v11307_v55 }
 0x38b   : > { %8165 = vmatprep.mubr.f32.mxu1 %v11316_v20  ;;  %9078 = vmatpush3.bf16.msra.mxu1 %v9075_v26  ;;  %v9087_v26 = vpack.c.bf16 %v6292_v17, %v6291_v27  ;;  %v11343_v27 = vld [vmem:[#allocation2 + $0x6a] sm:$0xff]  ;;  %v6295_v17 = vld [vmem:[%s11908_s3 + $0x1e0] sm:$0xff] }
 0x38c   : > { %9080 = vmatprep.subr.bf16.mxu1 %v9079_v18  ;;  %12051 = vst [vmem:[#allocation9_spill] sm:$0xff] %v11343_v27 }
 0x38e   : > { %8166 = vmatmul.mubr.f32.gmra.mrb[4].mxu1 %v11319_v35  ;;  %v11340_v35 = vld [vmem:[#allocation2 + $0x62] sm:$0xff] }
 0x38f   : > { %8168 = vmatprep.mubr.f32.mxu1 %v11328_v43  ;;  %9082 = vmatpush3.bf16.msra.mxu1 %v9079_v18  ;;  %12050 = vst [vmem:[#allocation8_spill] sm:$0xff] %v11340_v35  ;;  %v9091_v18 = vpack.c.bf16 %v6294_v10, %v6293_v7  ;;  %v6296_v43 = vld [vmem:[%s11908_s3 + $0x1e8] sm:$0xff]  ;;  %v6297_v7 = vld [vmem:[%s11908_s3 + $0x1f0] sm:$0xff] }
 0x390   : > { %9084 = vmatprep.subr.bf16.mxu1 %v9083_v2  ;;  %v11355_v10 = vld [vmem:[#allocation2 + $0x82] sm:$0xff] }
 0x391   : > { %12053 = vst [vmem:[#allocation11_spill] sm:$0xff] %v11355_v10 }
 0x392   : > { %8169 = vmatmul.mubr.f32.gmra.mrb[6].mxu1 %v11331_v48  ;;  %v11352_v48 = vld [vmem:[#allocation2 + $0x7a] sm:$0xff] }
 0x393   : > { %8171 = vmatprep.mubr.f32.mxu1 %v11340_v35  ;;  %9086 = vmatpush3.bf16.msra.mxu1 %v9083_v2  ;;  %12052 = vst [vmem:[#allocation10_spill] sm:$0xff] %v11352_v48  ;;  %v9095_v2 = vpack.c.bf16 %v6296_v43, %v6295_v17  ;;  %v6298_v35 = vld [vmem:[%s11908_s3 + $0x1f8] sm:$0xff]  ;;  %v6299_v17 = vld [vmem:[%s11908_s3 + $0x200] sm:$0xff] }
 0x394   : > { %9088 = vmatprep.subr.bf16.mxu1 %v9087_v26  ;;  %v11367_v43 = vld [vmem:[#allocation2 + $0x9a] sm:$0xff] }
 0x395   : > { %12055 = vst [vmem:[#allocation13_spill] sm:$0xff] %v11367_v43 }
 0x396   : > { %8172 = vmatmul.mubr.f32.gmra.mrb[8].mxu1 %v11343_v27  ;;  %v11364_v27 = vld [vmem:[#allocation2 + $0x92] sm:$0xff] }
 0x397   : > { %8174 = vmatprep.mubr.f32.mxu1 %v11352_v48  ;;  %9090 = vmatpush3.bf16.msra.mxu1 %v9087_v26  ;;  %12054 = vst [vmem:[#allocation12_spill] sm:$0xff] %v11364_v27  ;;  %v9099_v26 = vpack.c.bf16 %v6298_v35, %v6297_v7  ;;  %v6300_v48 = vld [vmem:[%s11908_s3 + $0x208] sm:$0xff]  ;;  %v11379_v35 = vld [vmem:[#allocation2 + $0xb2] sm:$0xff] }
 0x398   : > { %9092 = vmatprep.subr.bf16.mxu1 %v9091_v18  ;;  %v11382_v7 = vld [vmem:[#allocation2 + $0xc2] sm:$0xff] }
 0x399   : > { %12056 = vst [vmem:[#allocation14_spill] sm:$0xff] %v11382_v7 }
 0x39a   : > { %8175 = vmatmul.mubr.f32.gmra.mrb[10].mxu1 %v11355_v10  ;;  %v11376_v10 = vld [vmem:[#allocation2 + $0xaa] sm:$0xff] }
 0x39b   : > { %8177 = vmatprep.mubr.f32.mxu1 %v11364_v27  ;;  %9094 = vmatpush3.bf16.msra.mxu1 %v9091_v18  ;;  %v9103_v18 = vpack.c.bf16 %v6300_v48, %v6299_v17  ;;  %v11385_v27 = vld [vmem:[#allocation2 + $0xca] sm:$0xff]  ;;  %v11394_v48 = vld [vmem:[#allocation2 + $0xf2] sm:$0xff]  ;;  %v11397_v17 = vld [vmem:[#allocation2 + $0xfa] sm:$0xff] }
 0x39c   : > { %9096 = vmatprep.subr.bf16.mxu1 %v9095_v2  ;;  %12057 = vst [vmem:[#allocation15_spill] sm:$0xff] %v11385_v27  ;;  %12060 = vst [vmem:[#allocation18_spill] sm:$0xff] %v11394_v48 }
 0x39d   : > { %12061 = vst [vmem:[#allocation19_spill] sm:$0xff] %v11397_v17 }
 0x39e   : > { %8178 = vmatmul.mubr.f32.gmra.mrb[12].mxu1 %v11367_v43  ;;  %v11388_v43 = vld [vmem:[#allocation2 + $0xda] sm:$0xff] }
 0x39f   : > { %8180 = vmatprep.mubr.f32.mxu1 %v11376_v10  ;;  %9098 = vmatpush3.bf16.msra.mxu1 %v9095_v2  ;;  %12058 = vst [vmem:[#allocation16_spill] sm:$0xff] %v11388_v43  ;;  %v11391_v2 = vld [vmem:[#allocation2 + $0xe2] sm:$0xff] }
 0x3a0   : > { %9100 = vmatprep.subr.bf16.mxu1 %v9099_v26  ;;  %12059 = vst [vmem:[#allocation17_spill] sm:$0xff] %v11391_v2 }
 0x3a2   : > { %8181 = vmatmul.mubr.f32.gmra.mrb[14].mxu1 %v11379_v35 }
 0x3a3   : > { %8183 = vmatprep.mubr.f32.mxu1 %v11382_v7  ;;  %9102 = vmatpush3.bf16.msra.mxu1 %v9099_v26  ;;  %v11400_v26 = vld [vmem:[#allocation2 + $0x10a] sm:$0xff] }
 0x3a4   : > { %9104 = vmatprep.subr.bf16.mxu1 %v9103_v18  ;;  %12062 = vst [vmem:[#allocation20_spill] sm:$0xff] %v11400_v26 }
 0x3a6   : > { %8184 = vmatmul.mubr.f32.gmra.mrb[16].mxu1 %v11385_v27  ;;  %v11403_v27 = vld [vmem:[#allocation2 + $0x112] sm:$0xff] }
 0x3a7   : > { %8186 = vmatprep.mubr.f32.mxu1 %v11388_v43  ;;  %12063 = vst [vmem:[#allocation21_spill] sm:$0xff] %v11403_v27  ;;  %v11406_v43 = vld [vmem:[#allocation2 + $0x122] sm:$0xff] }
 0x3a8   : > { %12064 = vst [vmem:[#allocation22_spill] sm:$0xff] %v11406_v43 }
 0x3aa   : > { %8187 = vmatmul.mubr.f32.gmra.mrb[18].mxu1 %v11391_v2  ;;  %v11409_v2 = vld [vmem:[#allocation2 + $0x12a] sm:$0xff] }
 0x3ab   : > { %8189 = vmatprep.mubr.f32.mxu1 %v11394_v48  ;;  %12065 = vst [vmem:[#allocation23_spill] sm:$0xff] %v11409_v2  ;;  %v11412_v48 = vld [vmem:[#allocation2 + $0x13a] sm:$0xff] }
 0x3ac   : > { %12066 = vst [vmem:[#allocation24_spill] sm:$0xff] %v11412_v48 }
 0x3ae   : > { %8190 = vmatmul.mubr.f32.gmra.mrb[20].mxu1 %v11397_v17  ;;  %v11415_v17 = vld [vmem:[#allocation2 + $0x142] sm:$0xff] }
 0x3af   : > { %8192 = vmatprep.mubr.f32.mxu1 %v11400_v26  ;;  %12067 = vst [vmem:[#allocation25_spill] sm:$0xff] %v11415_v17  ;;  %v11418_v26 = vld [vmem:[#allocation2 + $0x152] sm:$0xff] }
 0x3b0   : > { %12068 = vst [vmem:[#allocation26_spill] sm:$0xff] %v11418_v26 }
 0x3b2   : > { %8193 = vmatmul.mubr.f32.gmra.mrb[22].mxu1 %v11403_v27  ;;  %v11421_v27 = vld [vmem:[#allocation2 + $0x15a] sm:$0xff] }
 0x3b3   : > { %8195 = vmatprep.mubr.f32.mxu1 %v11406_v43  ;;  %12069 = vst [vmem:[#allocation27_spill] sm:$0xff] %v11421_v27  ;;  %v11424_v43 = vld [vmem:[#allocation2 + $0x16a] sm:$0xff] }
 0x3b4   : > { %12070 = vst [vmem:[#allocation28_spill] sm:$0xff] %v11424_v43 }
 0x3b6   : > { %8196 = vmatmul.mubr.f32.gmra.mrb[24].mxu1 %v11409_v2  ;;  %v11427_v2 = vld [vmem:[#allocation2 + $0x172] sm:$0xff] }
 0x3b7   : > { %8198 = vmatprep.mubr.f32.mxu1 %v11412_v48  ;;  %v6301_v48 = vld [vmem:[%s11908_s3 + $0x210] sm:$0xff] }
 0x3ba   : > { %8199 = vmatmul.mubr.f32.gmra.mrb[26].mxu1 %v11415_v17  ;;  %v6302_v17 = vld [vmem:[%s11908_s3 + $0x218] sm:$0xff] }
 0x3bb   : > { %8201 = vmatprep.mubr.f32.mxu1 %v11418_v26  ;;  %v9107_v26 = vpack.c.bf16 %v6302_v17, %v6301_v48  ;;  %v6306_v48 = vld [vmem:[%s11908_s3 + $0x238] sm:$0xff]  ;;  %v6309_v17 = vld [vmem:[%s11908_s3 + $0x250] sm:$0xff] }
 0x3be   : > { %8202 = vmatmul.mubr.f32.gmra.mrb[28].mxu1 %v11421_v27  ;;  %v6303_v27 = vld [vmem:[%s11908_s3 + $0x220] sm:$0xff] }
 0x3bf   : > { %8204 = vmatprep.mubr.f32.mxu1 %v11424_v43  ;;  %v6304_v43 = vld [vmem:[%s11908_s3 + $0x228] sm:$0xff] }
 0x3c0   : > { %v9111_v7 = vpack.c.bf16 %v6304_v43, %v6303_v27  ;;  %v6308_v27 = vld [vmem:[%s11908_s3 + $0x248] sm:$0xff] }
 0x3c2   : > { %8205 = vmatmul.mubr.f32.gmra.mrb[30].mxu1 %v11427_v2 }
 0x3c3   : > { %8239 = vmatprep.mubr.f32.mxu1 %v11165_v59  ;;  %v6305_v59 = vld [vmem:[%s11908_s3 + $0x230] sm:$0xff] }
 0x3c6   : > { %8240 = vmatmul.mubr.f32.vlgmr.msra.gmra.mrb[0].mxu1 %v11169_v3  ;;  %v9115_v3 = vpack.c.bf16 %v6306_v48, %v6305_v59  ;;  %v6312_v48 = vld [vmem:[%s11908_s3 + $0x268] sm:$0xff] }
 0x3c7   : > { %8242 = vmatprep.mubr.f32.mxu1 %v11178_v54  ;;  %9106 = vmatpush3.bf16.msra.mxu1 %v9103_v18  ;;  %v6307_v18 = vld [vmem:[%s11908_s3 + $0x240] sm:$0xff] }
 0x3c8   : > { %9108 = vmatprep.subr.bf16.mxu1 %v9107_v26  ;;  %v9119_v43 = vpack.c.bf16 %v6308_v27, %v6307_v18  ;;  %v6314_v27 = vld [vmem:[%s11908_s3 + $0x278] sm:$0xff] }
 0x3ca   : > { %8243 = vmatmul.mubr.f32.gmra.mrb[2].mxu1 %v11181_v29 }
 0x3cb   : > { %8245 = vmatprep.mubr.f32.mxu1 %v11190_v39  ;;  %9110 = vmatpush3.bf16.msra.mxu1 %v9107_v26  ;;  %v6310_v26 = vld [vmem:[%s11908_s3 + $0x258] sm:$0xff] }
 0x3cc   : > { %9112 = vmatprep.subr.bf16.mxu1 %v9111_v7  ;;  %v9123_v59 = vpack.c.bf16 %v6310_v26, %v6309_v17  ;;  %v6316_v26 = vld [vmem:[%s11908_s3 + $0x288] sm:$0xff] }
 0x3ce   : > { %8246 = vmatmul.mubr.f32.gmra.mrb[4].mxu1 %v11193_v47 }
 0x3cf   : > { %8248 = vmatprep.mubr.f32.mxu1 %v11202_v23  ;;  %9114 = vmatpush3.bf16.msra.mxu1 %v9111_v7  ;;  %v6311_v7 = vld [vmem:[%s11908_s3 + $0x260] sm:$0xff] }
 0x3d0   : > { %9116 = vmatprep.subr.bf16.mxu1 %v9115_v3  ;;  %v9127_v18 = vpack.c.bf16 %v6312_v48, %v6311_v7  ;;  %v11511_v48 = vld [vmem:[#allocation2 + $0x188] sm:$0xff] }
 0x3d1   : > { %12072 = vst [vmem:[#allocation30_spill] sm:$0xff] %v11511_v48 }
 0x3d2   : > { %8249 = vmatmul.mubr.f32.gmra.mrb[6].mxu1 %v11205_v9 }
 0x3d3   : > { %8251 = vmatprep.mubr.f32.mxu1 %v11214_v36  ;;  %9118 = vmatpush3.bf16.msra.mxu1 %v9115_v3  ;;  %v6313_v3 = vld [vmem:[%s11908_s3 + $0x270] sm:$0xff] }
 0x3d4   : > { %9120 = vmatprep.subr.bf16.mxu1 %v9119_v43  ;;  %v9131_v17 = vpack.c.bf16 %v6314_v27, %v6313_v3  ;;  %v6318_v3 = vld [vmem:[%s11908_s3 + $0x298] sm:$0xff] }
 0x3d5   : > { %v4233_v27 = vld [vmem:[#allocation2 + $0x19] sm:$0xff] }
 0x3d6   : > { %8252 = vmatmul.mubr.f32.gmra.mrb[8].mxu1 %v11217_v41 }
 0x3d7   : > { %8254 = vmatprep.mubr.f32.mxu1 %v11226_v45  ;;  %9122 = vmatpush3.bf16.msra.mxu1 %v9119_v43  ;;  %v6315_v43 = vld [vmem:[%s11908_s3 + $0x280] sm:$0xff] }
 0x3d8   : > { %9124 = vmatprep.subr.bf16.mxu1 %v9123_v59  ;;  %v9135_v7 = vpack.c.bf16 %v6316_v26, %v6315_v43  ;;  %v4234_v43 = vld [vmem:[#allocation2 + $0x21] sm:$0xff] }
 0x3d9   : > { %v6319_v26 = vld [vmem:[%s11908_s3 + $0x2a0] sm:$0xff] }
 0x3da   : > { %8255 = vmatmul.mubr.f32.gmra.mrb[10].mxu1 %v11229_v51 }
 0x3db   : > { %8257 = vmatprep.mubr.f32.mxu1 %v11238_v1  ;;  %9126 = vmatpush3.bf16.msra.mxu1 %v9123_v59  ;;  %v11508_v59 = vld [vmem:[#allocation2 + $0x180] sm:$0xff] }
 0x3dc   : > { %9128 = vmatprep.subr.bf16.mxu1 %v9127_v18  ;;  %12071 = vst [vmem:[#allocation29_spill] sm:$0xff] %v11508_v59 }
 0x3de   : > { %8258 = vmatmul.mubr.f32.gmra.mrb[12].mxu1 %v11241_v22 }
 0x3df   : > { %8260 = vmatprep.mubr.f32.mxu1 %v11244_v4  ;;  %9130 = vmatpush3.bf16.msra.mxu1 %v9127_v18  ;;  %v6317_v18 = vld [vmem:[%s11908_s3 + $0x290] sm:$0xff] }
 0x3e0   : > { %9132 = vmatprep.subr.bf16.mxu1 %v9131_v17 }
 0x3e2   : > { %8261 = vmatmul.mubr.f32.gmra.mrb[14].mxu1 %v11247_v6 }
 0x3e3   : > { %8263 = vmatprep.mubr.f32.mxu1 %v11250_v60  ;;  %9134 = vmatpush3.bf16.msra.mxu1 %v9131_v17  ;;  %v9139_v17 = vpack.c.bf16 %v6318_v3, %v6317_v18  ;;  %v6321_v18 = vld [vmem:[%s11908_s3 + $0x2b0] sm:$0xff]  ;;  %v6322_v3 = vld [vmem:[%s11908_s3 + $0x2b8] sm:$0xff] }
 0x3e4   : > { %9136 = vmatprep.subr.bf16.mxu1 %v9135_v7 }
 0x3e6   : > { %8264 = vmatmul.mubr.f32.gmra.mrb[16].mxu1 %v11253_v34 }
 0x3e7   : > { %8266 = vmatprep.mubr.f32.mxu1 %v11256_v8 }
 0x3ea   : > { %8267 = vmatmul.mubr.f32.gmra.mrb[18].mxu1 %v11259_v0 }
 0x3eb   : > { %8269 = vmatprep.mubr.f32.mxu1 %v11262_v49 }
 0x3ee   : > { %8270 = vmatmul.mubr.f32.gmra.mrb[20].mxu1 %v11265_v52 }
 0x3ef   : > { %8272 = vmatprep.mubr.f32.mxu1 %v11268_v15 }
 0x3f2   : > { %8273 = vmatmul.mubr.f32.gmra.mrb[22].mxu1 %v11271_v19 }
 0x3f3   : > { %8275 = vmatprep.mubr.f32.mxu1 %v11274_v25 }
 0x3f6   : > { %8276 = vmatmul.mubr.f32.gmra.mrb[24].mxu1 %v11277_v63 }
 0x3f7   : > { %8278 = vmatprep.mubr.f32.mxu1 %v11280_v30 }
 0x3fa   : > { %8279 = vmatmul.mubr.f32.gmra.mrb[26].mxu1 %v11283_v32 }
 0x3fb   : > { %8281 = vmatprep.mubr.f32.mxu1 %v11286_v44  ;;  %v11529_v44 = vld [vmem:[#allocation2 + $0x39] sm:$0xff] }
 0x3fc   : > { %12073 = vst [vmem:[#allocation31_spill] sm:$0xff] %v11529_v44 }
 0x3fe   : > { %8282 = vmatmul.mubr.f32.gmra.mrb[28].mxu1 %v11289_v62  ;;  %v11526_v62 = vld [vmem:[#allocation2 + $0x31] sm:$0xff] }
 0x3ff   : > { %8284 = vmatprep.mubr.f32.mxu1 %v11508_v59  ;;  %v6320_v59 = vld [vmem:[%s11908_s3 + $0x2a8] sm:$0xff] }
 0x402   : > { %8285 = vmatmul.mubr.f32.gmra.mrb[30].mxu1 %v11511_v48  ;;  %v9143_v48 = vpack.c.bf16 %v6320_v59, %v6319_v26  ;;  %v11541_v59 = vld [vmem:[#allocation2 + $0x51] sm:$0xff]  ;;  %v6324_v26 = vld [vmem:[%s11908_s3 + $0x2c8] sm:$0xff] }
 0x403   : > { %8319 = vmatprep.mubr.f32.mxu1 %v4233_v27  ;;  %v11538_v27 = vld [vmem:[#allocation2 + $0x49] sm:$0xff]  ;;  %12075 = vst [vmem:[#allocation33_spill] sm:$0xff] %v11541_v59 }
 0x404   : > { %12074 = vst [vmem:[#allocation32_spill] sm:$0xff] %v11538_v27 }
 0x406   : > { %8320 = vmatmul.mubr.f32.vlgmr.msra.gmra.mrb[0].mxu1 %v4234_v43  ;;  %v6323_v43 = vld [vmem:[%s11908_s3 + $0x2c0] sm:$0xff] }
 0x407   : > { %8322 = vmatprep.mubr.f32.mxu1 %v11526_v62  ;;  %9138 = vmatpush3.bf16.msra.mxu1 %v9135_v7  ;;  %v9147_v7 = vpack.c.bf16 %v6322_v3, %v6321_v18  ;;  %v11553_v18 = vld [vmem:[#allocation2 + $0x69] sm:$0xff] }
 0x408   : > { %9140 = vmatprep.subr.bf16.mxu1 %v9139_v17  ;;  %v6325_v3 = vld [vmem:[%s11908_s3 + $0x2d0] sm:$0xff] }
 0x40a   : > { %8323 = vmatmul.mubr.f32.gmra.mrb[2].mxu1 %v11529_v44  ;;  %v11550_v44 = vld [vmem:[#allocation2 + $0x61] sm:$0xff] }
 0x40b   : > { %8325 = vmatprep.mubr.f32.mxu1 %v11538_v27  ;;  %9142 = vmatpush3.bf16.msra.mxu1 %v9139_v17  ;;  %12076 = vst [vmem:[#allocation34_spill] sm:$0xff] %v11550_v44  ;;  %v9151_v17 = vpack.c.bf16 %v6324_v26, %v6323_v43  ;;  %v6326_v27 = vld [vmem:[%s11908_s3 + $0x2d8] sm:$0xff]  ;;  %v11565_v43 = vld [vmem:[#allocation2 + $0x81] sm:$0xff] }
 0x40c   : > { %9144 = vmatprep.subr.bf16.mxu1 %v9143_v48  ;;  %v6327_v26 = vld [vmem:[%s11908_s3 + $0x2e0] sm:$0xff] }
 0x40e   : > { %8326 = vmatmul.mubr.f32.gmra.mrb[4].mxu1 %v11541_v59  ;;  %v11562_v59 = vld [vmem:[#allocation2 + $0x79] sm:$0xff] }
 0x40f   : > { %8328 = vmatprep.mubr.f32.mxu1 %v11550_v44  ;;  %9146 = vmatpush3.bf16.msra.mxu1 %v9143_v48  ;;  %12077 = vst [vmem:[#allocation35_spill] sm:$0xff] %v11562_v59  ;;  %v9155_v48 = vpack.c.bf16 %v6326_v27, %v6325_v3  ;;  %v6328_v44 = vld [vmem:[%s11908_s3 + $0x2e8] sm:$0xff]  ;;  %v6329_v27 = vld [vmem:[%s11908_s3 + $0x2f0] sm:$0xff]  ;;  %v6330_v3 = vld [vmem:[%s11908_s3 + $0x2f8] sm:$0xff] }
 0x410   : > { %9148 = vmatprep.subr.bf16.mxu1 %v9147_v7 }
 0x412   : > { %8329 = vmatmul.mubr.f32.gmra.mrb[6].mxu1 %v11553_v18 }
 0x413   : > { %8331 = vmatprep.mubr.f32.mxu1 %v11562_v59  ;;  %9150 = vmatpush3.bf16.msra.mxu1 %v9147_v7  ;;  %v9159_v59 = vpack.c.bf16 %v6328_v44, %v6327_v26  ;;  %v11575_v7 = vld [vmem:[#allocation2 + $0x99] sm:$0xff] }
 0x414   : > { %9152 = vmatprep.subr.bf16.mxu1 %v9151_v17  ;;  %v6331_v44 = vld [vmem:[%s11908_s3 + $0x300] sm:$0xff] }
 0x416   : > { %8332 = vmatmul.mubr.f32.gmra.mrb[8].mxu1 %v11565_v43 }
 0x417   : > { %8334 = vmatprep.mubr.f32.mxu1 %v11045_v42  ;;  %9154 = vmatpush3.bf16.msra.mxu1 %v9151_v17  ;;  %v9163_v42 = vpack.c.bf16 %v6330_v3, %v6329_v27  ;;  %v6332_v17 = vld [vmem:[%s11908_s3 + $0x308] sm:$0xff]  ;;  %v12086_v27 = vld [vmem:[#allocation11_spill] sm:$0xff]  ;;  %v12087_v3 = vld [vmem:[#allocation12_spill] sm:$0xff] }
 0x418   : > { %9156 = vmatprep.subr.bf16.mxu1 %v9155_v48  ;;  %v9167_v26 = vpack.c.bf16 %v6332_v17, %v6331_v44  ;;  %v6345_v44 = vld [vmem:[%s11908_s3 + $0x370] sm:$0xff]  ;;  %v6346_v17 = vld [vmem:[%s11908_s3 + $0x378] sm:$0xff] }
 0x41a   : > { %8335 = vmatmul.mubr.f32.gmra.mrb[10].mxu1 %v11575_v7 }
 0x41b   : > { %8337 = vmatprep.mubr.f32.mxu1 %v11053_v58  ;;  %9158 = vmatpush3.bf16.msra.mxu1 %v9155_v48  ;;  %v6333_v58 = vld [vmem:[%s11908_s3 + $0x310] sm:$0xff]  ;;  %v6344_v48 = vld [vmem:[%s11908_s3 + $0x368] sm:$0xff] }
 0x41c   : > { %9160 = vmatprep.subr.bf16.mxu1 %v9159_v59 }
 0x41e   : > { %8338 = vmatmul.mubr.f32.gmra.mrb[12].mxu1 %v11051_v11  ;;  %v12078_v11 = vmax.f32 %v11141_v33, 0.0  ;;  %v6342_v33 = vld [vmem:[%s11908_s3 + $0x358] sm:$0xff] }
 0x41f   : > { %8340 = vmatprep.mubr.f32.mxu1 %v11063_v24  ;;  %9162 = vmatpush3.bf16.msra.mxu1 %v9159_v59  ;;  %v12079_v24 = vmax.f32 %v11137_v14, 0.0  ;;  %v6341_v14 = vld [vmem:[%s11908_s3 + $0x350] sm:$0xff]  ;;  %v6343_v59 = vld [vmem:[%s11908_s3 + $0x360] sm:$0xff] }
 0x420   : > { %9164 = vmatprep.subr.bf16.mxu1 %v9163_v42 }
 0x422   : > { %8341 = vmatmul.mubr.f32.gmra.mrb[14].mxu1 %v11060_v16  ;;  %v6334_v16 = vld [vmem:[%s11908_s3 + $0x318] sm:$0xff] }
 0x423   : > { %8343 = vmatprep.mubr.f32.mxu1 %v11073_v38  ;;  %9166 = vmatpush3.bf16.msra.mxu1 %v9163_v42  ;;  %v6335_v38 = vld [vmem:[%s11908_s3 + $0x320] sm:$0xff]  ;;  %v9191_v42 = vpack.c.bf16 %v6344_v48, %v6343_v59  ;;  %v6354_v48 = vld [vmem:[%s11908_s3 + $0x3b8] sm:$0xff] }
 0x424   : > { %9168 = vmatprep.subr.bf16.mxu1 %v9167_v26 }
 0x426   : > { %8344 = vmatmul.mubr.f32.gmra.mrb[16].mxu1 %v11070_v37  ;;  %v9171_v37 = vpack.c.bf16 %v6334_v16, %v6333_v58  ;;  %v6347_v58 = vld [vmem:[%s11908_s3 + $0x380] sm:$0xff]  ;;  %v6348_v16 = vld [vmem:[%s11908_s3 + $0x388] sm:$0xff] }
 0x427   : > { %8346 = vmatprep.mubr.f32.mxu1 %v11083_v57 }
 0x42a   : > { %8347 = vmatmul.mubr.f32.gmra.mrb[18].mxu1 %v11080_v53  ;;  %v6336_v53 = vld [vmem:[%s11908_s3 + $0x328] sm:$0xff] }
 0x42b   : > { %8349 = vmatprep.mubr.f32.mxu1 %v11093_v31  ;;  %v9175_v57 = vpack.c.bf16 %v6336_v53, %v6335_v38  ;;  %v6338_v31 = vld [vmem:[%s11908_s3 + $0x338] sm:$0xff]  ;;  %v12090_v38 = vld [vmem:[#allocation15_spill] sm:$0xff]  ;;  %v12092_v53 = vld [vmem:[#allocation17_spill] sm:$0xff] }
 0x42e   : > { %8350 = vmatmul.mubr.f32.gmra.mrb[20].mxu1 %v11090_v13  ;;  %v6337_v13 = vld [vmem:[%s11908_s3 + $0x330] sm:$0xff] }
 0x42f   : > { %8352 = vmatprep.mubr.f32.mxu1 %v11103_v40  ;;  %v12081_v40 = vld [vmem:[#allocation6_spill] sm:$0xff] }
 0x432   : > { %8353 = vmatmul.mubr.f32.gmra.mrb[22].mxu1 %v11100_v12  ;;  %v12080_v12 = vld [vmem:[#allocation5_spill] sm:$0xff] }
 0x433   : > { %8355 = vmatprep.mubr.f32.mxu1 %v11113_v21  ;;  %v6339_v21 = vld [vmem:[%s11908_s3 + $0x340] sm:$0xff] }
 0x436   : > { %8356 = vmatmul.mubr.f32.gmra.mrb[24].mxu1 %v11110_v46  ;;  %v9179_v46 = vpack.c.bf16 %v6338_v31, %v6337_v13  ;;  %v12094_v13 = vld [vmem:[#allocation19_spill] sm:$0xff]  ;;  %v12095_v31 = vld [vmem:[#allocation20_spill] sm:$0xff] }
 0x437   : > { %8358 = vmatprep.mubr.f32.mxu1 %v11123_v61  ;;  %v12082_v61 = vld [vmem:[#allocation7_spill] sm:$0xff] }
 0x43a   : > { %8359 = vmatmul.mubr.f32.gmra.mrb[26].mxu1 %v11120_v56  ;;  %v6340_v56 = vld [vmem:[%s11908_s3 + $0x348] sm:$0xff] }
 0x43b   : > { %8361 = vmatprep.mubr.f32.mxu1 %v11133_v28  ;;  %v9183_v28 = vpack.c.bf16 %v6340_v56, %v6339_v21  ;;  %v12100_v21 = vld [vmem:[#allocation25_spill] sm:$0xff]  ;;  %v12101_v56 = vld [vmem:[#allocation26_spill] sm:$0xff] }
 0x43e   : > { %8362 = vmatmul.mubr.f32.gmra.mrb[28].mxu1 %v11130_v5  ;;  %v12083_v5 = vld [vmem:[#allocation8_spill] sm:$0xff] }
 0x43f   : > { %8364 = vmatprep.mubr.f32.mxu1 %v12078_v11  ;;  %v9195_v11 = vpack.c.bf16 %v6346_v17, %v6345_v44  ;;  %v6362_v44 = vld [vmem:[%s11908_s3 + $0x3f8] sm:$0xff]  ;;  %v6364_v17 = vld [vmem:[%s11908_s3 + $0x408] sm:$0xff] }
 0x442   : > { %8365 = vmatmul.mubr.f32.gmra.mrb[30].mxu1 %v12079_v24  ;;  %v12089_v24 = vld [vmem:[#allocation14_spill] sm:$0xff] }
 0x443   : > { %8399 = vmatprep.mubr.f32.mxu1 %v11304_v50  ;;  %v12084_v50 = vld [vmem:[#allocation9_spill] sm:$0xff] }
 0x446   : > { %8400 = vmatmul.mubr.f32.vlgmr.msra.gmra.mrb[0].mxu1 %v11307_v55  ;;  %v12085_v55 = vld [vmem:[#allocation10_spill] sm:$0xff] }
 0x447   : > { %8402 = vmatprep.mubr.f32.mxu1 %v11316_v20  ;;  %9170 = vmatpush3.bf16.msra.mxu1 %v9167_v26  ;;  %v9187_v20 = vpack.c.bf16 %v6342_v33, %v6341_v14  ;;  %v12088_v26 = vld [vmem:[#allocation13_spill] sm:$0xff]  ;;  %v11693_v14 = vld [vmem:[#allocation2 + $0x18a] sm:$0xff] }
 0x448   : > { %9172 = vmatprep.subr.bf16.mxu1 %v9171_v37  ;;  %v6349_v33 = vld [vmem:[%s11908_s3 + $0x390] sm:$0xff] }
 0x44a   : > { %8403 = vmatmul.mubr.f32.gmra.mrb[2].mxu1 %v12080_v12  ;;  %v12097_v12 = vld [vmem:[#allocation22_spill] sm:$0xff] }
 0x44b   : > { %8405 = vmatprep.mubr.f32.mxu1 %v12081_v40  ;;  %9174 = vmatpush3.bf16.msra.mxu1 %v9171_v37  ;;  %v9199_v37 = vpack.c.bf16 %v6348_v16, %v6347_v58  ;;  %v12098_v40 = vld [vmem:[#allocation23_spill] sm:$0xff]  ;;  %v6371_v16 = vld [vmem:[%s11908_s3 + $0x440] sm:$0xff] }
 0x44c   : > { %9176 = vmatprep.subr.bf16.mxu1 %v9175_v57 }
 0x44e   : > { %8406 = vmatmul.mubr.f32.gmra.mrb[4].mxu1 %v12082_v61  ;;  %v12102_v61 = vld [vmem:[#allocation27_spill] sm:$0xff] }
 0x44f   : > { %8408 = vmatprep.mubr.f32.mxu1 %v12083_v5  ;;  %9178 = vmatpush3.bf16.msra.mxu1 %v9175_v57  ;;  %v12093_v57 = vld [vmem:[#allocation18_spill] sm:$0xff]  ;;  %v12103_v5 = vld [vmem:[#allocation28_spill] sm:$0xff] }
 0x450   : > { %9180 = vmatprep.subr.bf16.mxu1 %v9179_v46 }
 0x452   : > { %8409 = vmatmul.mubr.f32.gmra.mrb[6].mxu1 %v12084_v50  ;;  %v6350_v50 = vld [vmem:[%s11908_s3 + $0x398] sm:$0xff] }
 0x453   : > { %8411 = vmatprep.mubr.f32.mxu1 %v12085_v55  ;;  %9182 = vmatpush3.bf16.msra.mxu1 %v9179_v46  ;;  %v12099_v46 = vld [vmem:[#allocation24_spill] sm:$0xff]  ;;  %v9203_v55 = vpack.c.bf16 %v6350_v50, %v6349_v33 }
 0x454   : > { %9184 = vmatprep.subr.bf16.mxu1 %v9183_v28  ;;  %v5168_v33 = vld [vmem:[#allocation2 + $0xf1] sm:$0xff]  ;;  %v5169_v50 = vld [vmem:[#allocation2 + $0xf9] sm:$0xff] }
 0x456   : > { %8412 = vmatmul.mubr.f32.gmra.mrb[8].mxu1 %v12086_v27  ;;  %v6356_v27 = vld [vmem:[%s11908_s3 + $0x3c8] sm:$0xff] }
 0x457   : > { %8414 = vmatprep.mubr.f32.mxu1 %v12087_v3  ;;  %9186 = vmatpush3.bf16.msra.mxu1 %v9183_v28  ;;  %v11690_v28 = vld [vmem:[#allocation2 + $0x182] sm:$0xff]  ;;  %v6358_v3 = vld [vmem:[%s11908_s3 + $0x3d8] sm:$0xff] }
 0x458   : > { %9188 = vmatprep.subr.bf16.mxu1 %v9187_v20 }
 0x45a   : > { %8415 = vmatmul.mubr.f32.gmra.mrb[10].mxu1 %v12088_v26  ;;  %v12110_v26 = vld [vmem:[#allocation33_spill] sm:$0xff] }
 0x45b   : > { %8417 = vmatprep.mubr.f32.mxu1 %v11376_v10  ;;  %9190 = vmatpush3.bf16.msra.mxu1 %v9187_v20  ;;  %v12091_v10 = vld [vmem:[#allocation16_spill] sm:$0xff]  ;;  %v6352_v20 = vld [vmem:[%s11908_s3 + $0x3a8] sm:$0xff] }
 0x45c   : > { %9192 = vmatprep.subr.bf16.mxu1 %v9191_v42 }
 0x45e   : > { %8418 = vmatmul.mubr.f32.gmra.mrb[12].mxu1 %v11379_v35  ;;  %v12096_v35 = vld [vmem:[#allocation21_spill] sm:$0xff] }
 0x45f   : > { %8420 = vmatprep.mubr.f32.mxu1 %v12089_v24  ;;  %9194 = vmatpush3.bf16.msra.mxu1 %v9191_v42  ;;  %v6360_v42 = vld [vmem:[%s11908_s3 + $0x3e8] sm:$0xff] }
 0x460   : > { %9196 = vmatprep.subr.bf16.mxu1 %v9195_v11  ;;  %v6372_v24 = vld [vmem:[%s11908_s3 + $0x448] sm:$0xff] }
 0x462   : > { %8421 = vmatmul.mubr.f32.gmra.mrb[14].mxu1 %v12090_v38  ;;  %v9247_v38 = vpack.c.bf16 %v6372_v24, %v6371_v16  ;;  %v5484_v16 = vld [vmem:[#allocation2 + $0x16a] sm:$0xff]  ;;  %v5485_v24 = vld [vmem:[#allocation2 + $0x172] sm:$0xff] }
 0x463   : > { %8423 = vmatprep.mubr.f32.mxu1 %v12091_v10  ;;  %9198 = vmatpush3.bf16.msra.mxu1 %v9195_v11  ;;  %v12111_v11 = vld [vmem:[#allocation34_spill] sm:$0xff]  ;;  %v6373_v10 = vld [vmem:[%s11908_s3 + $0x450] sm:$0xff] }
 0x464   : > { %9200 = vmatprep.subr.bf16.mxu1 %v9199_v37 }
 0x466   : > { %8424 = vmatmul.mubr.f32.gmra.mrb[16].mxu1 %v12092_v53  ;;  %v6374_v53 = vld [vmem:[%s11908_s3 + $0x458] sm:$0xff] }
 0x467   : > { %8426 = vmatprep.mubr.f32.mxu1 %v12093_v57  ;;  %v5160_v57 = vld [vmem:[#allocation2 + $0x91] sm:$0xff] }
 0x46a   : > { %8427 = vmatmul.mubr.f32.gmra.mrb[18].mxu1 %v12094_v13  ;;  %v6375_v13 = vld [vmem:[%s11908_s3 + $0x460] sm:$0xff] }
 0x46b   : > { %8429 = vmatprep.mubr.f32.mxu1 %v12095_v31  ;;  %v6376_v31 = vld [vmem:[%s11908_s3 + $0x468] sm:$0xff] }
 0x46e   : > { %8430 = vmatmul.mubr.f32.gmra.mrb[20].mxu1 %v12096_v35  ;;  %v5162_v35 = vld [vmem:[#allocation2 + $0xa9] sm:$0xff] }
 0x46f   : > { %8432 = vmatprep.mubr.f32.mxu1 %v12097_v12  ;;  %v5163_v12 = vld [vmem:[#allocation2 + $0xb1] sm:$0xff] }
 0x472   : > { %8433 = vmatmul.mubr.f32.gmra.mrb[22].mxu1 %v12098_v40  ;;  %v6377_v40 = vld [vmem:[%s11908_s3 + $0x470] sm:$0xff] }
 0x473   : > { %8435 = vmatprep.mubr.f32.mxu1 %v12099_v46  ;;  %v6378_v46 = vld [vmem:[%s11908_s3 + $0x478] sm:$0xff] }
 0x476   : > { %8436 = vmatmul.mubr.f32.gmra.mrb[24].mxu1 %v12100_v21  ;;  %v5164_v21 = vld [vmem:[#allocation2 + $0xc1] sm:$0xff] }
 0x477   : > { %8438 = vmatprep.mubr.f32.mxu1 %v12101_v56  ;;  %v5165_v56 = vld [vmem:[#allocation2 + $0xc9] sm:$0xff] }
 0x47a   : > { %8439 = vmatmul.mubr.f32.gmra.mrb[26].mxu1 %v12102_v61  ;;  %v5166_v61 = vld [vmem:[#allocation2 + $0xd9] sm:$0xff] }
 0x47b   : > { %8441 = vmatprep.mubr.f32.mxu1 %v12103_v5  ;;  %v5167_v5 = vld [vmem:[#allocation2 + $0xe1] sm:$0xff] }
 0x47e   : > { %8442 = vmatmul.mubr.f32.gmra.mrb[28].mxu1 %v11427_v2  ;;  %v6351_v2 = vld [vmem:[%s11908_s3 + $0x3a0] sm:$0xff] }
 0x47f   : > { %8444 = vmatprep.mubr.f32.mxu1 %v11690_v28  ;;  %v9207_v59 = vpack.c.bf16 %v6352_v20, %v6351_v2  ;;  %v5171_v2 = vld [vmem:[#allocation2 + $0x111] sm:$0xff]  ;;  %v5172_v20 = vld [vmem:[#allocation2 + $0x121] sm:$0xff] }
 0x482   : > { %8445 = vmatmul.mubr.f32.gmra.mrb[30].mxu1 %v11693_v14 }
 0x483   : > { %8479 = vmatprep.mubr.f32.mxu1 %v11178_v54  ;;  %v6353_v54 = vld [vmem:[%s11908_s3 + $0x3b0] sm:$0xff] }
 0x486   : > { %8480 = vmatmul.mubr.f32.vlgmr.msra.gmra.mrb[0].mxu1 %v11181_v29  ;;  %v9211_v29 = vpack.c.bf16 %v6354_v48, %v6353_v54  ;;  %v5174_v54 = vld [vmem:[#allocation2 + $0x139] sm:$0xff]  ;;  %v5175_v48 = vld [vmem:[#allocation2 + $0x141] sm:$0xff] }
 0x487   : > { %8482 = vmatprep.mubr.f32.mxu1 %v11190_v39  ;;  %9202 = vmatpush3.bf16.msra.mxu1 %v9199_v37  ;;  %v6355_v39 = vld [vmem:[%s11908_s3 + $0x3c0] sm:$0xff]  ;;  %v12112_v37 = vld [vmem:[#allocation35_spill] sm:$0xff] }
 0x488   : > { %9204 = vmatprep.subr.bf16.mxu1 %v9203_v55 }
 0x48a   : > { %8483 = vmatmul.mubr.f32.gmra.mrb[2].mxu1 %v11193_v47  ;;  %v9215_v47 = vpack.c.bf16 %v6356_v27, %v6355_v39  ;;  %v5177_v39 = vld [vmem:[#allocation2 + $0x159] sm:$0xff]  ;;  %v5178_v27 = vld [vmem:[#allocation2 + $0x169] sm:$0xff] }
 0x48b   : > { %8485 = vmatprep.mubr.f32.mxu1 %v11202_v23  ;;  %9206 = vmatpush3.bf16.msra.mxu1 %v9203_v55  ;;  %v6357_v23 = vld [vmem:[%s11908_s3 + $0x3d0] sm:$0xff] }
 0x48c   : > { %9208 = vmatprep.subr.bf16.mxu1 %v9207_v59  ;;  %v5170_v55 = vld [vmem:[#allocation2 + $0x109] sm:$0xff] }
 0x48e   : > { %8486 = vmatmul.mubr.f32.gmra.mrb[4].mxu1 %v11205_v9  ;;  %v9219_v9 = vpack.c.bf16 %v6358_v3, %v6357_v23  ;;  %v5180_v23 = vld [vmem:[#allocation2 + $0x181] sm:$0xff]  ;;  %v5182_v3 = vld [vmem:[#allocation2 + $0x199] sm:$0xff] }
 0x48f   : > { %8488 = vmatprep.mubr.f32.mxu1 %v11214_v36  ;;  %9210 = vmatpush3.bf16.msra.mxu1 %v9207_v59  ;;  %v6359_v36 = vld [vmem:[%s11908_s3 + $0x3e0] sm:$0xff]  ;;  %v5173_v59 = vld [vmem:[#allocation2 + $0x129] sm:$0xff] }
 0x490   : > { %9212 = vmatprep.subr.bf16.mxu1 %v9211_v29 }
 0x492   : > { %8489 = vmatmul.mubr.f32.gmra.mrb[6].mxu1 %v11217_v41  ;;  %v9223_v41 = vpack.c.bf16 %v6360_v42, %v6359_v36  ;;  %v5183_v36 = vld [vmem:[#allocation2 + $0x1a1] sm:$0xff]  ;;  %v5458_v42 = vld [vmem:[#allocation2 + $0x32] sm:$0xff] }
 0x493   : > { %8491 = vmatprep.mubr.f32.mxu1 %v11226_v45  ;;  %9214 = vmatpush3.bf16.msra.mxu1 %v9211_v29  ;;  %v6361_v45 = vld [vmem:[%s11908_s3 + $0x3f0] sm:$0xff] }
 0x494   : > { %9216 = vmatprep.subr.bf16.mxu1 %v9215_v47  ;;  %v5176_v29 = vld [vmem:[#allocation2 + $0x151] sm:$0xff] }
 0x496   : > { %8492 = vmatmul.mubr.f32.gmra.mrb[8].mxu1 %v11229_v51  ;;  %v9227_v51 = vpack.c.bf16 %v6362_v44, %v6361_v45  ;;  %v5460_v45 = vld [vmem:[#allocation2 + $0x4a] sm:$0xff]  ;;  %v5461_v44 = vld [vmem:[#allocation2 + $0x52] sm:$0xff] }
 0x497   : > { %8494 = vmatprep.mubr.f32.mxu1 %v11238_v1  ;;  %9218 = vmatpush3.bf16.msra.mxu1 %v9215_v47  ;;  %v6363_v1 = vld [vmem:[%s11908_s3 + $0x400] sm:$0xff]  ;;  %v5179_v47 = vld [vmem:[#allocation2 + $0x171] sm:$0xff] }
 0x498   : > { %9220 = vmatprep.subr.bf16.mxu1 %v9219_v9 }
 0x49a   : > { %8495 = vmatmul.mubr.f32.gmra.mrb[10].mxu1 %v11241_v22  ;;  %v9231_v22 = vpack.c.bf16 %v6364_v17, %v6363_v1  ;;  %v5463_v1 = vld [vmem:[#allocation2 + $0x6a] sm:$0xff]  ;;  %v5464_v17 = vld [vmem:[#allocation2 + $0x7a] sm:$0xff] }
 0x49b   : > { %8497 = vmatprep.mubr.f32.mxu1 %v11244_v4  ;;  %9222 = vmatpush3.bf16.msra.mxu1 %v9219_v9  ;;  %v12104_v4 = vld [vmem:[#allocation3_spill] sm:$0xff] }
 0x49c   : > { %9224 = vmatprep.subr.bf16.mxu1 %v9223_v41  ;;  %v5181_v9 = vld [vmem:[#allocation2 + $0x189] sm:$0xff] }
 0x49e   : > { %8498 = vmatmul.mubr.f32.gmra.mrb[12].mxu1 %v11247_v6  ;;  %v12105_v6 = vld [vmem:[#allocation4_spill] sm:$0xff] }
 0x49f   : > { %8500 = vmatprep.mubr.f32.mxu1 %v11250_v60  ;;  %9226 = vmatpush3.bf16.msra.mxu1 %v9223_v41  ;;  %v12106_v60 = vld [vmem:[#allocation29_spill] sm:$0xff] }
 0x4a0   : > { %9228 = vmatprep.subr.bf16.mxu1 %v9227_v51  ;;  %v5459_v41 = vld [vmem:[#allocation2 + $0x3a] sm:$0xff] }
 0x4a2   : > { %8501 = vmatmul.mubr.f32.gmra.mrb[14].mxu1 %v11253_v34  ;;  %v12107_v34 = vld [vmem:[#allocation30_spill] sm:$0xff] }
 0x4a3   : > { %8503 = vmatprep.mubr.f32.mxu1 %v11256_v8  ;;  %9230 = vmatpush3.bf16.msra.mxu1 %v9227_v51  ;;  %v9785_v8 = vld [vmem:[#allocation2] sm:$0xff] }
 0x4a4   : > { %9232 = vmatprep.subr.bf16.mxu1 %v9231_v22  ;;  %v5462_v51 = vld [vmem:[#allocation2 + $0x62] sm:$0xff] }
 0x4a6   : > { %8504 = vmatmul.mubr.f32.gmra.mrb[16].mxu1 %v11259_v0  ;;  %v6365_v0 = vld [vmem:[%s11908_s3 + $0x410] sm:$0xff] }
 0x4a7   : > { %8506 = vmatprep.mubr.f32.mxu1 %v11262_v49  ;;  %v6366_v49 = vld [vmem:[%s11908_s3 + $0x418] sm:$0xff] }
 0x4aa   : > { %8507 = vmatmul.mubr.f32.gmra.mrb[18].mxu1 %v11265_v52  ;;  %v9235_v52 = vpack.c.bf16 %v6366_v49, %v6365_v0  ;;  %v5471_v0 = vld [vmem:[#allocation2 + $0xca] sm:$0xff]  ;;  %v5472_v49 = vld [vmem:[#allocation2 + $0xda] sm:$0xff] }
 0x4ab   : > { %8509 = vmatprep.mubr.f32.mxu1 %v11268_v15  ;;  %v6367_v15 = vld [vmem:[%s11908_s3 + $0x420] sm:$0xff] }
 0x4ae   : > { %8510 = vmatmul.mubr.f32.gmra.mrb[20].mxu1 %v11271_v19  ;;  %v6368_v19 = vld [vmem:[%s11908_s3 + $0x428] sm:$0xff] }
 0x4af   : > { %8512 = vmatprep.mubr.f32.mxu1 %v11274_v25  ;;  %v12108_v25 = vld [vmem:[#allocation31_spill] sm:$0xff] }
 0x4b2   : > { %8513 = vmatmul.mubr.f32.gmra.mrb[22].mxu1 %v11277_v63  ;;  %v12109_v63 = vld [vmem:[#allocation32_spill] sm:$0xff] }
 0x4b3   : > { %8515 = vmatprep.mubr.f32.mxu1 %v11280_v30  ;;  %v9239_v30 = vpack.c.bf16 %v6368_v19, %v6367_v15  ;;  %v5474_v15 = vld [vmem:[#allocation2 + $0xf2] sm:$0xff]  ;;  %v5475_v19 = vld [vmem:[#allocation2 + $0xfa] sm:$0xff] }
 0x4b6   : > { %8516 = vmatmul.mubr.f32.gmra.mrb[24].mxu1 %v11283_v32  ;;  %v6369_v32 = vld [vmem:[%s11908_s3 + $0x430] sm:$0xff] }
 0x4b7   : > { %8518 = vmatprep.mubr.f32.mxu1 %v12104_v4  ;;  %v5466_v4 = vld [vmem:[#allocation2 + $0x92] sm:$0xff] }
 0x4ba   : > { %8519 = vmatmul.mubr.f32.gmra.mrb[26].mxu1 %v12105_v6  ;;  %v5467_v6 = vld [vmem:[#allocation2 + $0x9a] sm:$0xff] }
 0x4bb   : > { %8521 = vmatprep.mubr.f32.mxu1 %v12106_v60  ;;  %v5468_v60 = vld [vmem:[#allocation2 + $0xaa] sm:$0xff] }
 0x4be   : > { %8522 = vmatmul.mubr.f32.gmra.mrb[28].mxu1 %v12107_v34  ;;  %v5469_v34 = vld [vmem:[#allocation2 + $0xb2] sm:$0xff] }
 0x4bf   : > { %8524 = vmatprep.mubr.f32.mxu1 %v9785_v8 }
 0x4c2   : > { %8525 = vmatmul.mubr.f32.gmra.mrb[30].mxu1 %v9785_v8  ;;  %v5470_v8 = vld [vmem:[#allocation2 + $0xc2] sm:$0xff] }
 0x4c3   : > { %8559 = vmatprep.mubr.f32.mxu1 %v11526_v62  ;;  %v6370_v62 = vld [vmem:[%s11908_s3 + $0x438] sm:$0xff] }
 0x4c4   : > { %v9243_v58 = vpack.c.bf16 %v6370_v62, %v6369_v32  ;;  %v5479_v32 = vld [vmem:[#allocation2 + $0x12a] sm:$0xff]  ;;  %v5480_v62 = vld [vmem:[#allocation2 + $0x13a] sm:$0xff] }
 0x4c6   : > { %8560 = vmatmul.mubr.f32.vlgmr.msra.gmra.mrb[0].mxu1 %v12108_v25  ;;  %v5476_v25 = vld [vmem:[#allocation2 + $0x10a] sm:$0xff] }
 0x4c7   : > { %8562 = vmatprep.mubr.f32.mxu1 %v12109_v63  ;;  %9234 = vmatpush3.bf16.msra.mxu1 %v9231_v22  ;;  %v5465_v22 = vld [vmem:[#allocation2 + $0x82] sm:$0xff]  ;;  %v5477_v63 = vld [vmem:[#allocation2 + $0x112] sm:$0xff] }
 0x4c8   : > { %9236 = vmatprep.subr.bf16.mxu1 %v9235_v52 }
 0x4ca   : > { %8563 = vmatmul.mubr.f32.gmra.mrb[2].mxu1 %v12110_v26  ;;  %v5481_v26 = vld [vmem:[#allocation2 + $0x142] sm:$0xff] }
 0x4cb   : > { %8565 = vmatprep.mubr.f32.mxu1 %v12111_v11  ;;  %9238 = vmatpush3.bf16.msra.mxu1 %v9235_v52  ;;  %v5473_v52 = vld [vmem:[#allocation2 + $0xe2] sm:$0xff]  ;;  %v5482_v11 = vld [vmem:[#allocation2 + $0x152] sm:$0xff] }
 0x4cc   : > { %9240 = vmatprep.subr.bf16.mxu1 %v9239_v30 }
 0x4ce   : > { %8566 = vmatmul.mubr.f32.gmra.mrb[4].mxu1 %v11553_v18  ;;  %v9251_v18 = vpack.c.bf16 %v6374_v53, %v6373_v10  ;;  %v11830_v10 = vld [vmem:[%s11909_s4] ss:$0 sm:$0xff] }
 0x4cf   : > { %8568 = vmatprep.mubr.f32.mxu1 %v12112_v37  ;;  %9242 = vmatpush3.bf16.msra.mxu1 %v9239_v30  ;;  %v5478_v30 = vld [vmem:[#allocation2 + $0x122] sm:$0xff]  ;;  %v5488_v37 = vld [vmem:[#allocation2 + $0x19a] sm:$0xff] }
 0x4d0   : > { %9244 = vmatprep.subr.bf16.mxu1 %v9243_v58 }
 0x4d2   : > { %8569 = vmatmul.mubr.f32.gmra.mrb[6].mxu1 %v11565_v43  ;;  %v9255_v43 = vpack.c.bf16 %v6376_v31, %v6375_v13 }
 0x4d3   : > { %8571 = vmatprep.mubr.f32.mxu1 %v5160_v57  ;;  %9246 = vmatpush3.bf16.msra.mxu1 %v9243_v58  ;;  %v5483_v58 = vld [vmem:[#allocation2 + $0x15a] sm:$0xff] }
 0x4d4   : > { %9248 = vmatprep.subr.bf16.mxu1 %v9247_v38 }
 0x4d6   : > { %8572 = vmatmul.mubr.f32.gmra.mrb[8].mxu1 %v11575_v7  ;;  %v9259_v7 = vpack.c.bf16 %v6378_v46, %v6377_v40 }
 0x4d7   : > { %8574 = vmatprep.mubr.f32.mxu1 %v5162_v35  ;;  %9250 = vmatpush3.bf16.msra.mxu1 %v9247_v38  ;;  %v5489_v38 = vld [vmem:[#allocation2 + $0x1a2] sm:$0xff] }
 0x4d8   : > { %9252 = vmatprep.subr.bf16.mxu1 %v9251_v18 }
 0x4da   : > { %8575 = vmatmul.mubr.f32.gmra.mrb[10].mxu1 %v5163_v12 }
 0x4db   : > { %8577 = vmatprep.mubr.f32.mxu1 %v5164_v21  ;;  %9254 = vmatpush3.bf16.msra.mxu1 %v9251_v18 }
 0x4dc   : > { %9256 = vmatprep.subr.bf16.mxu1 %v9255_v43 }
 0x4de   : > { %8578 = vmatmul.mubr.f32.gmra.mrb[12].mxu1 %v5165_v56 }
 0x4df   : > { %8580 = vmatprep.mubr.f32.mxu1 %v5166_v61  ;;  %9258 = vmatpush3.bf16.msra.mxu1 %v9255_v43 }
 0x4e0   : > { %9260 = vmatprep.subr.bf16.mxu1 %v9259_v7 }
 0x4e2   : > { %8581 = vmatmul.mubr.f32.gmra.mrb[14].mxu1 %v5167_v5 }
 0x4e3   : > { %8583 = vmatprep.mubr.f32.mxu1 %v5168_v33  ;;  %9262 = vmatpush3.bf16.msra.mxu1 %v9259_v7 }
 0x4e6   : > { %8584 = vmatmul.mubr.f32.gmra.mrb[16].mxu1 %v5169_v50 }
 0x4e7   : > { %8586 = vmatprep.mubr.f32.mxu1 %v5170_v55 }
 0x4ea   : > { %8587 = vmatmul.mubr.f32.gmra.mrb[18].mxu1 %v5171_v2 }
 0x4eb   : > { %8589 = vmatprep.mubr.f32.mxu1 %v5172_v20 }
 0x4ee   : > { %8590 = vmatmul.mubr.f32.gmra.mrb[20].mxu1 %v5173_v59 }
 0x4ef   : > { %8592 = vmatprep.mubr.f32.mxu1 %v5174_v54 }
 0x4f2   : > { %8593 = vmatmul.mubr.f32.gmra.mrb[22].mxu1 %v5175_v48 }
 0x4f3   : > { %8595 = vmatprep.mubr.f32.mxu1 %v5176_v29 }
 0x4f6   : > { %8596 = vmatmul.mubr.f32.gmra.mrb[24].mxu1 %v5177_v39 }
 0x4f7   : > { %8598 = vmatprep.mubr.f32.mxu1 %v5178_v27 }
 0x4fa   : > { %8599 = vmatmul.mubr.f32.gmra.mrb[26].mxu1 %v5179_v47 }
 0x4fb   : > { %8601 = vmatprep.mubr.f32.mxu1 %v5180_v23 }
 0x4fe   : > { %8602 = vmatmul.mubr.f32.gmra.mrb[28].mxu1 %v5181_v9 }
 0x4ff   : > { %8604 = vmatprep.mubr.f32.mxu1 %v5182_v3 }
 0x502   : > { %8605 = vmatmul.mubr.f32.gmra.mrb[30].mxu1 %v5183_v36 }
 0x503   : > { %8639 = vmatprep.mubr.f32.mxu1 %v5458_v42 }
 0x506   : > { %8640 = vmatmul.mubr.f32.vlgmr.msra.gmra.mrb[0].mxu1 %v5459_v41 }
 0x507   : > { %8642 = vmatprep.mubr.f32.mxu1 %v5460_v45 }
 0x50a   : > { %8643 = vmatmul.mubr.f32.gmra.mrb[2].mxu1 %v5461_v44 }
 0x50b   : > { %8645 = vmatprep.mubr.f32.mxu1 %v5462_v51 }
 0x50e   : > { %8646 = vmatmul.mubr.f32.gmra.mrb[4].mxu1 %v5463_v1 }
 0x50f   : > { %8648 = vmatprep.mubr.f32.mxu1 %v5464_v17 }
 0x512   : > { %8649 = vmatmul.mubr.f32.gmra.mrb[6].mxu1 %v5465_v22 }
 0x513   : > { %8651 = vmatprep.mubr.f32.mxu1 %v5466_v4 }
 0x516   : > { %8652 = vmatmul.mubr.f32.gmra.mrb[8].mxu1 %v5467_v6 }
 0x517   : > { %8654 = vmatprep.mubr.f32.mxu1 %v5468_v60 }
 0x51a   : > { %8655 = vmatmul.mubr.f32.gmra.mrb[10].mxu1 %v5469_v34 }
 0x51b   : > { %8657 = vmatprep.mubr.f32.mxu1 %v5470_v8 }
 0x51e   : > { %8658 = vmatmul.mubr.f32.gmra.mrb[12].mxu1 %v5471_v0 }
 0x51f   : > { %8660 = vmatprep.mubr.f32.mxu1 %v5472_v49 }
 0x522   : > { %8661 = vmatmul.mubr.f32.gmra.mrb[14].mxu1 %v5473_v52 }
 0x523   : > { %8663 = vmatprep.mubr.f32.mxu1 %v5474_v15 }
 0x526   : > { %8664 = vmatmul.mubr.f32.gmra.mrb[16].mxu1 %v5475_v19 }
 0x527   : > { %8666 = vmatprep.mubr.f32.mxu1 %v5476_v25 }
 0x52a   : > { %8667 = vmatmul.mubr.f32.gmra.mrb[18].mxu1 %v5477_v63 }
 0x52b   : > { %8669 = vmatprep.mubr.f32.mxu1 %v5478_v30 }
 0x52e   : > { %8670 = vmatmul.mubr.f32.gmra.mrb[20].mxu1 %v5479_v32 }
 0x52f   : > { %8672 = vmatprep.mubr.f32.mxu1 %v5480_v62 }
 0x532   : > { %8673 = vmatmul.mubr.f32.gmra.mrb[22].mxu1 %v5481_v26 }
 0x533   : > { %8675 = vmatprep.mubr.f32.mxu1 %v5482_v11 }
 0x536   : > { %8676 = vmatmul.mubr.f32.gmra.mrb[24].mxu1 %v5483_v58 }
 0x537   : > { %8678 = vmatprep.mubr.f32.mxu1 %v5484_v16 }
 0x53a   : > { %8679 = vmatmul.mubr.f32.gmra.mrb[26].mxu1 %v5485_v24 }
 0x53b   : > { %8681 = vmatprep.mubr.f32.mxu1 %v11690_v28 }
 0x53e   : > { %8682 = vmatmul.mubr.f32.gmra.mrb[28].mxu1 %v11693_v14 }
 0x53f   : > { %8684 = vmatprep.mubr.f32.mxu1 %v5488_v37 }
 0x542   : > { %8685 = vmatmul.mubr.f32.gmra.mrb[30].mxu1 %v5489_v38 }
 0x5d9   : > { %v8641_v53 = vpop.f32.mrb[0].mxu1 }
 0x5da   : > { %v5772_v57 = vadd.f32 %v8641_v53, %v11830_v10  ;;  %v5573_v18 = vpop.f32.mrb[1].mxu1 }
 0x5db   : > { %v5771_v28 = vadd.f32 %v11830_v10, %v5573_v18 }
 0x5dc   : > { %v5804_v14 = vmax.f32 %v5772_v57, 0.0 }
 0x5dd   : > { %v5803_v13 = vmax.f32 %v5771_v28, 0.0  ;;  %v8644_v31 = vpop.f32.mrb[2].mxu1 }
 0x5de   : > { %5836 = vst [vmem:[%s11837_s22 + $0x8] sm:$0xff] %v5804_v14  ;;  %v5774_v35 = vadd.f32 %v8644_v31, %v11830_v10  ;;  %v5583_v43 = vpop.f32.mrb[3].mxu1 }
 0x5df   : > { %5835 = vst [vmem:[%s11837_s22] sm:$0xff] %v5803_v13  ;;  %v5773_v12 = vadd.f32 %v11830_v10, %v5583_v43 }
 0x5e0   : > { %v5806_v40 = vmax.f32 %v5774_v35, 0.0 }
 0x5e1   : > { %v5805_v46 = vmax.f32 %v5773_v12, 0.0  ;;  %v8647_v21 = vpop.f32.mrb[4].mxu1 }
 0x5e2   : > { %5838 = vst [vmem:[%s11837_s22 + $0x18] sm:$0xff] %v5806_v40  ;;  %v5776_v7 = vadd.f32 %v8647_v21, %v11830_v10  ;;  %v5593_v56 = vpop.f32.mrb[5].mxu1 }
 0x5e3   : > { %5837 = vst [vmem:[%s11837_s22 + $0x10] sm:$0xff] %v5805_v46  ;;  %v5775_v61 = vadd.f32 %v11830_v10, %v5593_v56 }
 0x5e4   : > { %v5808_v5 = vmax.f32 %v5776_v7, 0.0 }
 0x5e5   : > { %v5807_v33 = vmax.f32 %v5775_v61, 0.0  ;;  %v8650_v50 = vpop.f32.mrb[6].mxu1 }
 0x5e6   : > { %5840 = vst [vmem:[%s11837_s22 + $0x28] sm:$0xff] %v5808_v5  ;;  %v5778_v55 = vadd.f32 %v8650_v50, %v11830_v10  ;;  %v5603_v2 = vpop.f32.mrb[7].mxu1 }
 0x5e7   : > { %5839 = vst [vmem:[%s11837_s22 + $0x20] sm:$0xff] %v5807_v33  ;;  %v5777_v20 = vadd.f32 %v11830_v10, %v5603_v2 }
 0x5e8   : > { %v5810_v59 = vmax.f32 %v5778_v55, 0.0 }
 0x5e9   : > { %v5809_v54 = vmax.f32 %v5777_v20, 0.0  ;;  %v8653_v48 = vpop.f32.mrb[8].mxu1 }
 0x5ea   : > { %5842 = vst [vmem:[%s11837_s22 + $0x38] sm:$0xff] %v5810_v59  ;;  %v5780_v29 = vadd.f32 %v8653_v48, %v11830_v10  ;;  %v5613_v39 = vpop.f32.mrb[9].mxu1 }
 0x5eb   : > { %5841 = vst [vmem:[%s11837_s22 + $0x30] sm:$0xff] %v5809_v54  ;;  %v5779_v27 = vadd.f32 %v11830_v10, %v5613_v39 }
 0x5ec   : > { %v5812_v47 = vmax.f32 %v5780_v29, 0.0 }
 0x5ed   : > { %v5811_v23 = vmax.f32 %v5779_v27, 0.0  ;;  %v8656_v3 = vpop.f32.mrb[10].mxu1 }
 0x5ee   : > { %5844 = vst [vmem:[%s11837_s22 + $0x48] sm:$0xff] %v5812_v47  ;;  %v5782_v9 = vadd.f32 %v8656_v3, %v11830_v10  ;;  %v5623_v36 = vpop.f32.mrb[11].mxu1 }
 0x5ef   : > { %5843 = vst [vmem:[%s11837_s22 + $0x40] sm:$0xff] %v5811_v23  ;;  %v5781_v42 = vadd.f32 %v11830_v10, %v5623_v36 }
 0x5f0   : > { %v5814_v41 = vmax.f32 %v5782_v9, 0.0 }
 0x5f1   : > { %v5813_v45 = vmax.f32 %v5781_v42, 0.0  ;;  %v8659_v44 = vpop.f32.mrb[12].mxu1 }
 0x5f2   : > { %5846 = vst [vmem:[%s11837_s22 + $0x58] sm:$0xff] %v5814_v41  ;;  %v5784_v51 = vadd.f32 %v8659_v44, %v11830_v10  ;;  %v5633_v1 = vpop.f32.mrb[13].mxu1 }
 0x5f3   : > { %5845 = vst [vmem:[%s11837_s22 + $0x50] sm:$0xff] %v5813_v45  ;;  %v5783_v17 = vadd.f32 %v11830_v10, %v5633_v1 }
 0x5f4   : > { %v5816_v22 = vmax.f32 %v5784_v51, 0.0 }
 0x5f5   : > { %v5815_v4 = vmax.f32 %v5783_v17, 0.0  ;;  %v8662_v6 = vpop.f32.mrb[14].mxu1 }
 0x5f6   : > { %5848 = vst [vmem:[%s11837_s22 + $0x68] sm:$0xff] %v5816_v22  ;;  %v5786_v60 = vadd.f32 %v8662_v6, %v11830_v10  ;;  %v5643_v34 = vpop.f32.mrb[15].mxu1 }
 0x5f7   : > { %5847 = vst [vmem:[%s11837_s22 + $0x60] sm:$0xff] %v5815_v4  ;;  %v5785_v8 = vadd.f32 %v11830_v10, %v5643_v34 }
 0x5f8   : > { %v5818_v0 = vmax.f32 %v5786_v60, 0.0 }
 0x5f9   : > { %v5817_v49 = vmax.f32 %v5785_v8, 0.0  ;;  %v8665_v52 = vpop.f32.mrb[16].mxu1 }
 0x5fa   : > { %5850 = vst [vmem:[%s11837_s22 + $0x78] sm:$0xff] %v5818_v0  ;;  %v5788_v15 = vadd.f32 %v8665_v52, %v11830_v10  ;;  %v5653_v19 = vpop.f32.mrb[17].mxu1 }
 0x5fb   : > { %5849 = vst [vmem:[%s11837_s22 + $0x70] sm:$0xff] %v5817_v49  ;;  %v5787_v25 = vadd.f32 %v11830_v10, %v5653_v19 }
 0x5fc   : > { %v5820_v63 = vmax.f32 %v5788_v15, 0.0 }
 0x5fd   : > { %v5819_v30 = vmax.f32 %v5787_v25, 0.0  ;;  %v8668_v32 = vpop.f32.mrb[18].mxu1 }
 0x5fe   : > { %5852 = vst [vmem:[%s11837_s22 + $0x88] sm:$0xff] %v5820_v63  ;;  %v5790_v62 = vadd.f32 %v8668_v32, %v11830_v10  ;;  %v5663_v26 = vpop.f32.mrb[19].mxu1 }
 0x5ff   : > { %5851 = vst [vmem:[%s11837_s22 + $0x80] sm:$0xff] %v5819_v30  ;;  %v5789_v11 = vadd.f32 %v11830_v10, %v5663_v26 }
 0x600   : > { %v5822_v58 = vmax.f32 %v5790_v62, 0.0 }
 0x601   : > { %v5821_v16 = vmax.f32 %v5789_v11, 0.0  ;;  %v8671_v24 = vpop.f32.mrb[20].mxu1 }
 0x602   : > { %5854 = vst [vmem:[%s11837_s22 + $0x98] sm:$0xff] %v5822_v58  ;;  %v5792_v37 = vadd.f32 %v8671_v24, %v11830_v10  ;;  %v5673_v38 = vpop.f32.mrb[21].mxu1 }
 0x603   : > { %5853 = vst [vmem:[%s11837_s22 + $0x90] sm:$0xff] %v5821_v16  ;;  %v5791_v53 = vadd.f32 %v11830_v10, %v5673_v38 }
 0x604   : > { %v5824_v57 = vmax.f32 %v5792_v37, 0.0 }
 0x605   : > { %v5823_v18 = vmax.f32 %v5791_v53, 0.0  ;;  %v8674_v28 = vpop.f32.mrb[22].mxu1 }
 0x606   : > { %5856 = vst [vmem:[%s11837_s22 + $0xa8] sm:$0xff] %v5824_v57  ;;  %v5794_v14 = vadd.f32 %v8674_v28, %v11830_v10  ;;  %v5683_v13 = vpop.f32.mrb[23].mxu1 }
 0x607   : > { %5855 = vst [vmem:[%s11837_s22 + $0xa0] sm:$0xff] %v5823_v18  ;;  %v5793_v31 = vadd.f32 %v11830_v10, %v5683_v13 }
 0x608   : > { %v5826_v35 = vmax.f32 %v5794_v14, 0.0 }
 0x609   : > { %v5825_v43 = vmax.f32 %v5793_v31, 0.0  ;;  %v8677_v12 = vpop.f32.mrb[24].mxu1 }
 0x60a   : > { %5858 = vst [vmem:[%s11837_s22 + $0xb8] sm:$0xff] %v5826_v35  ;;  %v5796_v40 = vadd.f32 %v8677_v12, %v11830_v10  ;;  %v5693_v46 = vpop.f32.mrb[25].mxu1 }
 0x60b   : > { %5857 = vst [vmem:[%s11837_s22 + $0xb0] sm:$0xff] %v5825_v43  ;;  %v5795_v21 = vadd.f32 %v11830_v10, %v5693_v46 }
 0x60c   : > { %v5828_v7 = vmax.f32 %v5796_v40, 0.0 }
 0x60d   : > { %v5827_v56 = vmax.f32 %v5795_v21, 0.0  ;;  %v8680_v61 = vpop.f32.mrb[26].mxu1 }
 0x60e   : > { %5860 = vst [vmem:[%s11837_s22 + $0xc8] sm:$0xff] %v5828_v7  ;;  %v5798_v5 = vadd.f32 %v8680_v61, %v11830_v10  ;;  %v5703_v33 = vpop.f32.mrb[27].mxu1 }
 0x60f   : > { %5859 = vst [vmem:[%s11837_s22 + $0xc0] sm:$0xff] %v5827_v56  ;;  %v5797_v50 = vadd.f32 %v11830_v10, %v5703_v33 }
 0x610   : > { %v5830_v55 = vmax.f32 %v5798_v5, 0.0 }
 0x611   : > { %v5829_v2 = vmax.f32 %v5797_v50, 0.0  ;;  %v8683_v20 = vpop.f32.mrb[28].mxu1 }
 0x612   : > { %5862 = vst [vmem:[%s11837_s22 + $0xd8] sm:$0xff] %v5830_v55  ;;  %v5800_v59 = vadd.f32 %v8683_v20, %v11830_v10  ;;  %v5713_v54 = vpop.f32.mrb[29].mxu1 }
 0x613   : > { %5861 = vst [vmem:[%s11837_s22 + $0xd0] sm:$0xff] %v5829_v2  ;;  %v5799_v48 = vadd.f32 %v11830_v10, %v5713_v54 }
 0x614   : > { %v5832_v29 = vmax.f32 %v5800_v59, 0.0 }
 0x615   : > { %v5831_v39 = vmax.f32 %v5799_v48, 0.0  ;;  %v8686_v27 = vpop.f32.mrb[30].mxu1 }
 0x616   : > { %5864 = vst [vmem:[%s11837_s22 + $0xe8] sm:$0xff] %v5832_v29  ;;  %v5802_v47 = vadd.f32 %v8686_v27, %v11830_v10  ;;  %v5723_v23 = vpop.f32.mrb[31].mxu1 }
 0x617   : > { %5863 = vst [vmem:[%s11837_s22 + $0xe0] sm:$0xff] %v5831_v39  ;;  %v5801_v3 = vadd.f32 %v11830_v10, %v5723_v23 }
 0x618   : > { %v5834_v9 = vmax.f32 %v5802_v47, 0.0 }
 0x619   : > { %v5833_v36 = vmax.f32 %v5801_v3, 0.0 }
 0x61a   : > { %5866 = vst [vmem:[%s11837_s22 + $0xf8] sm:$0xff] %v5834_v9 }
 0x61b   : > { %5865 = vst [vmem:[%s11837_s22 + $0xf0] sm:$0xff] %v5833_v36 }
 0x61c PF: > { %s15_s18 = sadd.s32 1, %s9792_s18  }
 0x61d   : > { %p12_p4 = scmp.ge.s32.totalorder %s15_s18, 4  }
 0x61f   :  { %14 = sbr.rel (!%p12_p4) target bundleno = 1 (0x1), region = 90 }

</bundles_post_ra>
